<compile_context>
chip_gen: v6e
topology: v6e:2x2x1
jax: 0.10.0
libtpu: 0.0.40
codegen_flags: <defaults>
</compile_context>

<pallas_src>
import functools

import jax
import jax.numpy as jnp
from jax.experimental import pallas as pl
from jax.experimental.pallas import tpu as pltpu


# ----------------------------------------------------------------------------
# helpers
# ----------------------------------------------------------------------------
def _round_up(n, m):
    return ((n + m - 1) // m) * m


def _tile_rows(M, row_bytes, tile_budget_bytes=2 << 20):
    """One row tile unless the per-tile f32 working set exceeds ~2 MiB; when a
    split does happen, keep tiles >=256 rows so per-grid-step overhead and the
    tiny-K MXU latency are amortized."""
    Mp = _round_up(max(M, 1), 8)
    cap = max(256, (tile_budget_bytes // max(row_bytes, 1)) // 8 * 8)
    if Mp <= cap:
        return Mp, Mp
    TM = cap
    Mp = _round_up(Mp, TM)
    return TM, Mp


def _gelu(x):
    # PyTorch nn.GELU() default (exact erf form).
    return 0.5 * x * (1.0 + jax.lax.erf(x * (1.0 / jnp.sqrt(2.0).astype(x.dtype))))


def _ln(x, g, b, eps):
    mu = jnp.mean(x, axis=-1, keepdims=True)
    xc = x - mu
    var = jnp.mean(xc * xc, axis=-1, keepdims=True)
    return xc * jax.lax.rsqrt(var + eps) * g + b


def _ln_nogb(x, eps):
    # LayerNorm without affine (the affine is folded into fc1 at prep time).
    mu = jnp.mean(x, axis=-1, keepdims=True)
    xc = x - mu
    var = jnp.mean(xc * xc, axis=-1, keepdims=True)
    return xc * jax.lax.rsqrt(var + eps)


# ----------------------------------------------------------------------------
# Pallas kernel: one GrootV level, grid = (row_tiles, depth)
# ----------------------------------------------------------------------------
def _level_kernel(*refs, eps, has_prologue):
    """Grid step (i, k): apply block k to the resident token tile i.

    k == 0      : load tile, apply optional downsample-LN prologue (emitting
                  the LN'd tokens as the pyramid feature output).
    every k     : t += LN1(t) [TreeSSM->identity];  t += fc2(GELU(fc1(LN2(t))))
    k == last   : apply the level LayerNorm and store.
    Weights are bf16 (f32 accumulation); LN / GELU / residual math in f32.
    """
    idx = 0
    x_ref = refs[idx]; idx += 1
    if has_prologue:
        pre_g, pre_b = refs[idx], refs[idx + 1]; idx += 2
    n1g, n1b, w1, b1, w2, b2, ng, nb = refs[idx:idx + 8]; idx += 8
    if has_prologue:
        feat_ref = refs[idx]; idx += 1
    o_ref = refs[idx]; idx += 1
    acc = refs[idx]

    k = pl.program_id(1)

    @pl.when(k == 0)
    def _():
        t0 = x_ref[...].astype(jnp.float32)
        if has_prologue:
            t0 = _ln(t0, pre_g[...], pre_b[...], eps)
            feat_ref[...] = t0.astype(feat_ref.dtype)
        acc[...] = t0

    t = acc[...]
    # SSM branch.  TODO(synk): MTTree_SSM3D replaced by identity (source not provided).
    t = t + _ln(t, n1g[...], n1b[...], eps)
    # MLP branch: LN2 (affine folded into fc1) -> fc1 -> GELU -> fc2, residual add.
    h = _ln_nogb(t, eps)
    h = jnp.dot(h.astype(jnp.bfloat16), w1[...],
                preferred_element_type=jnp.float32) + b1[...]
    h = _gelu(h)
    h = jnp.dot(h.astype(jnp.bfloat16), w2[...],
                preferred_element_type=jnp.float32) + b2[...]
    t = t + h
    acc[...] = t

    @pl.when(k == pl.num_programs(1) - 1)
    def _():
        o_ref[...] = _ln(t, ng[...], nb[...], eps).astype(o_ref.dtype)


# ----------------------------------------------------------------------------
# Pallas wrapper
# ----------------------------------------------------------------------------
def level_forward(tokens, lp, pre_ln=None, eps=1e-6):
    """Fused GrootVBlock_3D level on a (M, C) token matrix.

    If pre_ln=(gamma, beta) is given, the previous level's downsample
    LayerNorm is applied as a prologue and the LN'd tokens are returned as a
    secondary output (they are also a pyramid feature of the module).
    """
    M, C = tokens.shape
    depth, _, hidden = lp["fc1_w"].shape
    TM, Mp = _tile_rows(M, 4 * (C + hidden))
    xp = tokens if Mp == M else jnp.pad(tokens, ((0, Mp - M), (0, 0)))

    row_spec = pl.BlockSpec((TM, C), lambda i, k: (i, 0))

    def const(shape):
        # Constant-index params: fetched once, single-buffered (VMEM saving).
        return pl.BlockSpec(shape, lambda i, k: (0, 0), pipeline_mode=pl.Buffered(1))

    def per_blk(shape):
        # Streamed per-depth params: default double buffering overlaps the
        # next block's weight DMA with the current block's compute.
        return pl.BlockSpec(shape, lambda i, k: (k, 0, 0))

    has_prologue = pre_ln is not None
    inputs, in_specs = [xp], [row_spec]
    if has_prologue:
        g, b = pre_ln
        inputs += [g.reshape(1, C), b.reshape(1, C)]
        in_specs += [const((1, C)), const((1, C))]
    inputs += [lp["n1_g"], lp["n1_b"], lp["fc1_w"], lp["fc1_b"],
               lp["fc2_w"], lp["fc2_b"], lp["norm_g"], lp["norm_b"]]
    in_specs += [per_blk((None, 1, C)), per_blk((None, 1, C)),
                 per_blk((None, C, hidden)), per_blk((None, 1, hidden)),
                 per_blk((None, hidden, C)), per_blk((None, 1, C)),
                 const((1, C)), const((1, C))]

    # Explicit VMEM budget: one token tile (+buffers) + one block's bf16
    # weights double-buffered + headroom.  Capped at 64 MiB for v7x.
    w_bytes = 2 * 2 * 2 * C * hidden                 # fc1 + fc2, bf16, x2 buffers
    a_bytes = TM * (8 * C + 6 * hidden) * 4          # token tiles + hidden temps
    vmem_limit = int(min(max(2 * (w_bytes + a_bytes) + (4 << 20), 32 << 20), 64 << 20))

    cparams = pltpu.CompilerParams(
        dimension_semantics=("parallel", "arbitrary"),
        vmem_limit_bytes=vmem_limit)
    kern = functools.partial(_level_kernel, eps=eps, has_prologue=has_prologue)
    scratch = [pltpu.VMEM((TM, C), jnp.float32)]
    grid = (Mp // TM, depth)

    if has_prologue:
        feat, out = pl.pallas_call(
            kern,
            out_shape=(jax.ShapeDtypeStruct((Mp, C), jnp.float32),
                       jax.ShapeDtypeStruct((Mp, C), jnp.float32)),
            grid=grid,
            in_specs=in_specs,
            out_specs=(pl.BlockSpec((TM, C), lambda i, k: (i, 0)),
                       pl.BlockSpec((TM, C), lambda i, k: (i, 0))),
            scratch_shapes=scratch,
            compiler_params=cparams,
        )(*inputs)
        if Mp != M:
            feat, out = feat[:M], out[:M]
        return feat, out

    out = pl.pallas_call(
        kern,
        out_shape=jax.ShapeDtypeStruct((Mp, C), jnp.float32),
        grid=grid,
        in_specs=in_specs,
        out_specs=pl.BlockSpec((TM, C), lambda i, k: (i, 0)),
        scratch_shapes=scratch,
        compiler_params=cparams,
    )(*inputs)
    return out[:M] if Mp != M else out


# ----------------------------------------------------------------------------
# Conv 3x3 stride-2 pad-1 (with folded eval-mode BN) -- lax.conv path
# ----------------------------------------------------------------------------
def conv3x3_s2(x_nhwc, w_oihw, bias=None, bn=None, act="none"):
    """x: NHWC; w: (Cout, Cin, 3, 3) PyTorch layout; optional BN fold + act."""
    Cout = w_oihw.shape[0]
    w = jnp.transpose(w_oihw, (2, 3, 1, 0))  # HWIO
    b = bias if bias is not None else jnp.zeros((Cout,), jnp.float32)
    if bn is not None:
        g, be, mean, var, eps = bn
        s = g * jax.lax.rsqrt(var + eps)
        w = w * s[None, None, None, :]
        b = (b - mean) * s + be
    y = jax.lax.conv_general_dilated(
        x_nhwc, w, window_strides=(2, 2), padding=((1, 1), (1, 1)),
        dimension_numbers=("NHWC", "HWIO", "NHWC"))
    y = y + b[None, None, None, :]
    if act == "gelu":
        y = _gelu(y)
    return y


# ----------------------------------------------------------------------------
# parameter construction (deterministic, synthetic, PyTorch-style layout)
# ----------------------------------------------------------------------------
def init_params(key, channels=16, depths=(1, 1, 1, 1), mlp_ratio=4.0):
    keys = iter(jax.random.split(key, 256))

    def nrm(shape, std=0.02):
        return std * jax.random.normal(next(keys), shape, jnp.float32)

    c2 = channels // 2
    params = {
        "stem": dict(
            conv1_w=nrm((c2, 3, 3, 3), 0.1), conv1_b=jnp.zeros((c2,), jnp.float32),
            bn1_g=jnp.ones((c2,), jnp.float32), bn1_b=jnp.zeros((c2,), jnp.float32),
            bn1_m=jnp.zeros((c2,), jnp.float32), bn1_v=jnp.ones((c2,), jnp.float32),
            conv2_w=nrm((channels, c2, 3, 3), 0.1), conv2_b=jnp.zeros((channels,), jnp.float32),
            bn2_g=jnp.ones((channels,), jnp.float32), bn2_b=jnp.zeros((channels,), jnp.float32),
            bn2_m=jnp.zeros((channels,), jnp.float32), bn2_v=jnp.ones((channels,), jnp.float32),
        )
    }
    levels = []
    for i, d in enumerate(depths):
        Ci = channels * 2 ** i
        hidden = int(Ci * mlp_ratio)
        blocks = []
        for _ in range(d):
            blocks.append(dict(
                n1_g=jnp.ones((Ci,), jnp.float32), n1_b=jnp.zeros((Ci,), jnp.float32),
                n2_g=jnp.ones((Ci,), jnp.float32), n2_b=jnp.zeros((Ci,), jnp.float32),
                fc1_w=nrm((Ci, hidden)), fc1_b=jnp.zeros((hidden,), jnp.float32),
                fc2_w=nrm((hidden, Ci)), fc2_b=jnp.zeros((Ci,), jnp.float32),
            ))
        lvl = dict(blocks=blocks,
                   norm_g=jnp.ones((Ci,), jnp.float32), norm_b=jnp.zeros((Ci,), jnp.float32))
        if i < len(depths) - 1:
            lvl["down"] = dict(
                conv_w=nrm((2 * Ci, Ci, 3, 3), 0.1),
                ln_g=jnp.ones((2 * Ci,), jnp.float32), ln_b=jnp.zeros((2 * Ci,), jnp.float32))
        levels.append(lvl)
    params["levels"] = levels
    return params


def prepare_params(params):
    """One-time preprocessing (outside the jitted forward):
       * stack per-block weights along a depth axis (streamed per grid step),
       * fold the LN2 affine into fc1:  w1' = diag(g2) @ w1,  b1' = b2 @ w1 + b1,
       * cast matmul weights to bf16 so no per-forward converts are needed."""
    out = {"stem": params["stem"], "levels": []}
    for lvl in params["levels"]:
        blocks = lvl["blocks"]
        C, H = blocks[0]["fc1_w"].shape
        D = len(blocks)
        n1_g = jnp.stack([b["n1_g"] for b in blocks]).reshape(D, 1, C)
        n1_b = jnp.stack([b["n1_b"] for b in blocks]).reshape(D, 1, C)
        fc1_w = jnp.stack([b["n2_g"][:, None] * b["fc1_w"] for b in blocks]).astype(jnp.bfloat16)
        fc1_b = jnp.stack([b["n2_b"] @ b["fc1_w"] + b["fc1_b"] for b in blocks]).reshape(D, 1, H)
        fc2_w = jnp.stack([b["fc2_w"] for b in blocks]).astype(jnp.bfloat16)
        fc2_b = jnp.stack([b["fc2_b"] for b in blocks]).reshape(D, 1, C)
        nl = dict(n1_g=n1_g, n1_b=n1_b, fc1_w=fc1_w, fc1_b=fc1_b,
                  fc2_w=fc2_w, fc2_b=fc2_b,
                  norm_g=lvl["norm_g"].reshape(1, C), norm_b=lvl["norm_b"].reshape(1, C))
        if "down" in lvl:
            nl["down"] = dict(conv_w=lvl["down"]["conv_w"],
                              ln_g=lvl["down"]["ln_g"], ln_b=lvl["down"]["ln_b"])
        out["levels"].append(nl)
    return out


# ----------------------------------------------------------------------------
# MTGrootV_3D forward (eval semantics: Dropout / DropPath are identity)
# ----------------------------------------------------------------------------
def mtgrootv_3d_forward(params, x_nchw, channels, depths):
    x = jnp.transpose(x_nchw, (0, 2, 3, 1)).astype(jnp.float32)  # -> NHWC

    # --- StemLayer: conv1 -> BN -> GELU -> conv2 -> BN -> channels_last ---
    sp = params["stem"]
    x = conv3x3_s2(x, sp["conv1_w"], sp["conv1_b"], act="gelu",
                   bn=(sp["bn1_g"], sp["bn1_b"], sp["bn1_m"], sp["bn1_v"], 1e-5))
    x = conv3x3_s2(x, sp["conv2_w"], sp["conv2_b"], act="none",
                   bn=(sp["bn2_g"], sp["bn2_b"], sp["bn2_m"], sp["bn2_v"], 1e-5))

    fs = [jnp.transpose(x, (0, 3, 1, 2))]

    num_levels = len(depths)
    pre_ln = None  # previous level's downsample LN, fused as next kernel's prologue
    for i in range(num_levels):
        Ci = channels * 2 ** i
        lp = params["levels"][i]
        B, Hc, Wc, _ = x.shape
        toks = x.reshape(B * Hc * Wc, Ci)

        if pre_ln is None:
            t = level_forward(toks, lp, pre_ln=None, eps=1e-6)
        else:
            # feat = LN(previous downsample conv output) == pyramid feature of
            # the previous level; computed in this kernel's prologue.
            feat, t = level_forward(toks, lp, pre_ln=pre_ln, eps=1e-6)
            fs.append(jnp.transpose(feat.reshape(B, Hc, Wc, Ci), (0, 3, 1, 2)))
        t = t.reshape(B, Hc, Wc, Ci)

        if i < num_levels - 1:
            # DownsampleLayer conv (3x3, s2, no bias); its LN is deferred into
            # the next level's kernel prologue.
            dp = lp["down"]
            x = conv3x3_s2(t, dp["conv_w"], bias=None, act="none")
            pre_ln = (dp["ln_g"], dp["ln_b"])
        else:
            fs.append(jnp.transpose(t, (0, 3, 1, 2)))

    return fs


# ----------------------------------------------------------------------------
if __name__ == "__main__":
    channels = 16
    depths = (2, 2, 1, 1)   # small, but exercises the depth-streaming grid axis

    key = jax.random.PRNGKey(0)
    kp, kx = jax.random.split(key)
    raw_params = init_params(kp, channels=channels, depths=depths)
    params = prepare_params(raw_params)   # one-time: stack / fold / bf16-cast
    x = jax.random.normal(kx, (2, 3, 32, 32), jnp.float32)  # NCHW, like PyTorch

    fwd = jax.jit(functools.partial(mtgrootv_3d_forward,
                                    channels=channels, depths=depths))
    fs = jax.block_until_ready(fwd(params, x))

    # sanity: feature pyramid shapes (NCHW)
    expected = [(2, 16, 8, 8), (2, 32, 4, 4), (2, 64, 2, 2), (2, 128, 1, 1), (2, 128, 1, 1)]
    assert [tuple(f.shape) for f in fs] == expected, [tuple(f.shape) for f in fs]
    assert all(bool(jnp.isfinite(f).all()) for f in fs)

    print("KERNEL_OK")
</pallas_src>

<mosaic_0001>
module attributes {stable_mosaic.version = 11 : i64} {
  func.func @_level_kernel(%arg0: i32, %arg1: i32, %arg2: memref<128x16xf32, #tpu.memory_space<vmem>>, %arg3: memref<1x1x16xf32, #tpu.memory_space<vmem>>, %arg4: memref<1x1x16xf32, #tpu.memory_space<vmem>>, %arg5: memref<1x16x64xbf16, #tpu.memory_space<vmem>>, %arg6: memref<1x1x64xf32, #tpu.memory_space<vmem>>, %arg7: memref<1x64x16xbf16, #tpu.memory_space<vmem>>, %arg8: memref<1x1x16xf32, #tpu.memory_space<vmem>>, %arg9: memref<1x16xf32, #tpu.memory_space<vmem>>, %arg10: memref<1x16xf32, #tpu.memory_space<vmem>>, %arg11: memref<128x16xf32, #tpu.memory_space<vmem>>, %arg12: memref<128x16xf32, #tpu.memory_space<vmem>>) attributes {dimension_semantics = [#tpu.dimension_semantics<parallel>, #tpu.dimension_semantics<arbitrary>], iteration_bounds = array<i64: 1, 2>, scalar_prefetch = 0 : i64, scratch_operands = 1 : i64, tpu.core_type = #tpu.core_type<tc>, window_params = [{transform_indices = @transform_0, window_bounds = array<i64: 128, 16>}, {transform_indices = @transform_1, window_bounds = array<i64: 1, 1, 16>}, {transform_indices = @transform_2, window_bounds = array<i64: 1, 1, 16>}, {transform_indices = @transform_3, window_bounds = array<i64: 1, 16, 64>}, {transform_indices = @transform_4, window_bounds = array<i64: 1, 1, 64>}, {transform_indices = @transform_5, window_bounds = array<i64: 1, 64, 16>}, {transform_indices = @transform_6, window_bounds = array<i64: 1, 1, 16>}, {pipeline_mode = #tpu.pipeline_mode<synchronous>, transform_indices = @transform_7, window_bounds = array<i64: 1, 16>}, {pipeline_mode = #tpu.pipeline_mode<synchronous>, transform_indices = @transform_8, window_bounds = array<i64: 1, 16>}, {transform_indices = @transform_9, window_bounds = array<i64: 128, 16>}]} {
    %c0_i32 = arith.constant 0 : i32
    %0 = arith.cmpi eq, %arg1, %c0_i32 : i32
    %1 = arith.extui %0 : i1 to i32
    %c0_i32_0 = arith.constant 0 : i32
    %2 = arith.cmpi ne, %1, %c0_i32_0 : i32
    scf.if %2 {
      %c0_38 = arith.constant 0 : index
      %c0_39 = arith.constant 0 : index
      %76 = vector.load %arg2[%c0_38, %c0_39] : memref<128x16xf32, #tpu.memory_space<vmem>>, vector<128x16xf32>
      %c0_40 = arith.constant 0 : index
      %c0_41 = arith.constant 0 : index
      %77 = vector.load %arg12[%c0_40, %c0_41] : memref<128x16xf32, #tpu.memory_space<vmem>>, vector<128x16xf32>
      tpu.vector_store %arg12[%c0_40, %c0_41], %76 {strides = array<i32>} : memref<128x16xf32, #tpu.memory_space<vmem>>, vector<128x16xf32>,
    } else {
    }
    %c0 = arith.constant 0 : index
    %c0_1 = arith.constant 0 : index
    %3 = vector.load %arg12[%c0, %c0_1] : memref<128x16xf32, #tpu.memory_space<vmem>>, vector<128x16xf32>
    %c0_2 = arith.constant 0 : index
    %c0_3 = arith.constant 0 : index
    %c0_4 = arith.constant 0 : index
    %4 = vector.load %arg3[%c0_2, %c0_3, %c0_4] : memref<1x1x16xf32, #tpu.memory_space<vmem>>, vector<1x1x16xf32>
    %5 = vector.shape_cast %4 : vector<1x1x16xf32> to vector<1x16xf32>
    %c0_5 = arith.constant 0 : index
    %c0_6 = arith.constant 0 : index
    %c0_7 = arith.constant 0 : index
    %6 = vector.load %arg4[%c0_5, %c0_6, %c0_7] : memref<1x1x16xf32, #tpu.memory_space<vmem>>, vector<1x1x16xf32>
    %7 = vector.shape_cast %6 : vector<1x1x16xf32> to vector<1x16xf32>
    %cst = arith.constant dense<0.000000e+00> : vector<128xf32>
    %8 = vector.multi_reduction <add>, %3, %cst [1] : vector<128x16xf32> to vector<128xf32>
    %9 = vector.shape_cast %8 : vector<128xf32> to vector<128x1xf32>
    %cst_8 = arith.constant 1.600000e+01 : f32
    %10 = vector.broadcast %cst_8 : f32 to vector<128x1xf32>
    %11 = arith.divf %9, %10 : vector<128x1xf32>
    %12 = vector.broadcast %11 : vector<128x1xf32> to vector<128x16xf32>
    %13 = arith.subf %3, %12 : vector<128x16xf32>
    %14 = arith.mulf %13, %13 : vector<128x16xf32>
    %cst_9 = arith.constant dense<0.000000e+00> : vector<128xf32>
    %15 = vector.multi_reduction <add>, %14, %cst_9 [1] : vector<128x16xf32> to vector<128xf32>
    %16 = vector.shape_cast %15 : vector<128xf32> to vector<128x1xf32>
    %cst_10 = arith.constant 1.600000e+01 : f32
    %17 = vector.broadcast %cst_10 : f32 to vector<128x1xf32>
    %18 = arith.divf %16, %17 : vector<128x1xf32>
    %cst_11 = arith.constant 9.99999997E-7 : f32
    %19 = vector.broadcast %cst_11 : f32 to vector<128x1xf32>
    %20 = arith.addf %18, %19 : vector<128x1xf32>
    %21 = math.rsqrt %20 : vector<128x1xf32>
    %22 = vector.broadcast %21 : vector<128x1xf32> to vector<128x16xf32>
    %23 = arith.mulf %13, %22 : vector<128x16xf32>
    %24 = vector.broadcast %5 : vector<1x16xf32> to vector<128x16xf32>
    %25 = arith.mulf %23, %24 : vector<128x16xf32>
    %26 = vector.broadcast %7 : vector<1x16xf32> to vector<128x16xf32>
    %27 = arith.addf %25, %26 : vector<128x16xf32>
    %28 = arith.addf %3, %27 : vector<128x16xf32>
    %cst_12 = arith.constant dense<0.000000e+00> : vector<128xf32>
    %29 = vector.multi_reduction <add>, %28, %cst_12 [1] : vector<128x16xf32> to vector<128xf32>
    %30 = vector.shape_cast %29 : vector<128xf32> to vector<128x1xf32>
    %cst_13 = arith.constant 1.600000e+01 : f32
    %31 = vector.broadcast %cst_13 : f32 to vector<128x1xf32>
    %32 = arith.divf %30, %31 : vector<128x1xf32>
    %33 = vector.broadcast %32 : vector<128x1xf32> to vector<128x16xf32>
    %34 = arith.subf %28, %33 : vector<128x16xf32>
    %35 = arith.mulf %34, %34 : vector<128x16xf32>
    %cst_14 = arith.constant dense<0.000000e+00> : vector<128xf32>
    %36 = vector.multi_reduction <add>, %35, %cst_14 [1] : vector<128x16xf32> to vector<128xf32>
    %37 = vector.shape_cast %36 : vector<128xf32> to vector<128x1xf32>
    %cst_15 = arith.constant 1.600000e+01 : f32
    %38 = vector.broadcast %cst_15 : f32 to vector<128x1xf32>
    %39 = arith.divf %37, %38 : vector<128x1xf32>
    %cst_16 = arith.constant 9.99999997E-7 : f32
    %40 = vector.broadcast %cst_16 : f32 to vector<128x1xf32>
    %41 = arith.addf %39, %40 : vector<128x1xf32>
    %42 = math.rsqrt %41 : vector<128x1xf32>
    %43 = vector.broadcast %42 : vector<128x1xf32> to vector<128x16xf32>
    %44 = arith.mulf %34, %43 : vector<128x16xf32>
    %45 = arith.truncf %44 : vector<128x16xf32> to vector<128x16xbf16>
    %c0_17 = arith.constant 0 : index
    %c0_18 = arith.constant 0 : index
    %c0_19 = arith.constant 0 : index
    %46 = vector.load %arg5[%c0_17, %c0_18, %c0_19] : memref<1x16x64xbf16, #tpu.memory_space<vmem>>, vector<1x16x64xbf16>
    %47 = vector.shape_cast %46 : vector<1x16x64xbf16> to vector<16x64xbf16>
    %cst_20 = arith.constant dense<0.000000e+00> : vector<128x64xf32>
    %48 = tpu.matmul %45, %47, %cst_20 {dimension_numbers = #tpu.dot_dimension_numbers<[1], [0], [0], [1], [0, 0, 1, 1], [], []>} : vector<128x16xbf16>, vector<16x64xbf16>, vector<128x64xf32> -> vector<128x64xf32>
    %c0_21 = arith.constant 0 : index
    %c0_22 = arith.constant 0 : index
    %c0_23 = arith.constant 0 : index
    %49 = vector.load %arg6[%c0_21, %c0_22, %c0_23] : memref<1x1x64xf32, #tpu.memory_space<vmem>>, vector<1x1x64xf32>
    %50 = vector.shape_cast %49 : vector<1x1x64xf32> to vector<1x64xf32>
    %51 = vector.broadcast %50 : vector<1x64xf32> to vector<128x64xf32>
    %52 = arith.addf %48, %51 : vector<128x64xf32>
    %cst_24 = arith.constant 5.000000e-01 : f32
    %53 = vector.broadcast %cst_24 : f32 to vector<128x64xf32>
    %54 = arith.mulf %53, %52 : vector<128x64xf32>
    %cst_25 = arith.constant 2.000000e+00 : f32
    %55 = math.sqrt %cst_25 : f32
    %cst_26 = arith.constant 1.000000e+00 : f32
    %56 = arith.divf %cst_26, %55 : f32
    %57 = vector.broadcast %56 : f32 to vector<128x64xf32>
    %58 = arith.mulf %52, %57 : vector<128x64xf32>
    %59 = math.erf %58 : vector<128x64xf32>
    %cst_27 = arith.constant 1.000000e+00 : f32
    %60 = vector.broadcast %cst_27 : f32 to vector<128x64xf32>
    %61 = arith.addf %60, %59 : vector<128x64xf32>
    %62 = arith.mulf %54, %61 : vector<128x64xf32>
    %63 = arith.truncf %62 : vector<128x64xf32> to vector<128x64xbf16>
    %c0_28 = arith.constant 0 : index
    %c0_29 = arith.constant 0 : index
    %c0_30 = arith.constant 0 : index
    %64 = vector.load %arg7[%c0_28, %c0_29, %c0_30] : memref<1x64x16xbf16, #tpu.memory_space<vmem>>, vector<1x64x16xbf16>
    %65 = vector.shape_cast %64 : vector<1x64x16xbf16> to vector<64x16xbf16>
    %cst_31 = arith.constant dense<0.000000e+00> : vector<128x16xf32>
    %66 = tpu.matmul %63, %65, %cst_31 {dimension_numbers = #tpu.dot_dimension_numbers<[1], [0], [0], [1], [0, 0, 1, 1], [], []>} : vector<128x64xbf16>, vector<64x16xbf16>, vector<128x16xf32> -> vector<128x16xf32>
    %c0_32 = arith.constant 0 : index
    %c0_33 = arith.constant 0 : index
    %c0_34 = arith.constant 0 : index
    %67 = vector.load %arg8[%c0_32, %c0_33, %c0_34] : memref<1x1x16xf32, #tpu.memory_space<vmem>>, vector<1x1x16xf32>
    %68 = vector.shape_cast %67 : vector<1x1x16xf32> to vector<1x16xf32>
    %69 = vector.broadcast %68 : vector<1x16xf32> to vector<128x16xf32>
    %70 = arith.addf %66, %69 : vector<128x16xf32>
    %71 = arith.addf %28, %70 : vector<128x16xf32>
    %c0_35 = arith.constant 0 : index
    %c0_36 = arith.constant 0 : index
    %72 = vector.load %arg12[%c0_35, %c0_36] : memref<128x16xf32, #tpu.memory_space<vmem>>, vector<128x16xf32>
    tpu.vector_store %arg12[%c0_35, %c0_36], %71 {strides = array<i32>} : memref<128x16xf32, #tpu.memory_space<vmem>>, vector<128x16xf32>,
    %c1_i32 = arith.constant 1 : i32
    %73 = arith.cmpi eq, %arg1, %c1_i32 : i32
    %74 = arith.extui %73 : i1 to i32
    %c0_i32_37 = arith.constant 0 : i32
    %75 = arith.cmpi ne, %74, %c0_i32_37 : i32
    scf.if %75 {
      %c0_38 = arith.constant 0 : index
      %c0_39 = arith.constant 0 : index
      %76 = vector.load %arg9[%c0_38, %c0_39] : memref<1x16xf32, #tpu.memory_space<vmem>>, vector<1x16xf32>
      %c0_40 = arith.constant 0 : index
      %c0_41 = arith.constant 0 : index
      %77 = vector.load %arg10[%c0_40, %c0_41] : memref<1x16xf32, #tpu.memory_space<vmem>>, vector<1x16xf32>
      %cst_42 = arith.constant dense<0.000000e+00> : vector<128xf32>
      %78 = vector.multi_reduction <add>, %71, %cst_42 [1] : vector<128x16xf32> to vector<128xf32>
      %79 = vector.shape_cast %78 : vector<128xf32> to vector<128x1xf32>
      %cst_43 = arith.constant 1.600000e+01 : f32
      %80 = vector.broadcast %cst_43 : f32 to vector<128x1xf32>
      %81 = arith.divf %79, %80 : vector<128x1xf32>
      %82 = vector.broadcast %81 : vector<128x1xf32> to vector<128x16xf32>
      %83 = arith.subf %71, %82 : vector<128x16xf32>
      %84 = arith.mulf %83, %83 : vector<128x16xf32>
      %cst_44 = arith.constant dense<0.000000e+00> : vector<128xf32>
      %85 = vector.multi_reduction <add>, %84, %cst_44 [1] : vector<128x16xf32> to vector<128xf32>
      %86 = vector.shape_cast %85 : vector<128xf32> to vector<128x1xf32>
      %cst_45 = arith.constant 1.600000e+01 : f32
      %87 = vector.broadcast %cst_45 : f32 to vector<128x1xf32>
      %88 = arith.divf %86, %87 : vector<128x1xf32>
      %cst_46 = arith.constant 9.99999997E-7 : f32
      %89 = vector.broadcast %cst_46 : f32 to vector<128x1xf32>
      %90 = arith.addf %88, %89 : vector<128x1xf32>
      %91 = math.rsqrt %90 : vector<128x1xf32>
      %92 = vector.broadcast %91 : vector<128x1xf32> to vector<128x16xf32>
      %93 = arith.mulf %83, %92 : vector<128x16xf32>
      %94 = vector.broadcast %76 : vector<1x16xf32> to vector<128x16xf32>
      %95 = arith.mulf %93, %94 : vector<128x16xf32>
      %96 = vector.broadcast %77 : vector<1x16xf32> to vector<128x16xf32>
      %97 = arith.addf %95, %96 : vector<128x16xf32>
      %c0_47 = arith.constant 0 : index
      %c0_48 = arith.constant 0 : index
      %98 = vector.load %arg11[%c0_47, %c0_48] : memref<128x16xf32, #tpu.memory_space<vmem>>, vector<128x16xf32>
      tpu.vector_store %arg11[%c0_47, %c0_48], %97 {strides = array<i32>} : memref<128x16xf32, #tpu.memory_space<vmem>>, vector<128x16xf32>,
    } else {
    }
    return
  }
  func.func @transform_0(%arg0: i32, %arg1: i32) -> (i32, i32) {
    %c0_i32 = arith.constant 0 : i32
    %c0_i32_0 = arith.constant 0 : i32
    return %arg0, %c0_i32 : i32, i32
  }
  func.func @transform_1(%arg0: i32, %arg1: i32) -> (i32, i32, i32) {
    %c0_i32 = arith.constant 0 : i32
    %c0_i32_0 = arith.constant 0 : i32
    %c0_i32_1 = arith.constant 0 : i32
    return %arg1, %c0_i32, %c0_i32_0 : i32, i32, i32
  }
  func.func @transform_2(%arg0: i32, %arg1: i32) -> (i32, i32, i32) {
    %c0_i32 = arith.constant 0 : i32
    %c0_i32_0 = arith.constant 0 : i32
    %c0_i32_1 = arith.constant 0 : i32
    return %arg1, %c0_i32, %c0_i32_0 : i32, i32, i32
  }
  func.func @transform_3(%arg0: i32, %arg1: i32) -> (i32, i32, i32) {
    %c0_i32 = arith.constant 0 : i32
    %c0_i32_0 = arith.constant 0 : i32
    %c0_i32_1 = arith.constant 0 : i32
    return %arg1, %c0_i32, %c0_i32_0 : i32, i32, i32
  }
  func.func @transform_4(%arg0: i32, %arg1: i32) -> (i32, i32, i32) {
    %c0_i32 = arith.constant 0 : i32
    %c0_i32_0 = arith.constant 0 : i32
    %c0_i32_1 = arith.constant 0 : i32
    return %arg1, %c0_i32, %c0_i32_0 : i32, i32, i32
  }
  func.func @transform_5(%arg0: i32, %arg1: i32) -> (i32, i32, i32) {
    %c0_i32 = arith.constant 0 : i32
    %c0_i32_0 = arith.constant 0 : i32
    %c0_i32_1 = arith.constant 0 : i32
    return %arg1, %c0_i32, %c0_i32_0 : i32, i32, i32
  }
  func.func @transform_6(%arg0: i32, %arg1: i32) -> (i32, i32, i32) {
    %c0_i32 = arith.constant 0 : i32
    %c0_i32_0 = arith.constant 0 : i32
    %c0_i32_1 = arith.constant 0 : i32
    return %arg1, %c0_i32, %c0_i32_0 : i32, i32, i32
  }
  func.func @transform_7(%arg0: i32, %arg1: i32) -> (i32, i32) {
    %c0_i32 = arith.constant 0 : i32
    %c0_i32_0 = arith.constant 0 : i32
    %c0_i32_1 = arith.constant 0 : i32
    return %c0_i32, %c0_i32_0 : i32, i32
  }
  func.func @transform_8(%arg0: i32, %arg1: i32) -> (i32, i32) {
    %c0_i32 = arith.constant 0 : i32
    %c0_i32_0 = arith.constant 0 : i32
    %c0_i32_1 = arith.constant 0 : i32
    return %c0_i32, %c0_i32_0 : i32, i32
  }
  func.func @transform_9(%arg0: i32, %arg1: i32) -> (i32, i32) {
    %c0_i32 = arith.constant 0 : i32
    %c0_i32_0 = arith.constant 0 : i32
    return %arg0, %c0_i32 : i32, i32
  }
}

module attributes {stable_mosaic.version = 11 : i64} {
  func.func @_level_kernel(%arg0: i32, %arg1: i32, %arg2: memref<32x32xf32, #tpu.memory_space<vmem>>, %arg3: memref<1x32xf32, #tpu.memory_space<vmem>>, %arg4: memref<1x32xf32, #tpu.memory_space<vmem>>, %arg5: memref<1x1x32xf32, #tpu.memory_space<vmem>>, %arg6: memref<1x1x32xf32, #tpu.memory_space<vmem>>, %arg7: memref<1x32x128xbf16, #tpu.memory_space<vmem>>, %arg8: memref<1x1x128xf32, #tpu.memory_space<vmem>>, %arg9: memref<1x128x32xbf16, #tpu.memory_space<vmem>>, %arg10: memref<1x1x32xf32, #tpu.memory_space<vmem>>, %arg11: memref<1x32xf32, #tpu.memory_space<vmem>>, %arg12: memref<1x32xf32, #tpu.memory_space<vmem>>, %arg13: memref<32x32xf32, #tpu.memory_space<vmem>>, %arg14: memref<32x32xf32, #tpu.memory_space<vmem>>, %arg15: memref<32x32xf32, #tpu.memory_space<vmem>>) attributes {dimension_semantics = [#tpu.dimension_semantics<parallel>, #tpu.dimension_semantics<arbitrary>], iteration_bounds = array<i64: 1, 2>, scalar_prefetch = 0 : i64, scratch_operands = 1 : i64, tpu.core_type = #tpu.core_type<tc>, window_params = [{transform_indices = @transform_0, window_bounds = array<i64: 32, 32>}, {pipeline_mode = #tpu.pipeline_mode<synchronous>, transform_indices = @transform_1, window_bounds = array<i64: 1, 32>}, {pipeline_mode = #tpu.pipeline_mode<synchronous>, transform_indices = @transform_2, window_bounds = array<i64: 1, 32>}, {transform_indices = @transform_3, window_bounds = array<i64: 1, 1, 32>}, {transform_indices = @transform_4, window_bounds = array<i64: 1, 1, 32>}, {transform_indices = @transform_5, window_bounds = array<i64: 1, 32, 128>}, {transform_indices = @transform_6, window_bounds = array<i64: 1, 1, 128>}, {transform_indices = @transform_7, window_bounds = array<i64: 1, 128, 32>}, {transform_indices = @transform_8, window_bounds = array<i64: 1, 1, 32>}, {pipeline_mode = #tpu.pipeline_mode<synchronous>, transform_indices = @transform_9, window_bounds = array<i64: 1, 32>}, {pipeline_mode = #tpu.pipeline_mode<synchronous>, transform_indices = @transform_10, window_bounds = array<i64: 1, 32>}, {transform_indices = @transform_11, window_bounds = array<i64: 32, 32>}, {transform_indices = @transform_12, window_bounds = array<i64: 32, 32>}]} {
    %c0_i32 = arith.constant 0 : i32
    %0 = arith.cmpi eq, %arg1, %c0_i32 : i32
    %1 = arith.extui %0 : i1 to i32
    %c0_i32_0 = arith.constant 0 : i32
    %2 = arith.cmpi ne, %1, %c0_i32_0 : i32
    scf.if %2 {
      %c0_38 = arith.constant 0 : index
      %c0_39 = arith.constant 0 : index
      %76 = vector.load %arg2[%c0_38, %c0_39] : memref<32x32xf32, #tpu.memory_space<vmem>>, vector<32x32xf32>
      %c0_40 = arith.constant 0 : index
      %c0_41 = arith.constant 0 : index
      %77 = vector.load %arg3[%c0_40, %c0_41] : memref<1x32xf32, #tpu.memory_space<vmem>>, vector<1x32xf32>
      %c0_42 = arith.constant 0 : index
      %c0_43 = arith.constant 0 : index
      %78 = vector.load %arg4[%c0_42, %c0_43] : memref<1x32xf32, #tpu.memory_space<vmem>>, vector<1x32xf32>
      %cst_44 = arith.constant dense<0.000000e+00> : vector<32xf32>
      %79 = vector.multi_reduction <add>, %76, %cst_44 [1] : vector<32x32xf32> to vector<32xf32>
      %80 = vector.shape_cast %79 : vector<32xf32> to vector<32x1xf32>
      %cst_45 = arith.constant 3.200000e+01 : f32
      %81 = vector.broadcast %cst_45 : f32 to vector<32x1xf32>
      %82 = arith.divf %80, %81 : vector<32x1xf32>
      %83 = vector.broadcast %82 : vector<32x1xf32> to vector<32x32xf32>
      %84 = arith.subf %76, %83 : vector<32x32xf32>
      %85 = arith.mulf %84, %84 : vector<32x32xf32>
      %cst_46 = arith.constant dense<0.000000e+00> : vector<32xf32>
      %86 = vector.multi_reduction <add>, %85, %cst_46 [1] : vector<32x32xf32> to vector<32xf32>
      %87 = vector.shape_cast %86 : vector<32xf32> to vector<32x1xf32>
      %cst_47 = arith.constant 3.200000e+01 : f32
      %88 = vector.broadcast %cst_47 : f32 to vector<32x1xf32>
      %89 = arith.divf %87, %88 : vector<32x1xf32>
      %cst_48 = arith.constant 9.99999997E-7 : f32
      %90 = vector.broadcast %cst_48 : f32 to vector<32x1xf32>
      %91 = arith.addf %89, %90 : vector<32x1xf32>
      %92 = math.rsqrt %91 : vector<32x1xf32>
      %93 = vector.broadcast %92 : vector<32x1xf32> to vector<32x32xf32>
      %94 = arith.mulf %84, %93 : vector<32x32xf32>
      %95 = vector.broadcast %77 : vector<1x32xf32> to vector<32x32xf32>
      %96 = arith.mulf %94, %95 : vector<32x32xf32>
      %97 = vector.broadcast %78 : vector<1x32xf32> to vector<32x32xf32>
      %98 = arith.addf %96, %97 : vector<32x32xf32>
      %c0_49 = arith.constant 0 : index
      %c0_50 = arith.constant 0 : index
      %99 = vector.load %arg13[%c0_49, %c0_50] : memref<32x32xf32, #tpu.memory_space<vmem>>, vector<32x32xf32>
      tpu.vector_store %arg13[%c0_49, %c0_50], %98 {strides = array<i32>} : memref<32x32xf32, #tpu.memory_space<vmem>>, vector<32x32xf32>,
      %c0_51 = arith.constant 0 : index
      %c0_52 = arith.constant 0 : index
      %100 = vector.load %arg15[%c0_51, %c0_52] : memref<32x32xf32, #tpu.memory_space<vmem>>, vector<32x32xf32>
      tpu.vector_store %arg15[%c0_51, %c0_52], %98 {strides = array<i32>} : memref<32x32xf32, #tpu.memory_space<vmem>>, vector<32x32xf32>,
    } else {
    }
    %c0 = arith.constant 0 : index
    %c0_1 = arith.constant 0 : index
    %3 = vector.load %arg15[%c0, %c0_1] : memref<32x32xf32, #tpu.memory_space<vmem>>, vector<32x32xf32>
    %c0_2 = arith.constant 0 : index
    %c0_3 = arith.constant 0 : index
    %c0_4 = arith.constant 0 : index
    %4 = vector.load %arg5[%c0_2, %c0_3, %c0_4] : memref<1x1x32xf32, #tpu.memory_space<vmem>>, vector<1x1x32xf32>
    %5 = vector.shape_cast %4 : vector<1x1x32xf32> to vector<1x32xf32>
    %c0_5 = arith.constant 0 : index
    %c0_6 = arith.constant 0 : index
    %c0_7 = arith.constant 0 : index
    %6 = vector.load %arg6[%c0_5, %c0_6, %c0_7] : memref<1x1x32xf32, #tpu.memory_space<vmem>>, vector<1x1x32xf32>
    %7 = vector.shape_cast %6 : vector<1x1x32xf32> to vector<1x32xf32>
    %cst = arith.constant dense<0.000000e+00> : vector<32xf32>
    %8 = vector.multi_reduction <add>, %3, %cst [1] : vector<32x32xf32> to vector<32xf32>
    %9 = vector.shape_cast %8 : vector<32xf32> to vector<32x1xf32>
    %cst_8 = arith.constant 3.200000e+01 : f32
    %10 = vector.broadcast %cst_8 : f32 to vector<32x1xf32>
    %11 = arith.divf %9, %10 : vector<32x1xf32>
    %12 = vector.broadcast %11 : vector<32x1xf32> to vector<32x32xf32>
    %13 = arith.subf %3, %12 : vector<32x32xf32>
    %14 = arith.mulf %13, %13 : vector<32x32xf32>
    %cst_9 = arith.constant dense<0.000000e+00> : vector<32xf32>
    %15 = vector.multi_reduction <add>, %14, %cst_9 [1] : vector<32x32xf32> to vector<32xf32>
    %16 = vector.shape_cast %15 : vector<32xf32> to vector<32x1xf32>
    %cst_10 = arith.constant 3.200000e+01 : f32
    %17 = vector.broadcast %cst_10 : f32 to vector<32x1xf32>
    %18 = arith.divf %16, %17 : vector<32x1xf32>
    %cst_11 = arith.constant 9.99999997E-7 : f32
    %19 = vector.broadcast %cst_11 : f32 to vector<32x1xf32>
    %20 = arith.addf %18, %19 : vector<32x1xf32>
    %21 = math.rsqrt %20 : vector<32x1xf32>
    %22 = vector.broadcast %21 : vector<32x1xf32> to vector<32x32xf32>
    %23 = arith.mulf %13, %22 : vector<32x32xf32>
    %24 = vector.broadcast %5 : vector<1x32xf32> to vector<32x32xf32>
    %25 = arith.mulf %23, %24 : vector<32x32xf32>
    %26 = vector.broadcast %7 : vector<1x32xf32> to vector<32x32xf32>
    %27 = arith.addf %25, %26 : vector<32x32xf32>
    %28 = arith.addf %3, %27 : vector<32x32xf32>
    %cst_12 = arith.constant dense<0.000000e+00> : vector<32xf32>
    %29 = vector.multi_reduction <add>, %28, %cst_12 [1] : vector<32x32xf32> to vector<32xf32>
    %30 = vector.shape_cast %29 : vector<32xf32> to vector<32x1xf32>
    %cst_13 = arith.constant 3.200000e+01 : f32
    %31 = vector.broadcast %cst_13 : f32 to vector<32x1xf32>
    %32 = arith.divf %30, %31 : vector<32x1xf32>
    %33 = vector.broadcast %32 : vector<32x1xf32> to vector<32x32xf32>
    %34 = arith.subf %28, %33 : vector<32x32xf32>
    %35 = arith.mulf %34, %34 : vector<32x32xf32>
    %cst_14 = arith.constant dense<0.000000e+00> : vector<32xf32>
    %36 = vector.multi_reduction <add>, %35, %cst_14 [1] : vector<32x32xf32> to vector<32xf32>
    %37 = vector.shape_cast %36 : vector<32xf32> to vector<32x1xf32>
    %cst_15 = arith.constant 3.200000e+01 : f32
    %38 = vector.broadcast %cst_15 : f32 to vector<32x1xf32>
    %39 = arith.divf %37, %38 : vector<32x1xf32>
    %cst_16 = arith.constant 9.99999997E-7 : f32
    %40 = vector.broadcast %cst_16 : f32 to vector<32x1xf32>
    %41 = arith.addf %39, %40 : vector<32x1xf32>
    %42 = math.rsqrt %41 : vector<32x1xf32>
    %43 = vector.broadcast %42 : vector<32x1xf32> to vector<32x32xf32>
    %44 = arith.mulf %34, %43 : vector<32x32xf32>
    %45 = arith.truncf %44 : vector<32x32xf32> to vector<32x32xbf16>
    %c0_17 = arith.constant 0 : index
    %c0_18 = arith.constant 0 : index
    %c0_19 = arith.constant 0 : index
    %46 = vector.load %arg7[%c0_17, %c0_18, %c0_19] : memref<1x32x128xbf16, #tpu.memory_space<vmem>>, vector<1x32x128xbf16>
    %47 = vector.shape_cast %46 : vector<1x32x128xbf16> to vector<32x128xbf16>
    %cst_20 = arith.constant dense<0.000000e+00> : vector<32x128xf32>
    %48 = tpu.matmul %45, %47, %cst_20 {dimension_numbers = #tpu.dot_dimension_numbers<[1], [0], [0], [1], [0, 0, 1, 1], [], []>} : vector<32x32xbf16>, vector<32x128xbf16>, vector<32x128xf32> -> vector<32x128xf32>
    %c0_21 = arith.constant 0 : index
    %c0_22 = arith.constant 0 : index
    %c0_23 = arith.constant 0 : index
    %49 = vector.load %arg8[%c0_21, %c0_22, %c0_23] : memref<1x1x128xf32, #tpu.memory_space<vmem>>, vector<1x1x128xf32>
    %50 = vector.shape_cast %49 : vector<1x1x128xf32> to vector<1x128xf32>
    %51 = vector.broadcast %50 : vector<1x128xf32> to vector<32x128xf32>
    %52 = arith.addf %48, %51 : vector<32x128xf32>
    %cst_24 = arith.constant 5.000000e-01 : f32
    %53 = vector.broadcast %cst_24 : f32 to vector<32x128xf32>
    %54 = arith.mulf %53, %52 : vector<32x128xf32>
    %cst_25 = arith.constant 2.000000e+00 : f32
    %55 = math.sqrt %cst_25 : f32
    %cst_26 = arith.constant 1.000000e+00 : f32
    %56 = arith.divf %cst_26, %55 : f32
    %57 = vector.broadcast %56 : f32 to vector<32x128xf32>
    %58 = arith.mulf %52, %57 : vector<32x128xf32>
    %59 = math.erf %58 : vector<32x128xf32>
    %cst_27 = arith.constant 1.000000e+00 : f32
    %60 = vector.broadcast %cst_27 : f32 to vector<32x128xf32>
    %61 = arith.addf %60, %59 : vector<32x128xf32>
    %62 = arith.mulf %54, %61 : vector<32x128xf32>
    %63 = arith.truncf %62 : vector<32x128xf32> to vector<32x128xbf16>
    %c0_28 = arith.constant 0 : index
    %c0_29 = arith.constant 0 : index
    %c0_30 = arith.constant 0 : index
    %64 = vector.load %arg9[%c0_28, %c0_29, %c0_30] : memref<1x128x32xbf16, #tpu.memory_space<vmem>>, vector<1x128x32xbf16>
    %65 = vector.shape_cast %64 : vector<1x128x32xbf16> to vector<128x32xbf16>
    %cst_31 = arith.constant dense<0.000000e+00> : vector<32x32xf32>
    %66 = tpu.matmul %63, %65, %cst_31 {dimension_numbers = #tpu.dot_dimension_numbers<[1], [0], [0], [1], [0, 0, 1, 1], [], []>} : vector<32x128xbf16>, vector<128x32xbf16>, vector<32x32xf32> -> vector<32x32xf32>
    %c0_32 = arith.constant 0 : index
    %c0_33 = arith.constant 0 : index
    %c0_34 = arith.constant 0 : index
    %67 = vector.load %arg10[%c0_32, %c0_33, %c0_34] : memref<1x1x32xf32, #tpu.memory_space<vmem>>, vector<1x1x32xf32>
    %68 = vector.shape_cast %67 : vector<1x1x32xf32> to vector<1x32xf32>
    %69 = vector.broadcast %68 : vector<1x32xf32> to vector<32x32xf32>
    %70 = arith.addf %66, %69 : vector<32x32xf32>
    %71 = arith.addf %28, %70 : vector<32x32xf32>
    %c0_35 = arith.constant 0 : index
    %c0_36 = arith.constant 0 : index
    %72 = vector.load %arg15[%c0_35, %c0_36] : memref<32x32xf32, #tpu.memory_space<vmem>>, vector<32x32xf32>
    tpu.vector_store %arg15[%c0_35, %c0_36], %71 {strides = array<i32>} : memref<32x32xf32, #tpu.memory_space<vmem>>, vector<32x32xf32>,
    %c1_i32 = arith.constant 1 : i32
    %73 = arith.cmpi eq, %arg1, %c1_i32 : i32
    %74 = arith.extui %73 : i1 to i32
    %c0_i32_37 = arith.constant 0 : i32
    %75 = arith.cmpi ne, %74, %c0_i32_37 : i32
    scf.if %75 {
      %c0_38 = arith.constant 0 : index
      %c0_39 = arith.constant 0 : index
      %76 = vector.load %arg11[%c0_38, %c0_39] : memref<1x32xf32, #tpu.memory_space<vmem>>, vector<1x32xf32>
      %c0_40 = arith.constant 0 : index
      %c0_41 = arith.constant 0 : index
      %77 = vector.load %arg12[%c0_40, %c0_41] : memref<1x32xf32, #tpu.memory_space<vmem>>, vector<1x32xf32>
      %cst_42 = arith.constant dense<0.000000e+00> : vector<32xf32>
      %78 = vector.multi_reduction <add>, %71, %cst_42 [1] : vector<32x32xf32> to vector<32xf32>
      %79 = vector.shape_cast %78 : vector<32xf32> to vector<32x1xf32>
      %cst_43 = arith.constant 3.200000e+01 : f32
      %80 = vector.broadcast %cst_43 : f32 to vector<32x1xf32>
      %81 = arith.divf %79, %80 : vector<32x1xf32>
      %82 = vector.broadcast %81 : vector<32x1xf32> to vector<32x32xf32>
      %83 = arith.subf %71, %82 : vector<32x32xf32>
      %84 = arith.mulf %83, %83 : vector<32x32xf32>
      %cst_44 = arith.constant dense<0.000000e+00> : vector<32xf32>
      %85 = vector.multi_reduction <add>, %84, %cst_44 [1] : vector<32x32xf32> to vector<32xf32>
      %86 = vector.shape_cast %85 : vector<32xf32> to vector<32x1xf32>
      %cst_45 = arith.constant 3.200000e+01 : f32
      %87 = vector.broadcast %cst_45 : f32 to vector<32x1xf32>
      %88 = arith.divf %86, %87 : vector<32x1xf32>
      %cst_46 = arith.constant 9.99999997E-7 : f32
      %89 = vector.broadcast %cst_46 : f32 to vector<32x1xf32>
      %90 = arith.addf %88, %89 : vector<32x1xf32>
      %91 = math.rsqrt %90 : vector<32x1xf32>
      %92 = vector.broadcast %91 : vector<32x1xf32> to vector<32x32xf32>
      %93 = arith.mulf %83, %92 : vector<32x32xf32>
      %94 = vector.broadcast %76 : vector<1x32xf32> to vector<32x32xf32>
      %95 = arith.mulf %93, %94 : vector<32x32xf32>
      %96 = vector.broadcast %77 : vector<1x32xf32> to vector<32x32xf32>
      %97 = arith.addf %95, %96 : vector<32x32xf32>
      %c0_47 = arith.constant 0 : index
      %c0_48 = arith.constant 0 : index
      %98 = vector.load %arg14[%c0_47, %c0_48] : memref<32x32xf32, #tpu.memory_space<vmem>>, vector<32x32xf32>
      tpu.vector_store %arg14[%c0_47, %c0_48], %97 {strides = array<i32>} : memref<32x32xf32, #tpu.memory_space<vmem>>, vector<32x32xf32>,
    } else {
    }
    return
  }
  func.func @transform_0(%arg0: i32, %arg1: i32) -> (i32, i32) {
    %c0_i32 = arith.constant 0 : i32
    %c0_i32_0 = arith.constant 0 : i32
    return %arg0, %c0_i32 : i32, i32
  }
  func.func @transform_1(%arg0: i32, %arg1: i32) -> (i32, i32) {
    %c0_i32 = arith.constant 0 : i32
    %c0_i32_0 = arith.constant 0 : i32
    %c0_i32_1 = arith.constant 0 : i32
    return %c0_i32, %c0_i32_0 : i32, i32
  }
  func.func @transform_2(%arg0: i32, %arg1: i32) -> (i32, i32) {
    %c0_i32 = arith.constant 0 : i32
    %c0_i32_0 = arith.constant 0 : i32
    %c0_i32_1 = arith.constant 0 : i32
    return %c0_i32, %c0_i32_0 : i32, i32
  }
  func.func @transform_3(%arg0: i32, %arg1: i32) -> (i32, i32, i32) {
    %c0_i32 = arith.constant 0 : i32
    %c0_i32_0 = arith.constant 0 : i32
    %c0_i32_1 = arith.constant 0 : i32
    return %arg1, %c0_i32, %c0_i32_0 : i32, i32, i32
  }
  func.func @transform_4(%arg0: i32, %arg1: i32) -> (i32, i32, i32) {
    %c0_i32 = arith.constant 0 : i32
    %c0_i32_0 = arith.constant 0 : i32
    %c0_i32_1 = arith.constant 0 : i32
    return %arg1, %c0_i32, %c0_i32_0 : i32, i32, i32
  }
  func.func @transform_5(%arg0: i32, %arg1: i32) -> (i32, i32, i32) {
    %c0_i32 = arith.constant 0 : i32
    %c0_i32_0 = arith.constant 0 : i32
    %c0_i32_1 = arith.constant 0 : i32
    return %arg1, %c0_i32, %c0_i32_0 : i32, i32, i32
  }
  func.func @transform_6(%arg0: i32, %arg1: i32) -> (i32, i32, i32) {
    %c0_i32 = arith.constant 0 : i32
    %c0_i32_0 = arith.constant 0 : i32
    %c0_i32_1 = arith.constant 0 : i32
    return %arg1, %c0_i32, %c0_i32_0 : i32, i32, i32
  }
  func.func @transform_7(%arg0: i32, %arg1: i32) -> (i32, i32, i32) {
    %c0_i32 = arith.constant 0 : i32
    %c0_i32_0 = arith.constant 0 : i32
    %c0_i32_1 = arith.constant 0 : i32
    return %arg1, %c0_i32, %c0_i32_0 : i32, i32, i32
  }
  func.func @transform_8(%arg0: i32, %arg1: i32) -> (i32, i32, i32) {
    %c0_i32 = arith.constant 0 : i32
    %c0_i32_0 = arith.constant 0 : i32
    %c0_i32_1 = arith.constant 0 : i32
    return %arg1, %c0_i32, %c0_i32_0 : i32, i32, i32
  }
  func.func @transform_9(%arg0: i32, %arg1: i32) -> (i32, i32) {
    %c0_i32 = arith.constant 0 : i32
    %c0_i32_0 = arith.constant 0 : i32
    %c0_i32_1 = arith.constant 0 : i32
    return %c0_i32, %c0_i32_0 : i32, i32
  }
  func.func @transform_10(%arg0: i32, %arg1: i32) -> (i32, i32) {
    %c0_i32 = arith.constant 0 : i32
    %c0_i32_0 = arith.constant 0 : i32
    %c0_i32_1 = arith.constant 0 : i32
    return %c0_i32, %c0_i32_0 : i32, i32
  }
  func.func @transform_11(%arg0: i32, %arg1: i32) -> (i32, i32) {
    %c0_i32 = arith.constant 0 : i32
    %c0_i32_0 = arith.constant 0 : i32
    return %arg0, %c0_i32 : i32, i32
  }
  func.func @transform_12(%arg0: i32, %arg1: i32) -> (i32, i32) {
    %c0_i32 = arith.constant 0 : i32
    %c0_i32_0 = arith.constant 0 : i32
    return %arg0, %c0_i32 : i32, i32
  }
}

module attributes {stable_mosaic.version = 11 : i64} {
  func.func @_level_kernel(%arg0: i32, %arg1: i32, %arg2: memref<8x64xf32, #tpu.memory_space<vmem>>, %arg3: memref<1x64xf32, #tpu.memory_space<vmem>>, %arg4: memref<1x64xf32, #tpu.memory_space<vmem>>, %arg5: memref<1x1x64xf32, #tpu.memory_space<vmem>>, %arg6: memref<1x1x64xf32, #tpu.memory_space<vmem>>, %arg7: memref<1x64x256xbf16, #tpu.memory_space<vmem>>, %arg8: memref<1x1x256xf32, #tpu.memory_space<vmem>>, %arg9: memref<1x256x64xbf16, #tpu.memory_space<vmem>>, %arg10: memref<1x1x64xf32, #tpu.memory_space<vmem>>, %arg11: memref<1x64xf32, #tpu.memory_space<vmem>>, %arg12: memref<1x64xf32, #tpu.memory_space<vmem>>, %arg13: memref<8x64xf32, #tpu.memory_space<vmem>>, %arg14: memref<8x64xf32, #tpu.memory_space<vmem>>, %arg15: memref<8x64xf32, #tpu.memory_space<vmem>>) attributes {dimension_semantics = [#tpu.dimension_semantics<parallel>, #tpu.dimension_semantics<arbitrary>], iteration_bounds = array<i64: 1, 1>, scalar_prefetch = 0 : i64, scratch_operands = 1 : i64, tpu.core_type = #tpu.core_type<tc>, window_params = [{transform_indices = @transform_0, window_bounds = array<i64: 8, 64>}, {pipeline_mode = #tpu.pipeline_mode<synchronous>, transform_indices = @transform_1, window_bounds = array<i64: 1, 64>}, {pipeline_mode = #tpu.pipeline_mode<synchronous>, transform_indices = @transform_2, window_bounds = array<i64: 1, 64>}, {transform_indices = @transform_3, window_bounds = array<i64: 1, 1, 64>}, {transform_indices = @transform_4, window_bounds = array<i64: 1, 1, 64>}, {transform_indices = @transform_5, window_bounds = array<i64: 1, 64, 256>}, {transform_indices = @transform_6, window_bounds = array<i64: 1, 1, 256>}, {transform_indices = @transform_7, window_bounds = array<i64: 1, 256, 64>}, {transform_indices = @transform_8, window_bounds = array<i64: 1, 1, 64>}, {pipeline_mode = #tpu.pipeline_mode<synchronous>, transform_indices = @transform_9, window_bounds = array<i64: 1, 64>}, {pipeline_mode = #tpu.pipeline_mode<synchronous>, transform_indices = @transform_10, window_bounds = array<i64: 1, 64>}, {transform_indices = @transform_11, window_bounds = array<i64: 8, 64>}, {transform_indices = @transform_12, window_bounds = array<i64: 8, 64>}]} {
    %c0_i32 = arith.constant 0 : i32
    %0 = arith.cmpi eq, %arg1, %c0_i32 : i32
    %1 = arith.extui %0 : i1 to i32
    %c0_i32_0 = arith.constant 0 : i32
    %2 = arith.cmpi ne, %1, %c0_i32_0 : i32
    scf.if %2 {
      %c0_39 = arith.constant 0 : index
      %c0_40 = arith.constant 0 : index
      %76 = vector.load %arg2[%c0_39, %c0_40] : memref<8x64xf32, #tpu.memory_space<vmem>>, vector<8x64xf32>
      %c0_41 = arith.constant 0 : index
      %c0_42 = arith.constant 0 : index
      %77 = vector.load %arg3[%c0_41, %c0_42] : memref<1x64xf32, #tpu.memory_space<vmem>>, vector<1x64xf32>
      %c0_43 = arith.constant 0 : index
      %c0_44 = arith.constant 0 : index
      %78 = vector.load %arg4[%c0_43, %c0_44] : memref<1x64xf32, #tpu.memory_space<vmem>>, vector<1x64xf32>
      %cst_45 = arith.constant dense<0.000000e+00> : vector<8xf32>
      %79 = vector.multi_reduction <add>, %76, %cst_45 [1] : vector<8x64xf32> to vector<8xf32>
      %80 = vector.shape_cast %79 : vector<8xf32> to vector<8x1xf32>
      %cst_46 = arith.constant 6.400000e+01 : f32
      %81 = vector.broadcast %cst_46 : f32 to vector<8x1xf32>
      %82 = arith.divf %80, %81 : vector<8x1xf32>
      %83 = vector.broadcast %82 : vector<8x1xf32> to vector<8x64xf32>
      %84 = arith.subf %76, %83 : vector<8x64xf32>
      %85 = arith.mulf %84, %84 : vector<8x64xf32>
      %cst_47 = arith.constant dense<0.000000e+00> : vector<8xf32>
      %86 = vector.multi_reduction <add>, %85, %cst_47 [1] : vector<8x64xf32> to vector<8xf32>
      %87 = vector.shape_cast %86 : vector<8xf32> to vector<8x1xf32>
      %cst_48 = arith.constant 6.400000e+01 : f32
      %88 = vector.broadcast %cst_48 : f32 to vector<8x1xf32>
      %89 = arith.divf %87, %88 : vector<8x1xf32>
      %cst_49 = arith.constant 9.99999997E-7 : f32
      %90 = vector.broadcast %cst_49 : f32 to vector<8x1xf32>
      %91 = arith.addf %89, %90 : vector<8x1xf32>
      %92 = math.rsqrt %91 : vector<8x1xf32>
      %93 = vector.broadcast %92 : vector<8x1xf32> to vector<8x64xf32>
      %94 = arith.mulf %84, %93 : vector<8x64xf32>
      %95 = vector.broadcast %77 : vector<1x64xf32> to vector<8x64xf32>
      %96 = arith.mulf %94, %95 : vector<8x64xf32>
      %97 = vector.broadcast %78 : vector<1x64xf32> to vector<8x64xf32>
      %98 = arith.addf %96, %97 : vector<8x64xf32>
      %c0_50 = arith.constant 0 : index
      %c0_51 = arith.constant 0 : index
      %99 = vector.load %arg13[%c0_50, %c0_51] : memref<8x64xf32, #tpu.memory_space<vmem>>, vector<8x64xf32>
      tpu.vector_store %arg13[%c0_50, %c0_51], %98 {strides = array<i32>} : memref<8x64xf32, #tpu.memory_space<vmem>>, vector<8x64xf32>,
      %c0_52 = arith.constant 0 : index
      %c0_53 = arith.constant 0 : index
      %100 = vector.load %arg15[%c0_52, %c0_53] : memref<8x64xf32, #tpu.memory_space<vmem>>, vector<8x64xf32>
      tpu.vector_store %arg15[%c0_52, %c0_53], %98 {strides = array<i32>} : memref<8x64xf32, #tpu.memory_space<vmem>>, vector<8x64xf32>,
    } else {
    }
    %c0 = arith.constant 0 : index
    %c0_1 = arith.constant 0 : index
    %3 = vector.load %arg15[%c0, %c0_1] : memref<8x64xf32, #tpu.memory_space<vmem>>, vector<8x64xf32>
    %c0_2 = arith.constant 0 : index
    %c0_3 = arith.constant 0 : index
    %c0_4 = arith.constant 0 : index
    %4 = vector.load %arg5[%c0_2, %c0_3, %c0_4] : memref<1x1x64xf32, #tpu.memory_space<vmem>>, vector<1x1x64xf32>
    %5 = vector.shape_cast %4 : vector<1x1x64xf32> to vector<1x64xf32>
    %c0_5 = arith.constant 0 : index
    %c0_6 = arith.constant 0 : index
    %c0_7 = arith.constant 0 : index
    %6 = vector.load %arg6[%c0_5, %c0_6, %c0_7] : memref<1x1x64xf32, #tpu.memory_space<vmem>>, vector<1x1x64xf32>
    %7 = vector.shape_cast %6 : vector<1x1x64xf32> to vector<1x64xf32>
    %cst = arith.constant dense<0.000000e+00> : vector<8xf32>
    %8 = vector.multi_reduction <add>, %3, %cst [1] : vector<8x64xf32> to vector<8xf32>
    %9 = vector.shape_cast %8 : vector<8xf32> to vector<8x1xf32>
    %cst_8 = arith.constant 6.400000e+01 : f32
    %10 = vector.broadcast %cst_8 : f32 to vector<8x1xf32>
    %11 = arith.divf %9, %10 : vector<8x1xf32>
    %12 = vector.broadcast %11 : vector<8x1xf32> to vector<8x64xf32>
    %13 = arith.subf %3, %12 : vector<8x64xf32>
    %14 = arith.mulf %13, %13 : vector<8x64xf32>
    %cst_9 = arith.constant dense<0.000000e+00> : vector<8xf32>
    %15 = vector.multi_reduction <add>, %14, %cst_9 [1] : vector<8x64xf32> to vector<8xf32>
    %16 = vector.shape_cast %15 : vector<8xf32> to vector<8x1xf32>
    %cst_10 = arith.constant 6.400000e+01 : f32
    %17 = vector.broadcast %cst_10 : f32 to vector<8x1xf32>
    %18 = arith.divf %16, %17 : vector<8x1xf32>
    %cst_11 = arith.constant 9.99999997E-7 : f32
    %19 = vector.broadcast %cst_11 : f32 to vector<8x1xf32>
    %20 = arith.addf %18, %19 : vector<8x1xf32>
    %21 = math.rsqrt %20 : vector<8x1xf32>
    %22 = vector.broadcast %21 : vector<8x1xf32> to vector<8x64xf32>
    %23 = arith.mulf %13, %22 : vector<8x64xf32>
    %24 = vector.broadcast %5 : vector<1x64xf32> to vector<8x64xf32>
    %25 = arith.mulf %23, %24 : vector<8x64xf32>
    %26 = vector.broadcast %7 : vector<1x64xf32> to vector<8x64xf32>
    %27 = arith.addf %25, %26 : vector<8x64xf32>
    %28 = arith.addf %3, %27 : vector<8x64xf32>
    %cst_12 = arith.constant dense<0.000000e+00> : vector<8xf32>
    %29 = vector.multi_reduction <add>, %28, %cst_12 [1] : vector<8x64xf32> to vector<8xf32>
    %30 = vector.shape_cast %29 : vector<8xf32> to vector<8x1xf32>
    %cst_13 = arith.constant 6.400000e+01 : f32
    %31 = vector.broadcast %cst_13 : f32 to vector<8x1xf32>
    %32 = arith.divf %30, %31 : vector<8x1xf32>
    %33 = vector.broadcast %32 : vector<8x1xf32> to vector<8x64xf32>
    %34 = arith.subf %28, %33 : vector<8x64xf32>
    %35 = arith.mulf %34, %34 : vector<8x64xf32>
    %cst_14 = arith.constant dense<0.000000e+00> : vector<8xf32>
    %36 = vector.multi_reduction <add>, %35, %cst_14 [1] : vector<8x64xf32> to vector<8xf32>
    %37 = vector.shape_cast %36 : vector<8xf32> to vector<8x1xf32>
    %cst_15 = arith.constant 6.400000e+01 : f32
    %38 = vector.broadcast %cst_15 : f32 to vector<8x1xf32>
    %39 = arith.divf %37, %38 : vector<8x1xf32>
    %cst_16 = arith.constant 9.99999997E-7 : f32
    %40 = vector.broadcast %cst_16 : f32 to vector<8x1xf32>
    %41 = arith.addf %39, %40 : vector<8x1xf32>
    %42 = math.rsqrt %41 : vector<8x1xf32>
    %43 = vector.broadcast %42 : vector<8x1xf32> to vector<8x64xf32>
    %44 = arith.mulf %34, %43 : vector<8x64xf32>
    %45 = arith.truncf %44 : vector<8x64xf32> to vector<8x64xbf16>
    %c0_17 = arith.constant 0 : index
    %c0_18 = arith.constant 0 : index
    %c0_19 = arith.constant 0 : index
    %46 = vector.load %arg7[%c0_17, %c0_18, %c0_19] : memref<1x64x256xbf16, #tpu.memory_space<vmem>>, vector<1x64x256xbf16>
    %47 = vector.shape_cast %46 : vector<1x64x256xbf16> to vector<64x256xbf16>
    %cst_20 = arith.constant dense<0.000000e+00> : vector<8x256xf32>
    %48 = tpu.matmul %45, %47, %cst_20 {dimension_numbers = #tpu.dot_dimension_numbers<[1], [0], [0], [1], [0, 0, 1, 1], [], []>} : vector<8x64xbf16>, vector<64x256xbf16>, vector<8x256xf32> -> vector<8x256xf32>
    %c0_21 = arith.constant 0 : index
    %c0_22 = arith.constant 0 : index
    %c0_23 = arith.constant 0 : index
    %49 = vector.load %arg8[%c0_21, %c0_22, %c0_23] : memref<1x1x256xf32, #tpu.memory_space<vmem>>, vector<1x1x256xf32>
    %50 = vector.shape_cast %49 : vector<1x1x256xf32> to vector<1x256xf32>
    %51 = vector.broadcast %50 : vector<1x256xf32> to vector<8x256xf32>
    %52 = arith.addf %48, %51 : vector<8x256xf32>
    %cst_24 = arith.constant 5.000000e-01 : f32
    %53 = vector.broadcast %cst_24 : f32 to vector<8x256xf32>
    %54 = arith.mulf %53, %52 : vector<8x256xf32>
    %cst_25 = arith.constant 2.000000e+00 : f32
    %55 = math.sqrt %cst_25 : f32
    %cst_26 = arith.constant 1.000000e+00 : f32
    %56 = arith.divf %cst_26, %55 : f32
    %57 = vector.broadcast %56 : f32 to vector<8x256xf32>
    %58 = arith.mulf %52, %57 : vector<8x256xf32>
    %59 = math.erf %58 : vector<8x256xf32>
    %cst_27 = arith.constant 1.000000e+00 : f32
    %60 = vector.broadcast %cst_27 : f32 to vector<8x256xf32>
    %61 = arith.addf %60, %59 : vector<8x256xf32>
    %62 = arith.mulf %54, %61 : vector<8x256xf32>
    %63 = arith.truncf %62 : vector<8x256xf32> to vector<8x256xbf16>
    %c0_28 = arith.constant 0 : index
    %c0_29 = arith.constant 0 : index
    %c0_30 = arith.constant 0 : index
    %64 = vector.load %arg9[%c0_28, %c0_29, %c0_30] : memref<1x256x64xbf16, #tpu.memory_space<vmem>>, vector<1x256x64xbf16>
    %65 = vector.shape_cast %64 : vector<1x256x64xbf16> to vector<256x64xbf16>
    %cst_31 = arith.constant dense<0.000000e+00> : vector<8x64xf32>
    %66 = tpu.matmul %63, %65, %cst_31 {dimension_numbers = #tpu.dot_dimension_numbers<[1], [0], [0], [1], [0, 0, 1, 1], [], []>} : vector<8x256xbf16>, vector<256x64xbf16>, vector<8x64xf32> -> vector<8x64xf32>
    %c0_32 = arith.constant 0 : index
    %c0_33 = arith.constant 0 : index
    %c0_34 = arith.constant 0 : index
    %67 = vector.load %arg10[%c0_32, %c0_33, %c0_34] : memref<1x1x64xf32, #tpu.memory_space<vmem>>, vector<1x1x64xf32>
    %68 = vector.shape_cast %67 : vector<1x1x64xf32> to vector<1x64xf32>
    %69 = vector.broadcast %68 : vector<1x64xf32> to vector<8x64xf32>
    %70 = arith.addf %66, %69 : vector<8x64xf32>
    %71 = arith.addf %28, %70 : vector<8x64xf32>
    %c0_35 = arith.constant 0 : index
    %c0_36 = arith.constant 0 : index
    %72 = vector.load %arg15[%c0_35, %c0_36] : memref<8x64xf32, #tpu.memory_space<vmem>>, vector<8x64xf32>
    tpu.vector_store %arg15[%c0_35, %c0_36], %71 {strides = array<i32>} : memref<8x64xf32, #tpu.memory_space<vmem>>, vector<8x64xf32>,
    %c0_i32_37 = arith.constant 0 : i32
    %73 = arith.cmpi eq, %arg1, %c0_i32_37 : i32
    %74 = arith.extui %73 : i1 to i32
    %c0_i32_38 = arith.constant 0 : i32
    %75 = arith.cmpi ne, %74, %c0_i32_38 : i32
    scf.if %75 {
      %c0_39 = arith.constant 0 : index
      %c0_40 = arith.constant 0 : index
      %76 = vector.load %arg11[%c0_39, %c0_40] : memref<1x64xf32, #tpu.memory_space<vmem>>, vector<1x64xf32>
      %c0_41 = arith.constant 0 : index
      %c0_42 = arith.constant 0 : index
      %77 = vector.load %arg12[%c0_41, %c0_42] : memref<1x64xf32, #tpu.memory_space<vmem>>, vector<1x64xf32>
      %cst_43 = arith.constant dense<0.000000e+00> : vector<8xf32>
      %78 = vector.multi_reduction <add>, %71, %cst_43 [1] : vector<8x64xf32> to vector<8xf32>
      %79 = vector.shape_cast %78 : vector<8xf32> to vector<8x1xf32>
      %cst_44 = arith.constant 6.400000e+01 : f32
      %80 = vector.broadcast %cst_44 : f32 to vector<8x1xf32>
      %81 = arith.divf %79, %80 : vector<8x1xf32>
      %82 = vector.broadcast %81 : vector<8x1xf32> to vector<8x64xf32>
      %83 = arith.subf %71, %82 : vector<8x64xf32>
      %84 = arith.mulf %83, %83 : vector<8x64xf32>
      %cst_45 = arith.constant dense<0.000000e+00> : vector<8xf32>
      %85 = vector.multi_reduction <add>, %84, %cst_45 [1] : vector<8x64xf32> to vector<8xf32>
      %86 = vector.shape_cast %85 : vector<8xf32> to vector<8x1xf32>
      %cst_46 = arith.constant 6.400000e+01 : f32
      %87 = vector.broadcast %cst_46 : f32 to vector<8x1xf32>
      %88 = arith.divf %86, %87 : vector<8x1xf32>
      %cst_47 = arith.constant 9.99999997E-7 : f32
      %89 = vector.broadcast %cst_47 : f32 to vector<8x1xf32>
      %90 = arith.addf %88, %89 : vector<8x1xf32>
      %91 = math.rsqrt %90 : vector<8x1xf32>
      %92 = vector.broadcast %91 : vector<8x1xf32> to vector<8x64xf32>
      %93 = arith.mulf %83, %92 : vector<8x64xf32>
      %94 = vector.broadcast %76 : vector<1x64xf32> to vector<8x64xf32>
      %95 = arith.mulf %93, %94 : vector<8x64xf32>
      %96 = vector.broadcast %77 : vector<1x64xf32> to vector<8x64xf32>
      %97 = arith.addf %95, %96 : vector<8x64xf32>
      %c0_48 = arith.constant 0 : index
      %c0_49 = arith.constant 0 : index
      %98 = vector.load %arg14[%c0_48, %c0_49] : memref<8x64xf32, #tpu.memory_space<vmem>>, vector<8x64xf32>
      tpu.vector_store %arg14[%c0_48, %c0_49], %97 {strides = array<i32>} : memref<8x64xf32, #tpu.memory_space<vmem>>, vector<8x64xf32>,
    } else {
    }
    return
  }
  func.func @transform_0(%arg0: i32, %arg1: i32) -> (i32, i32) {
    %c0_i32 = arith.constant 0 : i32
    %c0_i32_0 = arith.constant 0 : i32
    return %arg0, %c0_i32 : i32, i32
  }
  func.func @transform_1(%arg0: i32, %arg1: i32) -> (i32, i32) {
    %c0_i32 = arith.constant 0 : i32
    %c0_i32_0 = arith.constant 0 : i32
    %c0_i32_1 = arith.constant 0 : i32
    return %c0_i32, %c0_i32_0 : i32, i32
  }
  func.func @transform_2(%arg0: i32, %arg1: i32) -> (i32, i32) {
    %c0_i32 = arith.constant 0 : i32
    %c0_i32_0 = arith.constant 0 : i32
    %c0_i32_1 = arith.constant 0 : i32
    return %c0_i32, %c0_i32_0 : i32, i32
  }
  func.func @transform_3(%arg0: i32, %arg1: i32) -> (i32, i32, i32) {
    %c0_i32 = arith.constant 0 : i32
    %c0_i32_0 = arith.constant 0 : i32
    %c0_i32_1 = arith.constant 0 : i32
    return %arg1, %c0_i32, %c0_i32_0 : i32, i32, i32
  }
  func.func @transform_4(%arg0: i32, %arg1: i32) -> (i32, i32, i32) {
    %c0_i32 = arith.constant 0 : i32
    %c0_i32_0 = arith.constant 0 : i32
    %c0_i32_1 = arith.constant 0 : i32
    return %arg1, %c0_i32, %c0_i32_0 : i32, i32, i32
  }
  func.func @transform_5(%arg0: i32, %arg1: i32) -> (i32, i32, i32) {
    %c0_i32 = arith.constant 0 : i32
    %c0_i32_0 = arith.constant 0 : i32
    %c0_i32_1 = arith.constant 0 : i32
    return %arg1, %c0_i32, %c0_i32_0 : i32, i32, i32
  }
  func.func @transform_6(%arg0: i32, %arg1: i32) -> (i32, i32, i32) {
    %c0_i32 = arith.constant 0 : i32
    %c0_i32_0 = arith.constant 0 : i32
    %c0_i32_1 = arith.constant 0 : i32
    return %arg1, %c0_i32, %c0_i32_0 : i32, i32, i32
  }
  func.func @transform_7(%arg0: i32, %arg1: i32) -> (i32, i32, i32) {
    %c0_i32 = arith.constant 0 : i32
    %c0_i32_0 = arith.constant 0 : i32
    %c0_i32_1 = arith.constant 0 : i32
    return %arg1, %c0_i32, %c0_i32_0 : i32, i32, i32
  }
  func.func @transform_8(%arg0: i32, %arg1: i32) -> (i32, i32, i32) {
    %c0_i32 = arith.constant 0 : i32
    %c0_i32_0 = arith.constant 0 : i32
    %c0_i32_1 = arith.constant 0 : i32
    return %arg1, %c0_i32, %c0_i32_0 : i32, i32, i32
  }
  func.func @transform_9(%arg0: i32, %arg1: i32) -> (i32, i32) {
    %c0_i32 = arith.constant 0 : i32
    %c0_i32_0 = arith.constant 0 : i32
    %c0_i32_1 = arith.constant 0 : i32
    return %c0_i32, %c0_i32_0 : i32, i32
  }
  func.func @transform_10(%arg0: i32, %arg1: i32) -> (i32, i32) {
    %c0_i32 = arith.constant 0 : i32
    %c0_i32_0 = arith.constant 0 : i32
    %c0_i32_1 = arith.constant 0 : i32
    return %c0_i32, %c0_i32_0 : i32, i32
  }
  func.func @transform_11(%arg0: i32, %arg1: i32) -> (i32, i32) {
    %c0_i32 = arith.constant 0 : i32
    %c0_i32_0 = arith.constant 0 : i32
    return %arg0, %c0_i32 : i32, i32
  }
  func.func @transform_12(%arg0: i32, %arg1: i32) -> (i32, i32) {
    %c0_i32 = arith.constant 0 : i32
    %c0_i32_0 = arith.constant 0 : i32
    return %arg0, %c0_i32 : i32, i32
  }
}

module attributes {stable_mosaic.version = 11 : i64} {
  func.func @_level_kernel(%arg0: i32, %arg1: i32, %arg2: memref<8x128xf32, #tpu.memory_space<vmem>>, %arg3: memref<1x128xf32, #tpu.memory_space<vmem>>, %arg4: memref<1x128xf32, #tpu.memory_space<vmem>>, %arg5: memref<1x1x128xf32, #tpu.memory_space<vmem>>, %arg6: memref<1x1x128xf32, #tpu.memory_space<vmem>>, %arg7: memref<1x128x512xbf16, #tpu.memory_space<vmem>>, %arg8: memref<1x1x512xf32, #tpu.memory_space<vmem>>, %arg9: memref<1x512x128xbf16, #tpu.memory_space<vmem>>, %arg10: memref<1x1x128xf32, #tpu.memory_space<vmem>>, %arg11: memref<1x128xf32, #tpu.memory_space<vmem>>, %arg12: memref<1x128xf32, #tpu.memory_space<vmem>>, %arg13: memref<8x128xf32, #tpu.memory_space<vmem>>, %arg14: memref<8x128xf32, #tpu.memory_space<vmem>>, %arg15: memref<8x128xf32, #tpu.memory_space<vmem>>) attributes {dimension_semantics = [#tpu.dimension_semantics<parallel>, #tpu.dimension_semantics<arbitrary>], iteration_bounds = array<i64: 1, 1>, scalar_prefetch = 0 : i64, scratch_operands = 1 : i64, tpu.core_type = #tpu.core_type<tc>, window_params = [{transform_indices = @transform_0, window_bounds = array<i64: 8, 128>}, {pipeline_mode = #tpu.pipeline_mode<synchronous>, transform_indices = @transform_1, window_bounds = array<i64: 1, 128>}, {pipeline_mode = #tpu.pipeline_mode<synchronous>, transform_indices = @transform_2, window_bounds = array<i64: 1, 128>}, {transform_indices = @transform_3, window_bounds = array<i64: 1, 1, 128>}, {transform_indices = @transform_4, window_bounds = array<i64: 1, 1, 128>}, {transform_indices = @transform_5, window_bounds = array<i64: 1, 128, 512>}, {transform_indices = @transform_6, window_bounds = array<i64: 1, 1, 512>}, {transform_indices = @transform_7, window_bounds = array<i64: 1, 512, 128>}, {transform_indices = @transform_8, window_bounds = array<i64: 1, 1, 128>}, {pipeline_mode = #tpu.pipeline_mode<synchronous>, transform_indices = @transform_9, window_bounds = array<i64: 1, 128>}, {pipeline_mode = #tpu.pipeline_mode<synchronous>, transform_indices = @transform_10, window_bounds = array<i64: 1, 128>}, {transform_indices = @transform_11, window_bounds = array<i64: 8, 128>}, {transform_indices = @transform_12, window_bounds = array<i64: 8, 128>}]} {
    %c0_i32 = arith.constant 0 : i32
    %0 = arith.cmpi eq, %arg1, %c0_i32 : i32
    %1 = arith.extui %0 : i1 to i32
    %c0_i32_0 = arith.constant 0 : i32
    %2 = arith.cmpi ne, %1, %c0_i32_0 : i32
    scf.if %2 {
      %c0_39 = arith.constant 0 : index
      %c0_40 = arith.constant 0 : index
      %76 = vector.load %arg2[%c0_39, %c0_40] : memref<8x128xf32, #tpu.memory_space<vmem>>, vector<8x128xf32>
      %c0_41 = arith.constant 0 : index
      %c0_42 = arith.constant 0 : index
      %77 = vector.load %arg3[%c0_41, %c0_42] : memref<1x128xf32, #tpu.memory_space<vmem>>, vector<1x128xf32>
      %c0_43 = arith.constant 0 : index
      %c0_44 = arith.constant 0 : index
      %78 = vector.load %arg4[%c0_43, %c0_44] : memref<1x128xf32, #tpu.memory_space<vmem>>, vector<1x128xf32>
      %cst_45 = arith.constant dense<0.000000e+00> : vector<8xf32>
      %79 = vector.multi_reduction <add>, %76, %cst_45 [1] : vector<8x128xf32> to vector<8xf32>
      %80 = vector.shape_cast %79 : vector<8xf32> to vector<8x1xf32>
      %cst_46 = arith.constant 1.280000e+02 : f32
      %81 = vector.broadcast %cst_46 : f32 to vector<8x1xf32>
      %82 = arith.divf %80, %81 : vector<8x1xf32>
      %83 = vector.broadcast %82 : vector<8x1xf32> to vector<8x128xf32>
      %84 = arith.subf %76, %83 : vector<8x128xf32>
      %85 = arith.mulf %84, %84 : vector<8x128xf32>
      %cst_47 = arith.constant dense<0.000000e+00> : vector<8xf32>
      %86 = vector.multi_reduction <add>, %85, %cst_47 [1] : vector<8x128xf32> to vector<8xf32>
      %87 = vector.shape_cast %86 : vector<8xf32> to vector<8x1xf32>
      %cst_48 = arith.constant 1.280000e+02 : f32
      %88 = vector.broadcast %cst_48 : f32 to vector<8x1xf32>
      %89 = arith.divf %87, %88 : vector<8x1xf32>
      %cst_49 = arith.constant 9.99999997E-7 : f32
      %90 = vector.broadcast %cst_49 : f32 to vector<8x1xf32>
      %91 = arith.addf %89, %90 : vector<8x1xf32>
      %92 = math.rsqrt %91 : vector<8x1xf32>
      %93 = vector.broadcast %92 : vector<8x1xf32> to vector<8x128xf32>
      %94 = arith.mulf %84, %93 : vector<8x128xf32>
      %95 = vector.broadcast %77 : vector<1x128xf32> to vector<8x128xf32>
      %96 = arith.mulf %94, %95 : vector<8x128xf32>
      %97 = vector.broadcast %78 : vector<1x128xf32> to vector<8x128xf32>
      %98 = arith.addf %96, %97 : vector<8x128xf32>
      %c0_50 = arith.constant 0 : index
      %c0_51 = arith.constant 0 : index
      %99 = vector.load %arg13[%c0_50, %c0_51] : memref<8x128xf32, #tpu.memory_space<vmem>>, vector<8x128xf32>
      tpu.vector_store %arg13[%c0_50, %c0_51], %98 {strides = array<i32>} : memref<8x128xf32, #tpu.memory_space<vmem>>, vector<8x128xf32>,
      %c0_52 = arith.constant 0 : index
      %c0_53 = arith.constant 0 : index
      %100 = vector.load %arg15[%c0_52, %c0_53] : memref<8x128xf32, #tpu.memory_space<vmem>>, vector<8x128xf32>
      tpu.vector_store %arg15[%c0_52, %c0_53], %98 {strides = array<i32>} : memref<8x128xf32, #tpu.memory_space<vmem>>, vector<8x128xf32>,
    } else {
    }
    %c0 = arith.constant 0 : index
    %c0_1 = arith.constant 0 : index
    %3 = vector.load %arg15[%c0, %c0_1] : memref<8x128xf32, #tpu.memory_space<vmem>>, vector<8x128xf32>
    %c0_2 = arith.constant 0 : index
    %c0_3 = arith.constant 0 : index
    %c0_4 = arith.constant 0 : index
    %4 = vector.load %arg5[%c0_2, %c0_3, %c0_4] : memref<1x1x128xf32, #tpu.memory_space<vmem>>, vector<1x1x128xf32>
    %5 = vector.shape_cast %4 : vector<1x1x128xf32> to vector<1x128xf32>
    %c0_5 = arith.constant 0 : index
    %c0_6 = arith.constant 0 : index
    %c0_7 = arith.constant 0 : index
    %6 = vector.load %arg6[%c0_5, %c0_6, %c0_7] : memref<1x1x128xf32, #tpu.memory_space<vmem>>, vector<1x1x128xf32>
    %7 = vector.shape_cast %6 : vector<1x1x128xf32> to vector<1x128xf32>
    %cst = arith.constant dense<0.000000e+00> : vector<8xf32>
    %8 = vector.multi_reduction <add>, %3, %cst [1] : vector<8x128xf32> to vector<8xf32>
    %9 = vector.shape_cast %8 : vector<8xf32> to vector<8x1xf32>
    %cst_8 = arith.constant 1.280000e+02 : f32
    %10 = vector.broadcast %cst_8 : f32 to vector<8x1xf32>
    %11 = arith.divf %9, %10 : vector<8x1xf32>
    %12 = vector.broadcast %11 : vector<8x1xf32> to vector<8x128xf32>
    %13 = arith.subf %3, %12 : vector<8x128xf32>
    %14 = arith.mulf %13, %13 : vector<8x128xf32>
    %cst_9 = arith.constant dense<0.000000e+00> : vector<8xf32>
    %15 = vector.multi_reduction <add>, %14, %cst_9 [1] : vector<8x128xf32> to vector<8xf32>
    %16 = vector.shape_cast %15 : vector<8xf32> to vector<8x1xf32>
    %cst_10 = arith.constant 1.280000e+02 : f32
    %17 = vector.broadcast %cst_10 : f32 to vector<8x1xf32>
    %18 = arith.divf %16, %17 : vector<8x1xf32>
    %cst_11 = arith.constant 9.99999997E-7 : f32
    %19 = vector.broadcast %cst_11 : f32 to vector<8x1xf32>
    %20 = arith.addf %18, %19 : vector<8x1xf32>
    %21 = math.rsqrt %20 : vector<8x1xf32>
    %22 = vector.broadcast %21 : vector<8x1xf32> to vector<8x128xf32>
    %23 = arith.mulf %13, %22 : vector<8x128xf32>
    %24 = vector.broadcast %5 : vector<1x128xf32> to vector<8x128xf32>
    %25 = arith.mulf %23, %24 : vector<8x128xf32>
    %26 = vector.broadcast %7 : vector<1x128xf32> to vector<8x128xf32>
    %27 = arith.addf %25, %26 : vector<8x128xf32>
    %28 = arith.addf %3, %27 : vector<8x128xf32>
    %cst_12 = arith.constant dense<0.000000e+00> : vector<8xf32>
    %29 = vector.multi_reduction <add>, %28, %cst_12 [1] : vector<8x128xf32> to vector<8xf32>
    %30 = vector.shape_cast %29 : vector<8xf32> to vector<8x1xf32>
    %cst_13 = arith.constant 1.280000e+02 : f32
    %31 = vector.broadcast %cst_13 : f32 to vector<8x1xf32>
    %32 = arith.divf %30, %31 : vector<8x1xf32>
    %33 = vector.broadcast %32 : vector<8x1xf32> to vector<8x128xf32>
    %34 = arith.subf %28, %33 : vector<8x128xf32>
    %35 = arith.mulf %34, %34 : vector<8x128xf32>
    %cst_14 = arith.constant dense<0.000000e+00> : vector<8xf32>
    %36 = vector.multi_reduction <add>, %35, %cst_14 [1] : vector<8x128xf32> to vector<8xf32>
    %37 = vector.shape_cast %36 : vector<8xf32> to vector<8x1xf32>
    %cst_15 = arith.constant 1.280000e+02 : f32
    %38 = vector.broadcast %cst_15 : f32 to vector<8x1xf32>
    %39 = arith.divf %37, %38 : vector<8x1xf32>
    %cst_16 = arith.constant 9.99999997E-7 : f32
    %40 = vector.broadcast %cst_16 : f32 to vector<8x1xf32>
    %41 = arith.addf %39, %40 : vector<8x1xf32>
    %42 = math.rsqrt %41 : vector<8x1xf32>
    %43 = vector.broadcast %42 : vector<8x1xf32> to vector<8x128xf32>
    %44 = arith.mulf %34, %43 : vector<8x128xf32>
    %45 = arith.truncf %44 : vector<8x128xf32> to vector<8x128xbf16>
    %c0_17 = arith.constant 0 : index
    %c0_18 = arith.constant 0 : index
    %c0_19 = arith.constant 0 : index
    %46 = vector.load %arg7[%c0_17, %c0_18, %c0_19] : memref<1x128x512xbf16, #tpu.memory_space<vmem>>, vector<1x128x512xbf16>
    %47 = vector.shape_cast %46 : vector<1x128x512xbf16> to vector<128x512xbf16>
    %cst_20 = arith.constant dense<0.000000e+00> : vector<8x512xf32>
    %48 = tpu.matmul %45, %47, %cst_20 {dimension_numbers = #tpu.dot_dimension_numbers<[1], [0], [0], [1], [0, 0, 1, 1], [], []>} : vector<8x128xbf16>, vector<128x512xbf16>, vector<8x512xf32> -> vector<8x512xf32>
    %c0_21 = arith.constant 0 : index
    %c0_22 = arith.constant 0 : index
    %c0_23 = arith.constant 0 : index
    %49 = vector.load %arg8[%c0_21, %c0_22, %c0_23] : memref<1x1x512xf32, #tpu.memory_space<vmem>>, vector<1x1x512xf32>
    %50 = vector.shape_cast %49 : vector<1x1x512xf32> to vector<1x512xf32>
    %51 = vector.broadcast %50 : vector<1x512xf32> to vector<8x512xf32>
    %52 = arith.addf %48, %51 : vector<8x512xf32>
    %cst_24 = arith.constant 5.000000e-01 : f32
    %53 = vector.broadcast %cst_24 : f32 to vector<8x512xf32>
    %54 = arith.mulf %53, %52 : vector<8x512xf32>
    %cst_25 = arith.constant 2.000000e+00 : f32
    %55 = math.sqrt %cst_25 : f32
    %cst_26 = arith.constant 1.000000e+00 : f32
    %56 = arith.divf %cst_26, %55 : f32
    %57 = vector.broadcast %56 : f32 to vector<8x512xf32>
    %58 = arith.mulf %52, %57 : vector<8x512xf32>
    %59 = math.erf %58 : vector<8x512xf32>
    %cst_27 = arith.constant 1.000000e+00 : f32
    %60 = vector.broadcast %cst_27 : f32 to vector<8x512xf32>
    %61 = arith.addf %60, %59 : vector<8x512xf32>
    %62 = arith.mulf %54, %61 : vector<8x512xf32>
    %63 = arith.truncf %62 : vector<8x512xf32> to vector<8x512xbf16>
    %c0_28 = arith.constant 0 : index
    %c0_29 = arith.constant 0 : index
    %c0_30 = arith.constant 0 : index
    %64 = vector.load %arg9[%c0_28, %c0_29, %c0_30] : memref<1x512x128xbf16, #tpu.memory_space<vmem>>, vector<1x512x128xbf16>
    %65 = vector.shape_cast %64 : vector<1x512x128xbf16> to vector<512x128xbf16>
    %cst_31 = arith.constant dense<0.000000e+00> : vector<8x128xf32>
    %66 = tpu.matmul %63, %65, %cst_31 {dimension_numbers = #tpu.dot_dimension_numbers<[1], [0], [0], [1], [0, 0, 1, 1], [], []>} : vector<8x512xbf16>, vector<512x128xbf16>, vector<8x128xf32> -> vector<8x128xf32>
    %c0_32 = arith.constant 0 : index
    %c0_33 = arith.constant 0 : index
    %c0_34 = arith.constant 0 : index
    %67 = vector.load %arg10[%c0_32, %c0_33, %c0_34] : memref<1x1x128xf32, #tpu.memory_space<vmem>>, vector<1x1x128xf32>
    %68 = vector.shape_cast %67 : vector<1x1x128xf32> to vector<1x128xf32>
    %69 = vector.broadcast %68 : vector<1x128xf32> to vector<8x128xf32>
    %70 = arith.addf %66, %69 : vector<8x128xf32>
    %71 = arith.addf %28, %70 : vector<8x128xf32>
    %c0_35 = arith.constant 0 : index
    %c0_36 = arith.constant 0 : index
    %72 = vector.load %arg15[%c0_35, %c0_36] : memref<8x128xf32, #tpu.memory_space<vmem>>, vector<8x128xf32>
    tpu.vector_store %arg15[%c0_35, %c0_36], %71 {strides = array<i32>} : memref<8x128xf32, #tpu.memory_space<vmem>>, vector<8x128xf32>,
    %c0_i32_37 = arith.constant 0 : i32
    %73 = arith.cmpi eq, %arg1, %c0_i32_37 : i32
    %74 = arith.extui %73 : i1 to i32
    %c0_i32_38 = arith.constant 0 : i32
    %75 = arith.cmpi ne, %74, %c0_i32_38 : i32
    scf.if %75 {
      %c0_39 = arith.constant 0 : index
      %c0_40 = arith.constant 0 : index
      %76 = vector.load %arg11[%c0_39, %c0_40] : memref<1x128xf32, #tpu.memory_space<vmem>>, vector<1x128xf32>
      %c0_41 = arith.constant 0 : index
      %c0_42 = arith.constant 0 : index
      %77 = vector.load %arg12[%c0_41, %c0_42] : memref<1x128xf32, #tpu.memory_space<vmem>>, vector<1x128xf32>
      %cst_43 = arith.constant dense<0.000000e+00> : vector<8xf32>
      %78 = vector.multi_reduction <add>, %71, %cst_43 [1] : vector<8x128xf32> to vector<8xf32>
      %79 = vector.shape_cast %78 : vector<8xf32> to vector<8x1xf32>
      %cst_44 = arith.constant 1.280000e+02 : f32
      %80 = vector.broadcast %cst_44 : f32 to vector<8x1xf32>
      %81 = arith.divf %79, %80 : vector<8x1xf32>
      %82 = vector.broadcast %81 : vector<8x1xf32> to vector<8x128xf32>
      %83 = arith.subf %71, %82 : vector<8x128xf32>
      %84 = arith.mulf %83, %83 : vector<8x128xf32>
      %cst_45 = arith.constant dense<0.000000e+00> : vector<8xf32>
      %85 = vector.multi_reduction <add>, %84, %cst_45 [1] : vector<8x128xf32> to vector<8xf32>
      %86 = vector.shape_cast %85 : vector<8xf32> to vector<8x1xf32>
      %cst_46 = arith.constant 1.280000e+02 : f32
      %87 = vector.broadcast %cst_46 : f32 to vector<8x1xf32>
      %88 = arith.divf %86, %87 : vector<8x1xf32>
      %cst_47 = arith.constant 9.99999997E-7 : f32
      %89 = vector.broadcast %cst_47 : f32 to vector<8x1xf32>
      %90 = arith.addf %88, %89 : vector<8x1xf32>
      %91 = math.rsqrt %90 : vector<8x1xf32>
      %92 = vector.broadcast %91 : vector<8x1xf32> to vector<8x128xf32>
      %93 = arith.mulf %83, %92 : vector<8x128xf32>
      %94 = vector.broadcast %76 : vector<1x128xf32> to vector<8x128xf32>
      %95 = arith.mulf %93, %94 : vector<8x128xf32>
      %96 = vector.broadcast %77 : vector<1x128xf32> to vector<8x128xf32>
      %97 = arith.addf %95, %96 : vector<8x128xf32>
      %c0_48 = arith.constant 0 : index
      %c0_49 = arith.constant 0 : index
      %98 = vector.load %arg14[%c0_48, %c0_49] : memref<8x128xf32, #tpu.memory_space<vmem>>, vector<8x128xf32>
      tpu.vector_store %arg14[%c0_48, %c0_49], %97 {strides = array<i32>} : memref<8x128xf32, #tpu.memory_space<vmem>>, vector<8x128xf32>,
    } else {
    }
    return
  }
  func.func @transform_0(%arg0: i32, %arg1: i32) -> (i32, i32) {
    %c0_i32 = arith.constant 0 : i32
    %c0_i32_0 = arith.constant 0 : i32
    return %arg0, %c0_i32 : i32, i32
  }
  func.func @transform_1(%arg0: i32, %arg1: i32) -> (i32, i32) {
    %c0_i32 = arith.constant 0 : i32
    %c0_i32_0 = arith.constant 0 : i32
    %c0_i32_1 = arith.constant 0 : i32
    return %c0_i32, %c0_i32_0 : i32, i32
  }
  func.func @transform_2(%arg0: i32, %arg1: i32) -> (i32, i32) {
    %c0_i32 = arith.constant 0 : i32
    %c0_i32_0 = arith.constant 0 : i32
    %c0_i32_1 = arith.constant 0 : i32
    return %c0_i32, %c0_i32_0 : i32, i32
  }
  func.func @transform_3(%arg0: i32, %arg1: i32) -> (i32, i32, i32) {
    %c0_i32 = arith.constant 0 : i32
    %c0_i32_0 = arith.constant 0 : i32
    %c0_i32_1 = arith.constant 0 : i32
    return %arg1, %c0_i32, %c0_i32_0 : i32, i32, i32
  }
  func.func @transform_4(%arg0: i32, %arg1: i32) -> (i32, i32, i32) {
    %c0_i32 = arith.constant 0 : i32
    %c0_i32_0 = arith.constant 0 : i32
    %c0_i32_1 = arith.constant 0 : i32
    return %arg1, %c0_i32, %c0_i32_0 : i32, i32, i32
  }
  func.func @transform_5(%arg0: i32, %arg1: i32) -> (i32, i32, i32) {
    %c0_i32 = arith.constant 0 : i32
    %c0_i32_0 = arith.constant 0 : i32
    %c0_i32_1 = arith.constant 0 : i32
    return %arg1, %c0_i32, %c0_i32_0 : i32, i32, i32
  }
  func.func @transform_6(%arg0: i32, %arg1: i32) -> (i32, i32, i32) {
    %c0_i32 = arith.constant 0 : i32
    %c0_i32_0 = arith.constant 0 : i32
    %c0_i32_1 = arith.constant 0 : i32
    return %arg1, %c0_i32, %c0_i32_0 : i32, i32, i32
  }
  func.func @transform_7(%arg0: i32, %arg1: i32) -> (i32, i32, i32) {
    %c0_i32 = arith.constant 0 : i32
    %c0_i32_0 = arith.constant 0 : i32
    %c0_i32_1 = arith.constant 0 : i32
    return %arg1, %c0_i32, %c0_i32_0 : i32, i32, i32
  }
  func.func @transform_8(%arg0: i32, %arg1: i32) -> (i32, i32, i32) {
    %c0_i32 = arith.constant 0 : i32
    %c0_i32_0 = arith.constant 0 : i32
    %c0_i32_1 = arith.constant 0 : i32
    return %arg1, %c0_i32, %c0_i32_0 : i32, i32, i32
  }
  func.func @transform_9(%arg0: i32, %arg1: i32) -> (i32, i32) {
    %c0_i32 = arith.constant 0 : i32
    %c0_i32_0 = arith.constant 0 : i32
    %c0_i32_1 = arith.constant 0 : i32
    return %c0_i32, %c0_i32_0 : i32, i32
  }
  func.func @transform_10(%arg0: i32, %arg1: i32) -> (i32, i32) {
    %c0_i32 = arith.constant 0 : i32
    %c0_i32_0 = arith.constant 0 : i32
    %c0_i32_1 = arith.constant 0 : i32
    return %c0_i32, %c0_i32_0 : i32, i32
  }
  func.func @transform_11(%arg0: i32, %arg1: i32) -> (i32, i32) {
    %c0_i32 = arith.constant 0 : i32
    %c0_i32_0 = arith.constant 0 : i32
    return %arg0, %c0_i32 : i32, i32
  }
  func.func @transform_12(%arg0: i32, %arg1: i32) -> (i32, i32) {
    %c0_i32 = arith.constant 0 : i32
    %c0_i32_0 = arith.constant 0 : i32
    return %arg0, %c0_i32 : i32, i32
  }
}

</mosaic_0001>

<bundles_post_ra>
// kernel: mtgrootv_3d_forward.5
= control target key start
LH: loop header
LB: loop body
LE: loop exit
PB: predicated region body
PF: predicated region fallthrough
CT: control target
= control target key end

     0   :  { %s1748_s0 = inlined_call_operand.vmem [shape: f32[32,32], index: 0, kind: input, shape index: {}]   ;;  %s1749_s1 = inlined_call_operand.vmem [shape: f32[1,32], index: 1, kind: input, shape index: {}]   ;;  %s1750_s2 = inlined_call_operand.vmem [shape: f32[1,32], index: 2, kind: input, shape index: {}]   ;;  %s1751_s3 = inlined_call_operand.vmem [shape: f32[2,1,32], index: 3, kind: input, shape index: {}]   ;;  %s1752_s4 = inlined_call_operand.vmem [shape: f32[2,1,32], index: 4, kind: input, shape index: {}]   ;;  %s1753_s5 = inlined_call_operand.vmem [shape: bf16[2,32,128], index: 5, kind: input, shape index: {}]   ;;  %s1754_s6 = inlined_call_operand.vmem [shape: f32[2,1,128], index: 6, kind: input, shape index: {}]   ;;  %s1755_s7 = inlined_call_operand.vmem [shape: bf16[2,128,32], index: 7, kind: input, shape index: {}]   ;;  %s1756_s8 = inlined_call_operand.vmem [shape: f32[2,1,32], index: 8, kind: input, shape index: {}]   ;;  %s1757_s9 = inlined_call_operand.vmem [shape: f32[1,32], index: 9, kind: input, shape index: {}]   ;;  %s1758_s10 = inlined_call_operand.vmem [shape: f32[1,32], index: 10, kind: input, shape index: {}]   ;;  %s1759_s11 = inlined_call_operand.hbm [shape: f32[32,32], index: 11, kind: output, shape index: {0}]   ;;  %s1760_s12 = inlined_call_operand.vmem [shape: f32[32,32], index: 12, kind: output, shape index: {1}]  }
   0x1   :  { %1762 = sst [smem:[#allocation8_spill]] %s1759_s11 }
   0x2   :  { %18 = vsyncpa [#allocation4], 0  ;;  %s1511_s21 = smov 0   ;;  %s1513_s22 = smov 0  }
   0x3   :  { %s1515_s23 = smov 0  }
   0x4 LB: > { %1763 = sst [smem:[#allocation6_spill]] %s1437_s22  ;;  %s33_s25 = sadd.s32 1, %s1437_s22  ;;  %s1441_s23 = sphi %s1515_s23, %s24_s23   ;;  %s1437_s22 = sphi %s1513_s22, %s1770_s22   ;;  %s1433_s21 = sphi %s1511_s21, %s1769_s21  }
   0x5   : > { %p34_p0 = scmp.ge.s32.totalorder %s33_s25, 2  ;;  %p1231_p1 = scmp.ge.s32.totalorder %s1441_s23, 1 }
   0x6   : > { %p431_p2 = scmp.lt.s32.totalorder %s1441_s23, 3 }
   0x7   : > { %s1772_s25 = smov (%p34_p0, %s33_s25), 0 }
   0x8   : > { %1764 = sst [smem:[#allocation7_spill]] %s1772_s25  ;;  %p432_p3 = pnand %p1231_p1, %p431_p2 }
   0x9   : > { %p501_p4 = scmp.lt.s32.totalorder (!%p432_p3), %s1433_s21, 1  ;;  %p1236_p5 = scmp.ne.s32.totalorder (!%p432_p3), %s1433_s21, 0 }
   0xa   : > { %435 = sbr.rel (%p432_p3) target bundleno = 1731 (0x6c3), region = 64 }
   0xf   : > { %s1534_s26 = scalar_select %p501_p4, %s1433_s21, 1 }
  0x10   : > { %534 = sbr.rel (%p1236_p5) target bundleno = 339 (0x153), region = 68 }
  0x11   : > { %s506_s14 = scalar_lea.vmem %s1752_s4, %s1534_s26  ;;  %s1264_s15 = sshll.u32 %s1534_s26, 4 }
  0x12   : > { %s514_s18 = scalar_lea.vmem %s1754_s6, %s1534_s26  ;;  %s1552_s24 = scalar_lea.vmem %s1753_s5, %s1264_s15 }
  0x13   : > { %s1265_s27 = sshll.u32 %s1534_s26, 6  ;;  %s522_s30 = scalar_lea.vmem %s1756_s8, %s1534_s26 }
  0x14   : > { %s1558_s22 = scalar_lea.vmem %s1755_s7, %s1265_s27 }
  0x15   : > { %v535_v0 = vld [vmem:[%s1748_s0] sm:$0xff]  ;;  %vm541_vm0 = vcmask 261120   ;;  %v537_v1 = vld [vmem:[%s1748_s0 + $0x10] sm:$0xff]  ;;  %v536_v2 = vld [vmem:[%s1748_s0 + $0x8] sm:$0xff] }
  0x16   : > { %v542_v3 = vsel %vm541_vm0, %v535_v0, 0.0  ;;  %v548_v4 = vsel %vm541_vm0, %v537_v1, 0.0  ;;  %v538_v5 = vld [vmem:[%s1748_s0 + $0x18] sm:$0xff]  ;;  %v545_v6 = vsel %vm541_vm0, %v536_v2, 0.0  ;;  %v1237_v41 = vld [vmem:[%s1749_s1] ss:$0 sm:$0xff] }
  0x17   : > { %543 = vadd.xlane.f32.xlu0 %v542_v3  ;;  %549 = vadd.xlane.f32.xlu1 %v548_v4  ;;  %v551_v7 = vsel %vm541_vm0, %v538_v5, 0.0  ;;  %v1238_v43 = vld [vmem:[%s1750_s2] ss:$0 sm:$0xff] }
  0x1b   : > { %546 = vadd.xlane.f32.xlu0 %v545_v6  ;;  %552 = vadd.xlane.f32.xlu1 %v551_v7 }
  0xa0   : > { %v544_v8 = vpop.xlane.xlu0 %543  ;;  %v550_v9 = vpop.xlane.xlu1 %549 }
  0xa1   : > { %v555_v10 = vmul.f32 0.03125, %v544_v8  ;;  %v557_v11 = vmul.f32 0.03125, %v550_v9 }
  0xa3   : > { %v559_v12 = vsub.f32 %v535_v0, %v555_v10  ;;  %v561_v13 = vsub.f32 %v537_v1, %v557_v11 }
  0xa4   : > { %v547_v14 = vpop.xlane.xlu0 %546  ;;  %v553_v15 = vpop.xlane.xlu1 %552 }
  0xa5   : > { %v556_v16 = vmul.f32 0.03125, %v547_v14  ;;  %v558_v17 = vmul.f32 0.03125, %v553_v15  ;;  %v563_v18 = vmul.f32 %v559_v12, %v559_v12  ;;  %v565_v19 = vmul.f32 %v561_v13, %v561_v13 }
  0xa7   : > { %v560_v20 = vsub.f32 %v536_v2, %v556_v16  ;;  %v562_v21 = vsub.f32 %v538_v5, %v558_v17  ;;  %v567_v22 = vsel %vm541_vm0, %v563_v18, 0.0  ;;  %v573_v23 = vsel %vm541_vm0, %v565_v19, 0.0 }
  0xa8   : > { %568 = vadd.xlane.f32.xlu0 %v567_v22 }
  0xa9   : > { %v564_v24 = vmul.f32 %v560_v20, %v560_v20  ;;  %v566_v25 = vmul.f32 %v562_v21, %v562_v21 }
  0xab   : > { %v570_v26 = vsel %vm541_vm0, %v564_v24, 0.0  ;;  %v576_v27 = vsel %vm541_vm0, %v566_v25, 0.0 }
  0xac   : > { %574 = vadd.xlane.f32.xlu0 %v573_v23  ;;  %571 = vadd.xlane.f32.xlu1 %v570_v26 }
  0xb0   : > { %577 = vadd.xlane.f32.xlu1 %v576_v27 }
 0x131   : > { %v569_v28 = vpop.xlane.xlu0 %568 }
 0x132   : > { %v579_v29 = vmul.f32 0.03125, %v569_v28 }
 0x134   : > { %v583_v30 = vadd.f32 1e-06, %v579_v29 }
 0x135   : > { %v572_v31 = vpop.xlane.xlu1 %571  ;;  %v575_v32 = vpop.xlane.xlu0 %574 }
 0x136   : > { %1341 = vrsqrt.f32 %v583_v30  ;;  %v580_v33 = vmul.f32 0.03125, %v572_v31  ;;  %v581_v34 = vmul.f32 0.03125, %v575_v32 }
 0x138   : > { %v584_v35 = vadd.f32 1e-06, %v580_v33  ;;  %v585_v36 = vadd.f32 1e-06, %v581_v34 }
 0x139   : > { %v578_v37 = vpop.xlane.xlu1 %577 }
 0x13a   : > { %1343 = vrsqrt.f32 %v584_v35  ;;  %v582_v38 = vmul.f32 0.03125, %v578_v37 }
 0x13b   : > { %1345 = vrsqrt.f32 %v585_v36 }
 0x13c   : > { %v586_v39 = vadd.f32 1e-06, %v582_v38 }
 0x13e   : > { %1347 = vrsqrt.f32 %v586_v39 }
 0x143   : > { %v1342_v40 = vpop.eup %1341 }
 0x144   : > { %v591_v42 = vmul.f32 %v1342_v40, %v559_v12 }
 0x146   : > { %v601_v44 = vmul.f32 %v1237_v41, %v591_v42 }
 0x147   : > { %v1344_v45 = vpop.eup %1343 }
 0x148   : > { %v1346_v46 = vpop.eup %1345  ;;  %v611_v47 = vadd.f32 %v1238_v43, %v601_v44  ;;  %v592_v48 = vmul.f32 %v1344_v45, %v560_v20 }
 0x149   : > { %v593_v49 = vmul.f32 %v1346_v46, %v561_v13 }
 0x14a   : > { %615 = vst.msk [vmem:[#allocation3] sm:$0xff] %vm541_vm0, %v611_v47  ;;  %619 = vst.msk [vmem:[#allocation2] sm:$0xff] %vm541_vm0, %v611_v47  ;;  %v602_v50 = vmul.f32 %v1237_v41, %v592_v48 }
 0x14b   : > { %v1348_v51 = vpop.eup %1347  ;;  %v603_v52 = vmul.f32 %v1237_v41, %v593_v49 }
 0x14c   : > { %v612_v53 = vadd.f32 %v1238_v43, %v602_v50  ;;  %v594_v54 = vmul.f32 %v1348_v51, %v562_v21 }
 0x14d   : > { %v613_v55 = vadd.f32 %v1238_v43, %v603_v52 }
 0x14e   : > { %616 = vst.msk [vmem:[#allocation3 + $0x8] sm:$0xff] %vm541_vm0, %v612_v53  ;;  %620 = vst.msk [vmem:[#allocation2 + $0x8] sm:$0xff] %vm541_vm0, %v612_v53  ;;  %v604_v56 = vmul.f32 %v1237_v41, %v594_v54 }
 0x14f   : > { %617 = vst.msk [vmem:[#allocation3 + $0x10] sm:$0xff] %vm541_vm0, %v613_v55  ;;  %621 = vst.msk [vmem:[#allocation2 + $0x10] sm:$0xff] %vm541_vm0, %v613_v55 }
 0x150   : > { %v614_v57 = vadd.f32 %v1238_v43, %v604_v56 }
 0x152   : > { %618 = vst.msk [vmem:[#allocation3 + $0x18] sm:$0xff] %vm541_vm0, %v614_v57  ;;  %622 = vst.msk [vmem:[#allocation2 + $0x18] sm:$0xff] %vm541_vm0, %v614_v57 }
 0x153 PF: > { %v1599_v58 = vld [vmem:[#allocation2] sm:$0xff]  ;;  %vm629_vm1 = vcmask 261120   ;;  %s1765_s17 = scalar_lea.vmem %s1751_s3, %s1534_s26  ;;  %p1255_p6 = scmp.ne.s32.totalorder %s1433_s21, 1 }
 0x154   : > { %v630_v61 = vsel %vm629_vm1, %v1599_v58, 0.0  ;;  %v1239_v35 = vld [vmem:[%s1765_s17] ss:$0 sm:$0xff] }
 0x155   : > { %v1603_v60 = vld [vmem:[#allocation2 + $0x8] sm:$0xff]  ;;  %631 = vadd.xlane.f32.xlu0 %v630_v61  ;;  %v1240_v37 = vld [vmem:[%s506_s14] ss:$0 sm:$0xff] }
 0x156   : > { %v1601_v59 = vld [vmem:[#allocation2 + $0x10] sm:$0xff]  ;;  %v633_v0 = vsel %vm629_vm1, %v1603_v60, 0.0 }
 0x157   : > { %v636_v62 = vsel %vm629_vm1, %v1601_v59, 0.0 }
 0x158   : > { %637 = vadd.xlane.f32.xlu1 %v636_v62 }
 0x159   : > { %v1609_v63 = vld [vmem:[#allocation2 + $0x18] sm:$0xff]  ;;  %634 = vadd.xlane.f32.xlu0 %v633_v0 }
 0x15a   : > { %v639_v1 = vsel %vm629_vm1, %v1609_v63, 0.0 }
 0x15c   : > { %640 = vadd.xlane.f32.xlu1 %v639_v1 }
 0x1de   : > { %v632_v2 = vpop.xlane.xlu0 %631 }
 0x1df   : > { %v643_v4 = vmul.f32 0.03125, %v632_v2 }
 0x1e1   : > { %v638_v3 = vpop.xlane.xlu1 %637  ;;  %v647_v6 = vsub.f32 %v1599_v58, %v643_v4 }
 0x1e2   : > { %v645_v5 = vmul.f32 0.03125, %v638_v3  ;;  %v635_v8 = vpop.xlane.xlu0 %634 }
 0x1e3   : > { %v644_v10 = vmul.f32 0.03125, %v635_v8  ;;  %v651_v12 = vmul.f32 %v647_v6, %v647_v6 }
 0x1e4   : > { %v649_v7 = vsub.f32 %v1601_v59, %v645_v5 }
 0x1e5   : > { %v641_v9 = vpop.xlane.xlu1 %640  ;;  %v648_v14 = vsub.f32 %v1603_v60, %v644_v10  ;;  %v655_v16 = vsel %vm629_vm1, %v651_v12, 0.0 }
 0x1e6   : > { %v646_v11 = vmul.f32 0.03125, %v641_v9  ;;  %v653_v13 = vmul.f32 %v649_v7, %v649_v7  ;;  %656 = vadd.xlane.f32.xlu0 %v655_v16  ;;  %v1349_v16 = vld [vmem:[%s1552_s24 + $0x8] sm:$0xff]  }
 0x1e7   : > { %v652_v18 = vmul.f32 %v648_v14, %v648_v14  ;;  %1280 = vmatprep.subr.bf16.mxu0 %v1349_v16 }
 0x1e8   : > { %v650_v15 = vsub.f32 %v1609_v63, %v646_v11  ;;  %v661_v17 = vsel %vm629_vm1, %v653_v13, 0.0  ;;  %1281 = vmatpush3.bf16.msra.mxu0 %v1349_v16 }
 0x1e9   : > { %v658_v20 = vsel %vm629_vm1, %v652_v18, 0.0 }
 0x1ea   : > { %v654_v19 = vmul.f32 %v650_v15, %v650_v15  ;;  %662 = vadd.xlane.f32.xlu0 %v661_v17  ;;  %659 = vadd.xlane.f32.xlu1 %v658_v20  ;;  %v1350_v17 = vld [vmem:[%s1552_s24] sm:$0xff]  }
 0x1eb   : > { %1282 = vmatprep.subr.bf16.mxu0 %v1350_v17 }
 0x1ec   : > { %v664_v21 = vsel %vm629_vm1, %v654_v19, 0.0  ;;  %1283 = vmatpush3.bf16.msra.mxu0 %v1350_v17 }
 0x1ee   : > { %665 = vadd.xlane.f32.xlu1 %v664_v21 }
 0x26f   : > { %v657_v22 = vpop.xlane.xlu0 %656 }
 0x270   : > { %v667_v23 = vmul.f32 0.03125, %v657_v22 }
 0x272   : > { %v671_v24 = vadd.f32 1e-06, %v667_v23 }
 0x273   : > { %v660_v25 = vpop.xlane.xlu1 %659  ;;  %v663_v26 = vpop.xlane.xlu0 %662 }
 0x274   : > { %1359 = vrsqrt.f32 %v671_v24  ;;  %v668_v27 = vmul.f32 0.03125, %v660_v25  ;;  %v669_v28 = vmul.f32 0.03125, %v663_v26 }
 0x276   : > { %v672_v29 = vadd.f32 1e-06, %v668_v27  ;;  %v673_v30 = vadd.f32 1e-06, %v669_v28 }
 0x277   : > { %v666_v31 = vpop.xlane.xlu1 %665 }
 0x278   : > { %1361 = vrsqrt.f32 %v672_v29  ;;  %v670_v32 = vmul.f32 0.03125, %v666_v31 }
 0x279   : > { %1363 = vrsqrt.f32 %v673_v30 }
 0x27a   : > { %v674_v33 = vadd.f32 1e-06, %v670_v32 }
 0x27c   : > { %1365 = vrsqrt.f32 %v674_v33 }
 0x281   : > { %v1360_v34 = vpop.eup %1359 }
 0x282   : > { %v679_v36 = vmul.f32 %v1360_v34, %v647_v6 }
 0x284   : > { %v689_v38 = vmul.f32 %v1239_v35, %v679_v36 }
 0x285   : > { %v1362_v39 = vpop.eup %1361 }
 0x286   : > { %v1364_v40 = vpop.eup %1363  ;;  %v699_v41 = vadd.f32 %v1240_v37, %v689_v38  ;;  %v680_v42 = vmul.f32 %v1362_v39, %v648_v14 }
 0x287   : > { %v681_v43 = vmul.f32 %v1364_v40, %v649_v7  ;;  %v1351_v40 = vld [vmem:[%s1558_s22 + $0x38] sm:$0xff]  }
 0x288   : > { %v1634_v44 = vadd.f32 %v699_v41, %v1599_v58  ;;  %v690_v45 = vmul.f32 %v1239_v35, %v680_v42  ;;  %1288 = vmatprep.subr.bf16.mxu1 %v1351_v40  ;;  %v1352_v41 = vld [vmem:[%s1558_s22 + $0x30] sm:$0xff]   ;;  %v1353_v42 = vld [vmem:[%s1558_s22 + $0x28] sm:$0xff]  }
 0x289   : > { %v1366_v46 = vpop.eup %1365  ;;  %v691_v47 = vmul.f32 %v1239_v35, %v681_v43  ;;  %1289 = vmatpush3.bf16.msra.mxu1 %v1351_v40  ;;  %v1354_v43 = vld [vmem:[%s1558_s22 + $0x20] sm:$0xff]  }
 0x28a   : > { %v707_v48 = vsel %vm629_vm1, %v1634_v44, 0.0  ;;  %v700_v49 = vadd.f32 %v1240_v37, %v690_v45  ;;  %v682_v50 = vmul.f32 %v1366_v46, %v650_v15  ;;  %1290 = vmatprep.subr.bf16.mxu1 %v1352_v41  ;;  %v1355_v45 = vld [vmem:[%s1558_s22 + $0x18] sm:$0xff]   ;;  %v1356_v46 = vld [vmem:[%s1558_s22 + $0x10] sm:$0xff]  }
 0x28b   : > { %708 = vadd.xlane.f32.xlu0 %v707_v48  ;;  %v701_v51 = vadd.f32 %v1240_v37, %v691_v47  ;;  %v1357_v47 = vld [vmem:[%s1558_s22 + $0x8] sm:$0xff]   ;;  %v1358_v48 = vld [vmem:[%s1558_s22] sm:$0xff]  }
 0x28c   : > { %v1639_v52 = vadd.f32 %v700_v49, %v1603_v60  ;;  %v692_v53 = vmul.f32 %v1239_v35, %v682_v50  ;;  %v1241_v49 = vld [vmem:[%s514_s18] ss:$0 sm:$0xff] }
 0x28d   : > { %v1642_v54 = vadd.f32 %v701_v51, %v1601_v59  ;;  %1291 = vmatpush3.bf16.msra.mxu1 %v1352_v41 }
 0x28e   : > { %v710_v55 = vsel %vm629_vm1, %v1639_v52, 0.0  ;;  %v702_v56 = vadd.f32 %v1240_v37, %v692_v53  ;;  %1292 = vmatprep.subr.bf16.mxu1 %v1353_v42 }
 0x28f   : > { %711 = vadd.xlane.f32.xlu1 %v710_v55  ;;  %v713_v57 = vsel %vm629_vm1, %v1642_v54, 0.0 }
 0x290   : > { %714 = vadd.xlane.f32.xlu0 %v713_v57  ;;  %v1649_v58 = vadd.f32 %v702_v56, %v1609_v63 }
 0x291   : > { %1293 = vmatpush3.bf16.msra.mxu1 %v1353_v42 }
 0x292   : > { %v716_v60 = vsel %vm629_vm1, %v1649_v58, 0.0  ;;  %1294 = vmatprep.subr.bf16.mxu1 %v1354_v43 }
 0x293   : > { %717 = vadd.xlane.f32.xlu1 %v716_v60 }
 0x295   : > { %1295 = vmatpush3.bf16.msra.mxu1 %v1354_v43 }
 0x296   : > { %1296 = vmatprep.subr.bf16.mxu1 %v1355_v45 }
 0x299   : > { %1297 = vmatpush3.bf16.msra.mxu1 %v1355_v45 }
 0x29a   : > { %1298 = vmatprep.subr.bf16.mxu1 %v1356_v46 }
 0x29d   : > { %1299 = vmatpush3.bf16.msra.mxu1 %v1356_v46 }
 0x29e   : > { %1300 = vmatprep.subr.bf16.mxu1 %v1357_v47 }
 0x2a1   : > { %1301 = vmatpush3.bf16.msra.mxu1 %v1357_v47 }
 0x2a2   : > { %1302 = vmatprep.subr.bf16.mxu1 %v1358_v48 }
 0x2a5   : > { %1303 = vmatpush3.bf16.msra.mxu1 %v1358_v48 }
 0x314   : > { %v709_v61 = vpop.xlane.xlu0 %708 }
 0x315   : > { %v719_v62 = vmul.f32 0.03125, %v709_v61 }
 0x317   : > { %v723_v59 = vsub.f32 %v1634_v44, %v719_v62 }
 0x318   : > { %v712_v0 = vpop.xlane.xlu1 %711 }
 0x319   : > { %v720_v1 = vmul.f32 0.03125, %v712_v0  ;;  %v715_v2 = vpop.xlane.xlu0 %714  ;;  %v727_v3 = vmul.f32 %v723_v59, %v723_v59 }
 0x31a   : > { %v721_v4 = vmul.f32 0.03125, %v715_v2 }
 0x31b   : > { %v724_v5 = vsub.f32 %v1639_v52, %v720_v1  ;;  %v731_v6 = vsel %vm629_vm1, %v727_v3, 0.0 }
 0x31c   : > { %v725_v63 = vsub.f32 %v1642_v54, %v721_v4  ;;  %v718_v7 = vpop.xlane.xlu1 %717  ;;  %732 = vadd.xlane.f32.xlu0 %v731_v6 }
 0x31d   : > { %v722_v8 = vmul.f32 0.03125, %v718_v7  ;;  %v728_v9 = vmul.f32 %v724_v5, %v724_v5 }
 0x31e   : > { %v729_v10 = vmul.f32 %v725_v63, %v725_v63 }
 0x31f   : > { %v726_v11 = vsub.f32 %v1649_v58, %v722_v8  ;;  %v734_v12 = vsel %vm629_vm1, %v728_v9, 0.0 }
 0x320   : > { %735 = vadd.xlane.f32.xlu1 %v734_v12  ;;  %v737_v13 = vsel %vm629_vm1, %v729_v10, 0.0 }
 0x321   : > { %738 = vadd.xlane.f32.xlu0 %v737_v13  ;;  %v730_v14 = vmul.f32 %v726_v11, %v726_v11 }
 0x323   : > { %v740_v15 = vsel %vm629_vm1, %v730_v14, 0.0 }
 0x324   : > { %741 = vadd.xlane.f32.xlu1 %v740_v15 }
 0x3a5   : > { %v733_v18 = vpop.xlane.xlu0 %732 }
 0x3a6   : > { %v743_v19 = vmul.f32 0.03125, %v733_v18 }
 0x3a8   : > { %v747_v20 = vadd.f32 1e-06, %v743_v19  ;;  %v1246_v19 = vld [vmem:[%s522_s30] ss:$0 sm:$0xff] }
 0x3a9   : > { %v736_v21 = vpop.xlane.xlu1 %735 }
 0x3aa   : > { %v744_v22 = vmul.f32 0.03125, %v736_v21  ;;  %v739_v23 = vpop.xlane.xlu0 %738  ;;  %1367 = vrsqrt.f32 %v747_v20 }
 0x3ab   : > { %v745_v24 = vmul.f32 0.03125, %v739_v23 }
 0x3ac   : > { %v748_v25 = vadd.f32 1e-06, %v744_v22 }
 0x3ad   : > { %v749_v26 = vadd.f32 1e-06, %v745_v24  ;;  %v742_v27 = vpop.xlane.xlu1 %741 }
 0x3ae   : > { %1369 = vrsqrt.f32 %v748_v25  ;;  %v746_v28 = vmul.f32 0.03125, %v742_v27 }
 0x3af   : > { %1371 = vrsqrt.f32 %v749_v26 }
 0x3b0   : > { %v750_v29 = vadd.f32 1e-06, %v746_v28 }
 0x3b2   : > { %1373 = vrsqrt.f32 %v750_v29 }
 0x3b7   : > { %v1368_v30 = vpop.eup %1367 }
 0x3b8   : > { %v755_v32 = vmul.f32 %v1368_v30, %v723_v59 }
 0x3bb   : > { %v1370_v31 = vpop.eup %1369 }
 0x3bc   : > { %v756_v33 = vmul.f32 %v1370_v31, %v724_v5  ;;  %v1372_v34 = vpop.eup %1371 }
 0x3bd   : > { %v757_v37 = vmul.f32 %v1372_v34, %v725_v63 }
 0x3be   : > { %v759_v35 = vpack.c.bf16 %v756_v33, %v755_v32 }
 0x3bf   : > { %v1374_v36 = vpop.eup %1373 }
 0x3c0   : > { %1284 = vmatprep.mubr.msk.bf16.mxu0 %vm629_vm1, %v759_v35  ;;  %v758_v38 = vmul.f32 %v1374_v36, %v726_v11 }
 0x3c2   : > { %v760_v39 = vpack.c.bf16 %v758_v38, %v757_v37 }
 0x3c4   : > { %1285 = vmatmul.mubr.msk.bf16.vlgmr.msra.gmra.mxu0 %vm629_vm1, %v760_v39 }
 0x484   : > { %v1286_v50 = vpop.f32.mrf.mxu0 }
 0x485   : > { %v833_v51 = vadd.f32 %v1286_v50, %v1241_v49 }
 0x486   : > { %v824_v53 = vpop.f32.mrf.mxu0 }
 0x487   : > { %v825_v55 = vadd.f32 %v1241_v49, %v824_v53  ;;  %v845_v56 = vmul.f32 0.70710677, %v833_v51  ;;  %v841_v12 = vmul.f32 0.5, %v833_v51 }
 0x488   : > { %v1287_v57 = vpop.f32.mrf.mxu0 }
 0x489   : > { %v843_v60 = vmul.f32 0.70710677, %v825_v55  ;;  %v836_v61 = vadd.f32 %v1287_v57, %v1241_v49  ;;  %v839_v9 = vmul.f32 0.5, %v825_v55 }
 0x48a   : > { %v827_v62 = vpop.f32.mrf.mxu0 }
 0x48b   : > { %1375 = verf.f32 %v843_v60  ;;  %v846_v59 = vmul.f32 0.70710677, %v836_v61  ;;  %v828_v0 = vadd.f32 %v1241_v49, %v827_v62  ;;  %v842_v8 = vmul.f32 0.5, %v836_v61 }
 0x48c   : > { %1377 = verf.f32 %v845_v56 }
 0x48d   : > { %1379 = verf.f32 %v846_v59  ;;  %v844_v1 = vmul.f32 0.70710677, %v828_v0  ;;  %v840_v10 = vmul.f32 0.5, %v828_v0 }
 0x48f   : > { %1381 = verf.f32 %v844_v1 }
 0x498   : > { %v1376_v2 = vpop.eup %1375 }
 0x499   : > { %v1378_v3 = vpop.eup %1377  ;;  %v851_v6 = vadd.f32 1.0, %v1376_v2 }
 0x49a   : > { %v1380_v4 = vpop.eup %1379  ;;  %v853_v7 = vadd.f32 1.0, %v1378_v3 }
 0x49b   : > { %v854_v5 = vadd.f32 1.0, %v1380_v4  ;;  %v855_v14 = vmul.f32 %v851_v6, %v839_v9 }
 0x49c   : > { %v1382_v63 = vpop.eup %1381  ;;  %v857_v16 = vmul.f32 %v853_v7, %v841_v12 }
 0x49d   : > { %v852_v11 = vadd.f32 1.0, %v1382_v63  ;;  %v858_v13 = vmul.f32 %v854_v5, %v842_v8 }
 0x49f   : > { %v856_v15 = vmul.f32 %v852_v11, %v840_v10  ;;  %v860_v18 = vpack.c.bf16 %v858_v13, %v857_v16 }
 0x4a1   : > { %v859_v17 = vpack.c.bf16 %v856_v15, %v855_v14 }
 0x4a3   : > { %1304 = vmatprep.mubr.bf16.mxu1 %v859_v17 }
 0x4a4   : > { %1305 = vmatmul.mubr.bf16.vlgmr.msra.gmra.mxu1 %v860_v18 }
 0x564   : > { %v1306_v20 = vpop.f32.mrf.mxu1 }
 0x565   : > { %v975_v21 = vadd.f32 %v1306_v20, %v1246_v19 }
 0x566   : > { %v966_v22 = vpop.f32.mrf.mxu1 }
 0x567   : > { %v983_v23 = vadd.f32 %v975_v21, %v1642_v54  ;;  %v967_v24 = vadd.f32 %v1246_v19, %v966_v22 }
 0x568   : > { %v1307_v25 = vpop.f32.mrf.mxu1 }
 0x569   : > { %987 = vst.msk [vmem:[#allocation2 + $0x10] sm:$0xff] %vm629_vm1, %v983_v23  ;;  %v981_v26 = vadd.f32 %v967_v24, %v1634_v44  ;;  %v978_v27 = vadd.f32 %v1307_v25, %v1246_v19 }
 0x56a   : > { %v969_v28 = vpop.f32.mrf.mxu1 }
 0x56b   : > { %985 = vst.msk [vmem:[#allocation2] sm:$0xff] %vm629_vm1, %v981_v26  ;;  %v984_v29 = vadd.f32 %v978_v27, %v1649_v58  ;;  %v970_v30 = vadd.f32 %v1246_v19, %v969_v28  ;;  %992 = sbr.rel (%p1255_p6) target bundleno = 1709 (0x6ad), region = 72 }
 0x56d   : > { %988 = vst.msk [vmem:[#allocation2 + $0x18] sm:$0xff] %vm629_vm1, %v984_v29  ;;  %v982_v31 = vadd.f32 %v970_v30, %v1639_v52 }
 0x56f   : > { %986 = vst.msk [vmem:[#allocation2 + $0x8] sm:$0xff] %vm629_vm1, %v982_v31 }
 0x570   : > { %v995_v54 = vsel %vm629_vm1, %v981_v26, 0.0  ;;  %v1001_v44 = vsel %vm629_vm1, %v983_v23, 0.0  ;;  %v998_v32 = vsel %vm629_vm1, %v982_v31, 0.0  ;;  %v1004_v58 = vsel %vm629_vm1, %v984_v29, 0.0  ;;  %v1256_v6 = vld [vmem:[%s1757_s9] ss:$0 sm:$0xff] }
 0x571   : > { %996 = vadd.xlane.f32.xlu0 %v995_v54  ;;  %1002 = vadd.xlane.f32.xlu1 %v1001_v44  ;;  %v1257_v7 = vld [vmem:[%s1758_s10] ss:$0 sm:$0xff] }
 0x575   : > { %999 = vadd.xlane.f32.xlu0 %v998_v32  ;;  %1005 = vadd.xlane.f32.xlu1 %v1004_v58 }
 0x5fa   : > { %v997_v33 = vpop.xlane.xlu0 %996  ;;  %v1003_v34 = vpop.xlane.xlu1 %1002 }
 0x5fb   : > { %v1007_v52 = vmul.f32 0.03125, %v997_v33  ;;  %v1009_v35 = vmul.f32 0.03125, %v1003_v34 }
 0x5fd   : > { %v1011_v36 = vsub.f32 %v981_v26, %v1007_v52  ;;  %v1013_v37 = vsub.f32 %v983_v23, %v1009_v35 }
 0x5fe   : > { %v1000_v38 = vpop.xlane.xlu0 %999  ;;  %v1006_v39 = vpop.xlane.xlu1 %1005 }
 0x5ff   : > { %v1008_v40 = vmul.f32 0.03125, %v1000_v38  ;;  %v1010_v41 = vmul.f32 0.03125, %v1006_v39  ;;  %v1015_v42 = vmul.f32 %v1011_v36, %v1011_v36  ;;  %v1017_v43 = vmul.f32 %v1013_v37, %v1013_v37 }
 0x601   : > { %v1012_v45 = vsub.f32 %v982_v31, %v1008_v40  ;;  %v1014_v46 = vsub.f32 %v984_v29, %v1010_v41  ;;  %v1019_v47 = vsel %vm629_vm1, %v1015_v42, 0.0  ;;  %v1025_v48 = vsel %vm629_vm1, %v1017_v43, 0.0 }
 0x602   : > { %1020 = vadd.xlane.f32.xlu0 %v1019_v47 }
 0x603   : > { %v1016_v49 = vmul.f32 %v1012_v45, %v1012_v45  ;;  %v1018_v50 = vmul.f32 %v1014_v46, %v1014_v46 }
 0x605   : > { %v1022_v51 = vsel %vm629_vm1, %v1016_v49, 0.0  ;;  %v1028_v53 = vsel %vm629_vm1, %v1018_v50, 0.0 }
 0x606   : > { %1026 = vadd.xlane.f32.xlu0 %v1025_v48  ;;  %1023 = vadd.xlane.f32.xlu1 %v1022_v51 }
 0x60a   : > { %1029 = vadd.xlane.f32.xlu1 %v1028_v53 }
 0x68b   : > { %v1021_v55 = vpop.xlane.xlu0 %1020 }
 0x68c   : > { %v1031_v56 = vmul.f32 0.03125, %v1021_v55 }
 0x68e   : > { %v1035_v57 = vadd.f32 1e-06, %v1031_v56 }
 0x68f   : > { %v1024_v60 = vpop.xlane.xlu1 %1023  ;;  %v1027_v61 = vpop.xlane.xlu0 %1026 }
 0x690   : > { %1383 = vrsqrt.f32 %v1035_v57  ;;  %v1032_v62 = vmul.f32 0.03125, %v1024_v60  ;;  %v1033_v59 = vmul.f32 0.03125, %v1027_v61 }
 0x692   : > { %v1036_v0 = vadd.f32 1e-06, %v1032_v62  ;;  %v1037_v1 = vadd.f32 1e-06, %v1033_v59 }
 0x693   : > { %v1030_v2 = vpop.xlane.xlu1 %1029 }
 0x694   : > { %1385 = vrsqrt.f32 %v1036_v0  ;;  %v1034_v3 = vmul.f32 0.03125, %v1030_v2 }
 0x695   : > { %1387 = vrsqrt.f32 %v1037_v1 }
 0x696   : > { %v1038_v4 = vadd.f32 1e-06, %v1034_v3 }
 0x698   : > { %1389 = vrsqrt.f32 %v1038_v4 }
 0x69d   : > { %v1384_v5 = vpop.eup %1383 }
 0x69e   : > { %v1043_v63 = vmul.f32 %v1384_v5, %v1011_v36 }
 0x6a0   : > { %v1053_v8 = vmul.f32 %v1256_v6, %v1043_v63 }
 0x6a1   : > { %v1386_v9 = vpop.eup %1385 }
 0x6a2   : > { %v1388_v10 = vpop.eup %1387  ;;  %v1063_v11 = vadd.f32 %v1257_v7, %v1053_v8  ;;  %v1044_v12 = vmul.f32 %v1386_v9, %v1012_v45 }
 0x6a3   : > { %v1045_v13 = vmul.f32 %v1388_v10, %v1013_v37 }
 0x6a4   : > { %1067 = vst.msk [vmem:[%s1760_s12] sm:$0xff] %vm629_vm1, %v1063_v11  ;;  %v1054_v14 = vmul.f32 %v1256_v6, %v1044_v12 }
 0x6a5   : > { %v1390_v15 = vpop.eup %1389  ;;  %v1055_v16 = vmul.f32 %v1256_v6, %v1045_v13 }
 0x6a6   : > { %v1064_v17 = vadd.f32 %v1257_v7, %v1054_v14  ;;  %v1046_v18 = vmul.f32 %v1390_v15, %v1014_v46 }
 0x6a7   : > { %v1065_v19 = vadd.f32 %v1257_v7, %v1055_v16 }
 0x6a8   : > { %1068 = vst.msk [vmem:[%s1760_s12 + $0x8] sm:$0xff] %vm629_vm1, %v1064_v17  ;;  %v1056_v20 = vmul.f32 %v1256_v6, %v1046_v18 }
 0x6a9   : > { %1069 = vst.msk [vmem:[%s1760_s12 + $0x10] sm:$0xff] %vm629_vm1, %v1065_v19 }
 0x6aa   : > { %v1066_v21 = vadd.f32 %v1257_v7, %v1056_v20 }
 0x6ac   : > { %1070 = vst.msk [vmem:[%s1760_s12 + $0x18] sm:$0xff] %vm629_vm1, %v1066_v21 }
 0x6ad PF: > { %s1766_s19 = sadd.s32 4294967295, %s1441_s23   ;;  %s1443_s24 = smov [#allocation3]  }
 0x6ae   : > { %p1724_p7 = scmp.eq.s32.totalorder %s1766_s19, 1  ;;  %s1085_s14 = sshll.u32 %s1443_s24, 4  ;;  %s1086_s14 = int_to_ptr.vmem [resolvable:$true] %s1085_s14 }
 0x6af   : > { %s1391_s22 = scalar_lea.vmem %s1086_s14, 512  ;;  %p1398_p11 = scmp.lt.s32.totalorder %s1086_s14, %s1086_s14 }
 0x6b0   : > { %p1392_p8 = scmp.ne.s32.totalorder %s1086_s14, %s1391_s22  ;;  %p1399_p12 = scmp.lt.s32.totalorder %s1391_s22, %s1391_s22 }
 0x6b2   : > { %p1393_p9 = pnand %p1392_p8, %p1724_p7  ;;  %p1400_p13 = por %p1399_p12, %p1398_p11 }
 0x6b4   : > { %p1394_p10 = pneg %p1393_p9 }
 0x6b6   : > { %p1401_p0 = pnand %p1400_p13, %p1394_p10 }
 0x6b8   : > { %1404 = shalt.err (!%p1401_p0)
}
 0x6b9   : > { %s1444_s18 = smov 128   ;;  %s1445_s21 = smov 8  }
 0x6ba   : > { %s1768_s11 = sld [smem:[#allocation8_spill]] }
 0x6c0   : > { %1309 = dma.vmem_to_hbm [thread:$0]  (%p1724_p7), %s1086_s14, 512, %s1768_s11, [#allocation4], %s1444_s18, %s1444_s18, %s1445_s21  }
 0x6c1   : > { %1428 = dma.done.wait (%p1724_p7), [#allocation4], 512  }
 0x6c2   : > { %1430 = vsyncadd (%p1724_p7), [#allocation4], 4294966784 }
 0x6c3 PF: > { %s24_s23 = sadd.s32 1, %s1441_s23   ;;  %s1769_s21 = sld [smem:[#allocation6_spill]] }
 0x6c4   : > { %p21_p1 = scmp.ge.s32.totalorder %s24_s23, 4   ;;  %s1770_s22 = sld [smem:[#allocation7_spill]] }
 0x6c6   :  { %23 = sbr.rel (!%p21_p1) target bundleno = 4 (0x4), region = 130 }
 0x6cb   :  { %1113 = vsyncpa [#allocation4], 1 }
 0x6cc   :  { %1115 = vsyncpa [#allocation4 + $0x1], 1 }

// kernel: mtgrootv_3d_forward.4
= control target key start
LH: loop header
LB: loop body
LE: loop exit
PB: predicated region body
PF: predicated region fallthrough
CT: control target
= control target key end

     0   :  { %s2140_s30 = smov 0   ;;  %s2142_s10 = smov 0   ;;  %s3092_s0 = inlined_call_operand.vmem [shape: f32[128,16], index: 0, kind: input, shape index: {}]   ;;  %s3093_s1 = inlined_call_operand.vmem [shape: f32[2,1,16], index: 1, kind: input, shape index: {}]   ;;  %s3094_s2 = inlined_call_operand.vmem [shape: f32[2,1,16], index: 2, kind: input, shape index: {}]   ;;  %s3095_s3 = inlined_call_operand.vmem [shape: bf16[2,16,64], index: 3, kind: input, shape index: {}]   ;;  %s3096_s4 = inlined_call_operand.vmem [shape: f32[2,1,64], index: 4, kind: input, shape index: {}]   ;;  %s3097_s5 = inlined_call_operand.vmem [shape: bf16[2,64,16], index: 5, kind: input, shape index: {}]   ;;  %s3098_s6 = inlined_call_operand.vmem [shape: f32[2,1,16], index: 6, kind: input, shape index: {}]   ;;  %s3099_s7 = inlined_call_operand.vmem [shape: f32[1,16], index: 7, kind: input, shape index: {}]   ;;  %s3100_s8 = inlined_call_operand.vmem [shape: f32[1,16], index: 8, kind: input, shape index: {}]   ;;  %s3101_s9 = inlined_call_operand.vmem [shape: f32[128,16], index: 9, kind: output, shape index: {}]  }
   0x1   :  { %s2144_s11 = smov 0  }
   0x2 LB: > { %s28_s12 = sadd.s32 1, %s2084_s10  ;;  %p1806_p0 = scmp.ge.s32.totalorder %s2088_s11, 1  ;;  %s2088_s11 = sphi %s2144_s11, %s19_s11   ;;  %s2084_s10 = sphi %s2142_s10, %s3104_s10   ;;  %s2080_s30 = sphi %s2140_s30, %s3103_s30  }
   0x3   : > { %p29_p1 = scmp.ge.s32.totalorder %s28_s12, 2  ;;  %p352_p2 = scmp.lt.s32.totalorder %s2088_s11, 3 }
   0x5   : > { %s3106_s12 = smov (%p29_p1, %s28_s12), 0  ;;  %p353_p3 = pnand %p1806_p0, %p352_p2 }
   0x6   : > { %p416_p4 = scmp.lt.s32.totalorder (!%p353_p3), %s2080_s30, 1  ;;  %p1811_p5 = scmp.ne.s32.totalorder (!%p353_p3), %s2080_s30, 0 }
   0x7   : > { %356 = sbr.rel (%p353_p3) target bundleno = 1447 (0x5a7), region = 56 }
   0xc   : > { %s2162_s13 = scalar_select %p416_p4, %s2080_s30, 1 }
   0xd   : > { %448 = sbr.rel (%p1811_p5) target bundleno = 27 (0x1b), region = 60 }
   0xe   : > { %s421_s19 = scalar_lea.vmem %s3094_s2, %s2162_s13  ;;  %s1844_s20 = sshll.u32 %s2162_s13, 3 }
   0xf   : > { %s429_s23 = scalar_lea.vmem %s3096_s4, %s2162_s13  ;;  %s2180_s26 = scalar_lea.vmem %s3095_s3, %s1844_s20 }
  0x10   : > { %s1845_s27 = sshll.u32 %s2162_s13, 5  ;;  %s437_s17 = scalar_lea.vmem %s3098_s6, %s2162_s13 }
  0x11   : > { %s2186_s14 = scalar_lea.vmem %s3097_s5, %s1845_s27 }
  0x12   : > { %v449_v0 = vld [vmem:[%s3092_s0] sm:$0xff]  ;;  %vm465_vm0 = vcmask 130048   ;;  %v450_v1 = vld [vmem:[%s3092_s0 + $0x8] sm:$0xff]  ;;  %v451_v2 = vld [vmem:[%s3092_s0 + $0x10] sm:$0xff] }
  0x13   : > { %466 = vst.msk [vmem:[#allocation2] sm:$0xff] %vm465_vm0, %v449_v0  ;;  %467 = vst.msk [vmem:[#allocation2 + $0x8] sm:$0xff] %vm465_vm0, %v450_v1  ;;  %v452_v3 = vld [vmem:[%s3092_s0 + $0x18] sm:$0xff]  ;;  %v453_v4 = vld [vmem:[%s3092_s0 + $0x20] sm:$0xff] }
  0x14   : > { %468 = vst.msk [vmem:[#allocation2 + $0x10] sm:$0xff] %vm465_vm0, %v451_v2  ;;  %v454_v5 = vld [vmem:[%s3092_s0 + $0x28] sm:$0xff]  ;;  %469 = vst.msk [vmem:[#allocation2 + $0x18] sm:$0xff] %vm465_vm0, %v452_v3  ;;  %v455_v6 = vld [vmem:[%s3092_s0 + $0x30] sm:$0xff] }
  0x15   : > { %470 = vst.msk [vmem:[#allocation2 + $0x20] sm:$0xff] %vm465_vm0, %v453_v4  ;;  %471 = vst.msk [vmem:[#allocation2 + $0x28] sm:$0xff] %vm465_vm0, %v454_v5  ;;  %v456_v7 = vld [vmem:[%s3092_s0 + $0x38] sm:$0xff]  ;;  %v457_v8 = vld [vmem:[%s3092_s0 + $0x40] sm:$0xff] }
  0x16   : > { %472 = vst.msk [vmem:[#allocation2 + $0x30] sm:$0xff] %vm465_vm0, %v455_v6  ;;  %473 = vst.msk [vmem:[#allocation2 + $0x38] sm:$0xff] %vm465_vm0, %v456_v7  ;;  %v458_v9 = vld [vmem:[%s3092_s0 + $0x48] sm:$0xff]  ;;  %v459_v10 = vld [vmem:[%s3092_s0 + $0x50] sm:$0xff] }
  0x17   : > { %474 = vst.msk [vmem:[#allocation2 + $0x40] sm:$0xff] %vm465_vm0, %v457_v8  ;;  %v460_v11 = vld [vmem:[%s3092_s0 + $0x58] sm:$0xff]  ;;  %475 = vst.msk [vmem:[#allocation2 + $0x48] sm:$0xff] %vm465_vm0, %v458_v9  ;;  %v461_v12 = vld [vmem:[%s3092_s0 + $0x60] sm:$0xff] }
  0x18   : > { %476 = vst.msk [vmem:[#allocation2 + $0x50] sm:$0xff] %vm465_vm0, %v459_v10  ;;  %477 = vst.msk [vmem:[#allocation2 + $0x58] sm:$0xff] %vm465_vm0, %v460_v11  ;;  %v462_v13 = vld [vmem:[%s3092_s0 + $0x68] sm:$0xff]  ;;  %v463_v14 = vld [vmem:[%s3092_s0 + $0x70] sm:$0xff] }
  0x19   : > { %478 = vst.msk [vmem:[#allocation2 + $0x60] sm:$0xff] %vm465_vm0, %v461_v12  ;;  %479 = vst.msk [vmem:[#allocation2 + $0x68] sm:$0xff] %vm465_vm0, %v462_v13  ;;  %v464_v15 = vld [vmem:[%s3092_s0 + $0x78] sm:$0xff] }
  0x1a   : > { %480 = vst.msk [vmem:[#allocation2 + $0x70] sm:$0xff] %vm465_vm0, %v463_v14  ;;  %481 = vst.msk [vmem:[#allocation2 + $0x78] sm:$0xff] %vm465_vm0, %v464_v15 }
  0x1b PF: > { %v2257_v16 = vld [vmem:[#allocation2] sm:$0xff]  ;;  %vm500_vm1 = vcmask 130048   ;;  %v2259_v17 = vld [vmem:[#allocation2 + $0x10] sm:$0xff]  ;;  %v2261_v18 = vld [vmem:[#allocation2 + $0x8] sm:$0xff]  ;;  %s3102_s21 = scalar_lea.vmem %s3093_s1, %s2162_s13  ;;  %vm1249_vm2 = vcmask 523264   ;;  %p1837_p6 = scmp.ne.s32.totalorder %s2080_s30, 1 }
  0x1c   : > { %v501_v19 = vsel %vm500_vm1, %v2257_v16, 0.0  ;;  %v507_v20 = vsel %vm500_vm1, %v2259_v17, 0.0  ;;  %v2267_v21 = vld [vmem:[#allocation2 + $0x18] sm:$0xff]  ;;  %v2269_v22 = vld [vmem:[#allocation2 + $0x20] sm:$0xff]  ;;  %v504_v23 = vsel %vm500_vm1, %v2261_v18, 0.0  ;;  %v2275_v25 = vld [vmem:[#allocation2 + $0x28] sm:$0xff] }
  0x1d   : > { %502 = vadd.xlane.f32.xlu0 %v501_v19  ;;  %508 = vadd.xlane.f32.xlu1 %v507_v20  ;;  %v510_v24 = vsel %vm500_vm1, %v2267_v21, 0.0  ;;  %v513_v26 = vsel %vm500_vm1, %v2269_v22, 0.0  ;;  %v516_v27 = vsel %vm500_vm1, %v2275_v25, 0.0  ;;  %v2281_v28 = vld [vmem:[#allocation2 + $0x30] sm:$0xff]  ;;  %v2283_v29 = vld [vmem:[#allocation2 + $0x38] sm:$0xff] }
  0x1e   : > { %v519_v30 = vsel %vm500_vm1, %v2281_v28, 0.0  ;;  %v522_v31 = vsel %vm500_vm1, %v2283_v29, 0.0  ;;  %v2289_v32 = vld [vmem:[#allocation2 + $0x40] sm:$0xff]  ;;  %v2291_v33 = vld [vmem:[#allocation2 + $0x48] sm:$0xff] }
  0x1f   : > { %v525_v34 = vsel %vm500_vm1, %v2289_v32, 0.0  ;;  %v528_v35 = vsel %vm500_vm1, %v2291_v33, 0.0  ;;  %v2297_v36 = vld [vmem:[#allocation2 + $0x50] sm:$0xff]  ;;  %v2299_v37 = vld [vmem:[#allocation2 + $0x58] sm:$0xff] }
  0x20   : > { %v531_v38 = vsel %vm500_vm1, %v2297_v36, 0.0  ;;  %v534_v39 = vsel %vm500_vm1, %v2299_v37, 0.0  ;;  %v2305_v40 = vld [vmem:[#allocation2 + $0x60] sm:$0xff]  ;;  %v2307_v41 = vld [vmem:[#allocation2 + $0x68] sm:$0xff] }
  0x21   : > { %505 = vadd.xlane.f32.xlu0 %v504_v23  ;;  %511 = vadd.xlane.f32.xlu1 %v510_v24  ;;  %v537_v42 = vsel %vm500_vm1, %v2305_v40, 0.0  ;;  %v540_v43 = vsel %vm500_vm1, %v2307_v41, 0.0  ;;  %v2313_v44 = vld [vmem:[#allocation2 + $0x70] sm:$0xff]  ;;  %v2315_v45 = vld [vmem:[#allocation2 + $0x78] sm:$0xff] }
  0x22   : > { %v543_v46 = vsel %vm500_vm1, %v2313_v44, 0.0  ;;  %v546_v47 = vsel %vm500_vm1, %v2315_v45, 0.0 }
  0x25   : > { %514 = vadd.xlane.f32.xlu0 %v513_v26  ;;  %517 = vadd.xlane.f32.xlu1 %v516_v27 }
  0x29   : > { %520 = vadd.xlane.f32.xlu0 %v519_v30  ;;  %523 = vadd.xlane.f32.xlu1 %v522_v31 }
  0x2d   : > { %526 = vadd.xlane.f32.xlu0 %v525_v34  ;;  %529 = vadd.xlane.f32.xlu1 %v528_v35 }
  0x31   : > { %532 = vadd.xlane.f32.xlu0 %v531_v38  ;;  %535 = vadd.xlane.f32.xlu1 %v534_v39 }
  0x35   : > { %538 = vadd.xlane.f32.xlu0 %v537_v42  ;;  %541 = vadd.xlane.f32.xlu1 %v540_v43 }
  0x39   : > { %544 = vadd.xlane.f32.xlu0 %v543_v46  ;;  %547 = vadd.xlane.f32.xlu1 %v546_v47 }
  0xa6   : > { %v503_v48 = vpop.xlane.xlu0 %502  ;;  %v509_v49 = vpop.xlane.xlu1 %508 }
  0xa7   : > { %v550_v50 = vmul.f32 0.0625, %v503_v48  ;;  %v552_v51 = vmul.f32 0.0625, %v509_v49 }
  0xa9   : > { %v2322_v52 = vsub.f32 %v2257_v16, %v550_v50  ;;  %v2325_v53 = vsub.f32 %v2259_v17, %v552_v51 }
  0xaa   : > { %v506_v54 = vpop.xlane.xlu0 %505  ;;  %v512_v55 = vpop.xlane.xlu1 %511 }
  0xab   : > { %v551_v56 = vmul.f32 0.0625, %v506_v54  ;;  %v553_v57 = vmul.f32 0.0625, %v512_v55  ;;  %v582_v58 = vmul.f32 %v2322_v52, %v2322_v52  ;;  %v584_v59 = vmul.f32 %v2325_v53, %v2325_v53 }
  0xad   : > { %v2332_v60 = vsub.f32 %v2261_v18, %v551_v56  ;;  %v2335_v61 = vsub.f32 %v2267_v21, %v553_v57  ;;  %v598_v62 = vsel %vm500_vm1, %v582_v58, 0.0  ;;  %v604_v1 = vsel %vm500_vm1, %v584_v59, 0.0 }
  0xae   : > { %599 = vadd.xlane.f32.xlu0 %v598_v62  ;;  %v515_v63 = vpop.xlane.xlu0 %514  ;;  %v518_v0 = vpop.xlane.xlu1 %517 }
  0xaf   : > { %v554_v2 = vmul.f32 0.0625, %v515_v63  ;;  %v555_v3 = vmul.f32 0.0625, %v518_v0  ;;  %v583_v4 = vmul.f32 %v2332_v60, %v2332_v60  ;;  %v585_v5 = vmul.f32 %v2335_v61, %v2335_v61 }
  0xb1   : > { %v2344_v6 = vsub.f32 %v2269_v22, %v554_v2  ;;  %v2347_v7 = vsub.f32 %v2275_v25, %v555_v3  ;;  %v601_v8 = vsel %vm500_vm1, %v583_v4, 0.0  ;;  %v607_v11 = vsel %vm500_vm1, %v585_v5, 0.0 }
  0xb2   : > { %605 = vadd.xlane.f32.xlu0 %v604_v1  ;;  %602 = vadd.xlane.f32.xlu1 %v601_v8  ;;  %v521_v9 = vpop.xlane.xlu0 %520  ;;  %v524_v10 = vpop.xlane.xlu1 %523 }
  0xb3   : > { %v556_v12 = vmul.f32 0.0625, %v521_v9  ;;  %v557_v13 = vmul.f32 0.0625, %v524_v10  ;;  %v586_v14 = vmul.f32 %v2344_v6, %v2344_v6  ;;  %v587_v15 = vmul.f32 %v2347_v7, %v2347_v7 }
  0xb5   : > { %v2356_v19 = vsub.f32 %v2281_v28, %v556_v12  ;;  %v2359_v20 = vsub.f32 %v2283_v29, %v557_v13  ;;  %v610_v23 = vsel %vm500_vm1, %v586_v14, 0.0  ;;  %v613_v27 = vsel %vm500_vm1, %v587_v15, 0.0 }
  0xb6   : > { %608 = vadd.xlane.f32.xlu1 %v607_v11  ;;  %611 = vadd.xlane.f32.xlu0 %v610_v23  ;;  %v527_v24 = vpop.xlane.xlu0 %526  ;;  %v530_v26 = vpop.xlane.xlu1 %529 }
  0xb7   : > { %v558_v30 = vmul.f32 0.0625, %v527_v24  ;;  %v559_v31 = vmul.f32 0.0625, %v530_v26  ;;  %v588_v34 = vmul.f32 %v2356_v19, %v2356_v19  ;;  %v589_v35 = vmul.f32 %v2359_v20, %v2359_v20 }
  0xb9   : > { %v2368_v38 = vsub.f32 %v2289_v32, %v558_v30  ;;  %v2371_v39 = vsub.f32 %v2291_v33, %v559_v31  ;;  %v616_v42 = vsel %vm500_vm1, %v588_v34, 0.0  ;;  %v619_v47 = vsel %vm500_vm1, %v589_v35, 0.0 }
  0xba   : > { %614 = vadd.xlane.f32.xlu1 %v613_v27  ;;  %617 = vadd.xlane.f32.xlu0 %v616_v42  ;;  %v533_v43 = vpop.xlane.xlu0 %532  ;;  %v536_v46 = vpop.xlane.xlu1 %535 }
  0xbb   : > { %v560_v48 = vmul.f32 0.0625, %v533_v43  ;;  %v561_v49 = vmul.f32 0.0625, %v536_v46  ;;  %v590_v50 = vmul.f32 %v2368_v38, %v2368_v38  ;;  %v591_v51 = vmul.f32 %v2371_v39, %v2371_v39 }
  0xbd   : > { %v2380_v54 = vsub.f32 %v2297_v36, %v560_v48  ;;  %v2383_v55 = vsub.f32 %v2299_v37, %v561_v49  ;;  %v622_v56 = vsel %vm500_vm1, %v590_v50, 0.0  ;;  %v625_v59 = vsel %vm500_vm1, %v591_v51, 0.0 }
  0xbe   : > { %620 = vadd.xlane.f32.xlu1 %v619_v47  ;;  %623 = vadd.xlane.f32.xlu0 %v622_v56  ;;  %v539_v57 = vpop.xlane.xlu0 %538  ;;  %v542_v58 = vpop.xlane.xlu1 %541 }
  0xbf   : > { %v562_v62 = vmul.f32 0.0625, %v539_v57  ;;  %v563_v63 = vmul.f32 0.0625, %v542_v58  ;;  %v592_v0 = vmul.f32 %v2380_v54, %v2380_v54  ;;  %v593_v1 = vmul.f32 %v2383_v55, %v2383_v55 }
  0xc1   : > { %v2392_v2 = vsub.f32 %v2305_v40, %v562_v62  ;;  %v2395_v3 = vsub.f32 %v2307_v41, %v563_v63  ;;  %v628_v4 = vsel %vm500_vm1, %v592_v0, 0.0  ;;  %v631_v9 = vsel %vm500_vm1, %v593_v1, 0.0 }
  0xc2   : > { %626 = vadd.xlane.f32.xlu1 %v625_v59  ;;  %629 = vadd.xlane.f32.xlu0 %v628_v4  ;;  %v545_v5 = vpop.xlane.xlu0 %544  ;;  %v548_v8 = vpop.xlane.xlu1 %547 }
  0xc3   : > { %v564_v10 = vmul.f32 0.0625, %v545_v5  ;;  %v565_v11 = vmul.f32 0.0625, %v548_v8  ;;  %v594_v12 = vmul.f32 %v2392_v2, %v2392_v2  ;;  %v595_v13 = vmul.f32 %v2395_v3, %v2395_v3 }
  0xc5   : > { %v2404_v14 = vsub.f32 %v2313_v44, %v564_v10  ;;  %v2407_v15 = vsub.f32 %v2315_v45, %v565_v11  ;;  %v634_v23 = vsel %vm500_vm1, %v594_v12, 0.0  ;;  %v637_v24 = vsel %vm500_vm1, %v595_v13, 0.0 }
  0xc6   : > { %632 = vadd.xlane.f32.xlu1 %v631_v9  ;;  %635 = vadd.xlane.f32.xlu0 %v634_v23  ;;  %v2422_v23 = vld [vmem:[%s3102_s21] ss:$0 sm:$0xff] }
  0xc7   : > { %v596_v26 = vmul.f32 %v2404_v14, %v2404_v14  ;;  %v597_v27 = vmul.f32 %v2407_v15, %v2407_v15 }
  0xc9   : > { %v640_v30 = vsel %vm500_vm1, %v596_v26, 0.0  ;;  %v643_v31 = vsel %vm500_vm1, %v597_v27, 0.0 }
  0xca   : > { %638 = vadd.xlane.f32.xlu1 %v637_v24  ;;  %641 = vadd.xlane.f32.xlu0 %v640_v30 }
  0xce   : > { %644 = vadd.xlane.f32.xlu1 %v643_v31 }
 0x137   : > { %v600_v34 = vpop.xlane.xlu0 %599 }
 0x138   : > { %v646_v35 = vmul.f32 0.0625, %v600_v34  ;;  %v2430_v34 = vld [vmem:[%s421_s19] ss:$0 sm:$0xff] }
 0x13a   : > { %v662_v42 = vadd.f32 1e-06, %v646_v35 }
 0x13b   : > { %v603_v43 = vpop.xlane.xlu1 %602  ;;  %v606_v46 = vpop.xlane.xlu0 %605 }
 0x13c   : > { %1938 = vrsqrt.f32 %v662_v42  ;;  %v647_v47 = vmul.f32 0.0625, %v603_v43  ;;  %v648_v48 = vmul.f32 0.0625, %v606_v46 }
 0x13e   : > { %v663_v49 = vadd.f32 1e-06, %v647_v47  ;;  %v664_v50 = vadd.f32 1e-06, %v648_v48 }
 0x13f   : > { %v609_v51 = vpop.xlane.xlu1 %608  ;;  %v612_v56 = vpop.xlane.xlu0 %611 }
 0x140   : > { %1940 = vrsqrt.f32 %v663_v49  ;;  %v649_v57 = vmul.f32 0.0625, %v609_v51  ;;  %v650_v58 = vmul.f32 0.0625, %v612_v56 }
 0x141   : > { %1942 = vrsqrt.f32 %v664_v50 }
 0x142   : > { %v665_v59 = vadd.f32 1e-06, %v649_v57  ;;  %v666_v62 = vadd.f32 1e-06, %v650_v58 }
 0x143   : > { %v615_v63 = vpop.xlane.xlu1 %614  ;;  %v618_v0 = vpop.xlane.xlu0 %617 }
 0x144   : > { %1944 = vrsqrt.f32 %v665_v59  ;;  %v651_v1 = vmul.f32 0.0625, %v615_v63  ;;  %v652_v4 = vmul.f32 0.0625, %v618_v0 }
 0x145   : > { %1946 = vrsqrt.f32 %v666_v62 }
 0x146   : > { %v667_v5 = vadd.f32 1e-06, %v651_v1  ;;  %v668_v8 = vadd.f32 1e-06, %v652_v4 }
 0x147   : > { %v621_v9 = vpop.xlane.xlu1 %620  ;;  %v624_v10 = vpop.xlane.xlu0 %623 }
 0x148   : > { %1948 = vrsqrt.f32 %v667_v5  ;;  %v653_v11 = vmul.f32 0.0625, %v621_v9  ;;  %v654_v12 = vmul.f32 0.0625, %v624_v10 }
 0x149   : > { %v1939_v13 = vpop.eup %1938  ;;  %1950 = vrsqrt.f32 %v668_v8 }
 0x14a   : > { %v669_v24 = vadd.f32 1e-06, %v653_v11  ;;  %v670_v26 = vadd.f32 1e-06, %v654_v12  ;;  %v694_v27 = vmul.f32 %v1939_v13, %v2322_v52 }
 0x14b   : > { %v627_v30 = vpop.xlane.xlu1 %626  ;;  %v630_v31 = vpop.xlane.xlu0 %629 }
 0x14c   : > { %1952 = vrsqrt.f32 %v669_v24  ;;  %v655_v35 = vmul.f32 0.0625, %v627_v30  ;;  %v656_v42 = vmul.f32 0.0625, %v630_v31  ;;  %v716_v43 = vmul.f32 %v2422_v23, %v694_v27 }
 0x14d   : > { %v1941_v46 = vpop.eup %1940  ;;  %1954 = vrsqrt.f32 %v670_v26 }
 0x14e   : > { %v1943_v47 = vpop.eup %1942  ;;  %v671_v48 = vadd.f32 1e-06, %v655_v35  ;;  %v672_v49 = vadd.f32 1e-06, %v656_v42  ;;  %v738_v52 = vadd.f32 %v2430_v34, %v716_v43  ;;  %v695_v50 = vmul.f32 %v1941_v46, %v2332_v60 }
 0x14f   : > { %v633_v51 = vpop.xlane.xlu1 %632  ;;  %v636_v56 = vpop.xlane.xlu0 %635  ;;  %v696_v57 = vmul.f32 %v1943_v47, %v2325_v53 }
 0x150   : > { %1956 = vrsqrt.f32 %v671_v48  ;;  %v657_v58 = vmul.f32 0.0625, %v633_v51  ;;  %v658_v59 = vmul.f32 0.0625, %v636_v56  ;;  %v2437_v62 = vadd.f32 %v738_v52, %v2257_v16 }
 0x151   : > { %v1945_v63 = vpop.eup %1944  ;;  %1958 = vrsqrt.f32 %v672_v49  ;;  %v717_v0 = vmul.f32 %v2422_v23, %v695_v50  ;;  %v718_v1 = vmul.f32 %v2422_v23, %v696_v57 }
 0x152   : > { %v1947_v4 = vpop.eup %1946  ;;  %v673_v5 = vadd.f32 1e-06, %v657_v58  ;;  %v674_v8 = vadd.f32 1e-06, %v658_v59  ;;  %v770_v60 = vsel %vm500_vm1, %v2437_v62, 0.0  ;;  %v697_v53 = vmul.f32 %v1945_v63, %v2335_v61 }
 0x153   : > { %v639_v9 = vpop.xlane.xlu1 %638  ;;  %771 = vadd.xlane.f32.xlu0 %v770_v60  ;;  %v642_v10 = vpop.xlane.xlu0 %641  ;;  %v739_v16 = vadd.f32 %v2430_v34, %v717_v0  ;;  %v740_v11 = vadd.f32 %v2430_v34, %v718_v1  ;;  %v698_v12 = vmul.f32 %v1947_v4, %v2344_v6 }
 0x154   : > { %1960 = vrsqrt.f32 %v673_v5  ;;  %v659_v13 = vmul.f32 0.0625, %v639_v9  ;;  %v660_v24 = vmul.f32 0.0625, %v642_v10  ;;  %v719_v26 = vmul.f32 %v2422_v23, %v697_v53 }
 0x155   : > { %v1949_v27 = vpop.eup %1948  ;;  %1962 = vrsqrt.f32 %v674_v8  ;;  %v2449_v30 = vadd.f32 %v739_v16, %v2261_v18  ;;  %v2452_v61 = vadd.f32 %v740_v11, %v2259_v17  ;;  %v720_v31 = vmul.f32 %v2422_v23, %v698_v12 }
 0x156   : > { %v1951_v35 = vpop.eup %1950  ;;  %v675_v42 = vadd.f32 1e-06, %v659_v13  ;;  %v676_v43 = vadd.f32 1e-06, %v660_v24  ;;  %v741_v6 = vadd.f32 %v2430_v34, %v719_v26  ;;  %v699_v46 = vmul.f32 %v1949_v27, %v2347_v7 }
 0x157   : > { %v773_v47 = vsel %vm500_vm1, %v2449_v30, 0.0  ;;  %v645_v48 = vpop.xlane.xlu1 %644  ;;  %v776_v18 = vsel %vm500_vm1, %v2452_v61, 0.0  ;;  %v742_v49 = vadd.f32 %v2430_v34, %v720_v31  ;;  %v700_v17 = vmul.f32 %v1951_v35, %v2356_v19 }
 0x158   : > { %1964 = vrsqrt.f32 %v675_v42  ;;  %774 = vadd.xlane.f32.xlu1 %v773_v47  ;;  %v661_v52 = vmul.f32 0.0625, %v645_v48  ;;  %777 = vadd.xlane.f32.xlu0 %v776_v18  ;;  %v2464_v50 = vadd.f32 %v741_v6, %v2267_v21  ;;  %v721_v7 = vmul.f32 %v2422_v23, %v699_v46 }
 0x159   : > { %v1953_v51 = vpop.eup %1952  ;;  %1966 = vrsqrt.f32 %v676_v43  ;;  %v2468_v56 = vadd.f32 %v742_v49, %v2269_v22  ;;  %v722_v57 = vmul.f32 %v2422_v23, %v700_v17 }
 0x15a   : > { %v1955_v58 = vpop.eup %1954  ;;  %v677_v59 = vadd.f32 1e-06, %v661_v52  ;;  %v779_v19 = vsel %vm500_vm1, %v2464_v50, 0.0  ;;  %v743_v63 = vadd.f32 %v2430_v34, %v721_v7  ;;  %v701_v0 = vmul.f32 %v1953_v51, %v2359_v20 }
 0x15b   : > { %v782_v21 = vsel %vm500_vm1, %v2468_v56, 0.0  ;;  %v744_v1 = vadd.f32 %v2430_v34, %v722_v57  ;;  %v702_v4 = vmul.f32 %v1955_v58, %v2368_v38 }
 0x15c   : > { %1968 = vrsqrt.f32 %v677_v59  ;;  %780 = vadd.xlane.f32.xlu1 %v779_v19  ;;  %783 = vadd.xlane.f32.xlu0 %v782_v21  ;;  %v2480_v22 = vadd.f32 %v743_v63, %v2275_v25  ;;  %v723_v5 = vmul.f32 %v2422_v23, %v701_v0 }
 0x15d   : > { %v1957_v8 = vpop.eup %1956  ;;  %v2484_v60 = vadd.f32 %v744_v1, %v2281_v28  ;;  %v724_v20 = vmul.f32 %v2422_v23, %v702_v4 }
 0x15e   : > { %v1959_v53 = vpop.eup %1958  ;;  %v785_v9 = vsel %vm500_vm1, %v2480_v22, 0.0  ;;  %v745_v38 = vadd.f32 %v2430_v34, %v723_v5  ;;  %v703_v10 = vmul.f32 %v1957_v8, %v2371_v39 }
 0x15f   : > { %v788_v25 = vsel %vm500_vm1, %v2484_v60, 0.0  ;;  %v746_v16 = vadd.f32 %v2430_v34, %v724_v20  ;;  %v704_v11 = vmul.f32 %v1959_v53, %v2380_v54 }
 0x160   : > { %786 = vadd.xlane.f32.xlu1 %v785_v9  ;;  %789 = vadd.xlane.f32.xlu0 %v788_v25  ;;  %v2496_v28 = vadd.f32 %v745_v38, %v2283_v29  ;;  %v725_v12 = vmul.f32 %v2422_v23, %v703_v10 }
 0x161   : > { %v1961_v13 = vpop.eup %1960  ;;  %v2500_v24 = vadd.f32 %v746_v16, %v2289_v32  ;;  %v726_v39 = vmul.f32 %v2422_v23, %v704_v11 }
 0x162   : > { %v1963_v26 = vpop.eup %1962  ;;  %v791_v27 = vsel %vm500_vm1, %v2496_v28, 0.0  ;;  %v747_v31 = vadd.f32 %v2430_v34, %v725_v12  ;;  %v705_v54 = vmul.f32 %v1961_v13, %v2383_v55 }
 0x163   : > { %v794_v29 = vsel %vm500_vm1, %v2500_v24, 0.0  ;;  %v748_v35 = vadd.f32 %v2430_v34, %v726_v39  ;;  %v706_v42 = vmul.f32 %v1963_v26, %v2392_v2 }
 0x164   : > { %792 = vadd.xlane.f32.xlu1 %v791_v27  ;;  %795 = vadd.xlane.f32.xlu0 %v794_v29  ;;  %v2512_v32 = vadd.f32 %v747_v31, %v2291_v33  ;;  %v727_v43 = vmul.f32 %v2422_v23, %v705_v54 }
 0x165   : > { %v1965_v6 = vpop.eup %1964  ;;  %v2516_v46 = vadd.f32 %v748_v35, %v2297_v36  ;;  %v728_v55 = vmul.f32 %v2422_v23, %v706_v42 }
 0x166   : > { %v1967_v47 = vpop.eup %1966  ;;  %v797_v48 = vsel %vm500_vm1, %v2512_v32, 0.0  ;;  %v749_v18 = vadd.f32 %v2430_v34, %v727_v43  ;;  %v707_v2 = vmul.f32 %v1965_v6, %v2395_v3 }
 0x167   : > { %v800_v33 = vsel %vm500_vm1, %v2516_v46, 0.0  ;;  %v750_v49 = vadd.f32 %v2430_v34, %v728_v55  ;;  %v708_v17 = vmul.f32 %v1967_v47, %v2404_v14 }
 0x168   : > { %798 = vadd.xlane.f32.xlu1 %v797_v48  ;;  %801 = vadd.xlane.f32.xlu0 %v800_v33  ;;  %v2528_v36 = vadd.f32 %v749_v18, %v2299_v37  ;;  %v729_v52 = vmul.f32 %v2422_v23, %v707_v2 }
 0x169   : > { %v1969_v7 = vpop.eup %1968  ;;  %v2532_v51 = vadd.f32 %v750_v49, %v2305_v40  ;;  %v730_v3 = vmul.f32 %v2422_v23, %v708_v17 }
 0x16a   : > { %v803_v57 = vsel %vm500_vm1, %v2528_v36, 0.0  ;;  %v751_v58 = vadd.f32 %v2430_v34, %v729_v52  ;;  %v709_v14 = vmul.f32 %v1969_v7, %v2407_v15 }
 0x16b   : > { %v806_v59 = vsel %vm500_vm1, %v2532_v51, 0.0  ;;  %v752_v37 = vadd.f32 %v2430_v34, %v730_v3 }
 0x16c   : > { %804 = vadd.xlane.f32.xlu1 %v803_v57  ;;  %807 = vadd.xlane.f32.xlu0 %v806_v59  ;;  %v2543_v19 = vadd.f32 %v751_v58, %v2307_v41  ;;  %v731_v40 = vmul.f32 %v2422_v23, %v709_v14 }
 0x16d   : > { %v2547_v63 = vadd.f32 %v752_v37, %v2313_v44 }
 0x16e   : > { %v809_v0 = vsel %vm500_vm1, %v2543_v19, 0.0  ;;  %v753_v15 = vadd.f32 %v2430_v34, %v731_v40 }
 0x16f   : > { %v812_v21 = vsel %vm500_vm1, %v2547_v63, 0.0 }
 0x170   : > { %810 = vadd.xlane.f32.xlu1 %v809_v0  ;;  %813 = vadd.xlane.f32.xlu0 %v812_v21  ;;  %v2555_v1 = vadd.f32 %v753_v15, %v2315_v45 }
 0x172   : > { %v815_v41 = vsel %vm500_vm1, %v2555_v1, 0.0 }
 0x174   : > { %816 = vadd.xlane.f32.xlu1 %v815_v41 }
 0x1dc   : > { %v772_v23 = vpop.xlane.xlu0 %771 }
 0x1dd   : > { %v818_v44 = vmul.f32 0.0625, %v772_v23 }
 0x1df   : > { %v2560_v4 = vsub.f32 %v2437_v62, %v818_v44 }
 0x1e1   : > { %v775_v5 = vpop.xlane.xlu1 %774  ;;  %v778_v8 = vpop.xlane.xlu0 %777  ;;  %v850_v34 = vmul.f32 %v2560_v4, %v2560_v4 }
 0x1e2   : > { %v819_v20 = vmul.f32 0.0625, %v775_v5  ;;  %v820_v53 = vmul.f32 0.0625, %v778_v8 }
 0x1e3   : > { %v866_v9 = vsel %vm500_vm1, %v850_v34, 0.0 }
 0x1e4   : > { %v2566_v45 = vsub.f32 %v2449_v30, %v819_v20  ;;  %v2569_v38 = vsub.f32 %v2452_v61, %v820_v53  ;;  %867 = vadd.xlane.f32.xlu0 %v866_v9 }
 0x1e5   : > { %v781_v10 = vpop.xlane.xlu1 %780  ;;  %v784_v25 = vpop.xlane.xlu0 %783 }
 0x1e6   : > { %v821_v16 = vmul.f32 0.0625, %v781_v10  ;;  %v822_v11 = vmul.f32 0.0625, %v784_v25  ;;  %v851_v12 = vmul.f32 %v2566_v45, %v2566_v45  ;;  %v852_v13 = vmul.f32 %v2569_v38, %v2569_v38 }
 0x1e8   : > { %v2576_v39 = vsub.f32 %v2464_v50, %v821_v16  ;;  %v2579_v26 = vsub.f32 %v2468_v56, %v822_v11  ;;  %v869_v27 = vsel %vm500_vm1, %v851_v12, 0.0  ;;  %v872_v31 = vsel %vm500_vm1, %v852_v13, 0.0 }
 0x1e9   : > { %870 = vadd.xlane.f32.xlu1 %v869_v27  ;;  %v787_v54 = vpop.xlane.xlu1 %786  ;;  %873 = vadd.xlane.f32.xlu0 %v872_v31  ;;  %v790_v29 = vpop.xlane.xlu0 %789 }
 0x1ea   : > { %v823_v35 = vmul.f32 0.0625, %v787_v54  ;;  %v824_v42 = vmul.f32 0.0625, %v790_v29  ;;  %v853_v43 = vmul.f32 %v2576_v39, %v2576_v39  ;;  %v854_v6 = vmul.f32 %v2579_v26, %v2579_v26 }
 0x1ec   : > { %v2588_v55 = vsub.f32 %v2480_v22, %v823_v35  ;;  %v2591_v47 = vsub.f32 %v2484_v60, %v824_v42  ;;  %v875_v48 = vsel %vm500_vm1, %v853_v43, 0.0  ;;  %v878_v18 = vsel %vm500_vm1, %v854_v6, 0.0 }
 0x1ed   : > { %876 = vadd.xlane.f32.xlu1 %v875_v48  ;;  %v793_v2 = vpop.xlane.xlu1 %792  ;;  %879 = vadd.xlane.f32.xlu0 %v878_v18  ;;  %v796_v33 = vpop.xlane.xlu0 %795 }
 0x1ee   : > { %v825_v49 = vmul.f32 0.0625, %v793_v2  ;;  %v826_v17 = vmul.f32 0.0625, %v796_v33  ;;  %v855_v52 = vmul.f32 %v2588_v55, %v2588_v55  ;;  %v856_v7 = vmul.f32 %v2591_v47, %v2591_v47 }
 0x1f0   : > { %v2600_v3 = vsub.f32 %v2496_v28, %v825_v49  ;;  %v2603_v57 = vsub.f32 %v2500_v24, %v826_v17  ;;  %v881_v58 = vsel %vm500_vm1, %v855_v52, 0.0  ;;  %v884_v14 = vsel %vm500_vm1, %v856_v7, 0.0 }
 0x1f1   : > { %882 = vadd.xlane.f32.xlu1 %v881_v58  ;;  %v799_v59 = vpop.xlane.xlu1 %798  ;;  %885 = vadd.xlane.f32.xlu0 %v884_v14  ;;  %v802_v37 = vpop.xlane.xlu0 %801 }
 0x1f2   : > { %v827_v40 = vmul.f32 0.0625, %v799_v59  ;;  %v828_v0 = vmul.f32 0.0625, %v802_v37  ;;  %v857_v15 = vmul.f32 %v2600_v3, %v2600_v3  ;;  %v858_v21 = vmul.f32 %v2603_v57, %v2603_v57  ;;  %v1933_v59 = vld [vmem:[%s2180_s26] sm:$0xff]  }
 0x1f3   : > { %1867 = vmatprep.subr.bf16.mxu0 %v1933_v59 }
 0x1f4   : > { %v2612_v41 = vsub.f32 %v2512_v32, %v827_v40  ;;  %v2615_v23 = vsub.f32 %v2516_v46, %v828_v0  ;;  %v887_v44 = vsel %vm500_vm1, %v857_v15, 0.0  ;;  %v890_v5 = vsel %vm500_vm1, %v858_v21, 0.0  ;;  %1868 = vmatpush3.bf16.msra.mxu0 %v1933_v59 }
 0x1f5   : > { %888 = vadd.xlane.f32.xlu1 %v887_v44  ;;  %v805_v8 = vpop.xlane.xlu1 %804  ;;  %891 = vadd.xlane.f32.xlu0 %v890_v5  ;;  %v808_v34 = vpop.xlane.xlu0 %807 }
 0x1f6   : > { %v829_v20 = vmul.f32 0.0625, %v805_v8  ;;  %v830_v53 = vmul.f32 0.0625, %v808_v34  ;;  %v859_v9 = vmul.f32 %v2612_v41, %v2612_v41  ;;  %v860_v10 = vmul.f32 %v2615_v23, %v2615_v23 }
 0x1f8   : > { %v2624_v25 = vsub.f32 %v2528_v36, %v829_v20  ;;  %v2627_v16 = vsub.f32 %v2532_v51, %v830_v53  ;;  %v893_v11 = vsel %vm500_vm1, %v859_v9, 0.0  ;;  %v896_v12 = vsel %vm500_vm1, %v860_v10, 0.0 }
 0x1f9   : > { %894 = vadd.xlane.f32.xlu1 %v893_v11  ;;  %v811_v13 = vpop.xlane.xlu1 %810  ;;  %897 = vadd.xlane.f32.xlu0 %v896_v12  ;;  %v814_v27 = vpop.xlane.xlu0 %813 }
 0x1fa   : > { %v831_v31 = vmul.f32 0.0625, %v811_v13  ;;  %v832_v54 = vmul.f32 0.0625, %v814_v27  ;;  %v861_v29 = vmul.f32 %v2624_v25, %v2624_v25  ;;  %v862_v35 = vmul.f32 %v2627_v16, %v2627_v16 }
 0x1fc   : > { %v2636_v42 = vsub.f32 %v2543_v19, %v831_v31  ;;  %v2639_v43 = vsub.f32 %v2547_v63, %v832_v54  ;;  %v899_v6 = vsel %vm500_vm1, %v861_v29, 0.0  ;;  %v902_v48 = vsel %vm500_vm1, %v862_v35, 0.0 }
 0x1fd   : > { %900 = vadd.xlane.f32.xlu1 %v899_v6  ;;  %v817_v18 = vpop.xlane.xlu1 %816  ;;  %903 = vadd.xlane.f32.xlu0 %v902_v48 }
 0x1fe   : > { %v833_v2 = vmul.f32 0.0625, %v817_v18  ;;  %v863_v33 = vmul.f32 %v2636_v42, %v2636_v42  ;;  %v864_v49 = vmul.f32 %v2639_v43, %v2639_v43 }
 0x200   : > { %v2648_v17 = vsub.f32 %v2555_v1, %v833_v2  ;;  %v905_v52 = vsel %vm500_vm1, %v863_v33, 0.0  ;;  %v908_v7 = vsel %vm500_vm1, %v864_v49, 0.0 }
 0x201   : > { %906 = vadd.xlane.f32.xlu1 %v905_v52  ;;  %909 = vadd.xlane.f32.xlu0 %v908_v7 }
 0x202   : > { %v865_v58 = vmul.f32 %v2648_v17, %v2648_v17 }
 0x204   : > { %v911_v14 = vsel %vm500_vm1, %v865_v58, 0.0 }
 0x205   : > { %912 = vadd.xlane.f32.xlu1 %v911_v14 }
 0x26d   : > { %v868_v37 = vpop.xlane.xlu0 %867 }
 0x26e   : > { %v914_v40 = vmul.f32 0.0625, %v868_v37 }
 0x270   : > { %v930_v0 = vadd.f32 1e-06, %v914_v40 }
 0x272   : > { %v871_v15 = vpop.xlane.xlu1 %870  ;;  %v874_v21 = vpop.xlane.xlu0 %873  ;;  %1970 = vrsqrt.f32 %v930_v0 }
 0x273   : > { %v915_v44 = vmul.f32 0.0625, %v871_v15  ;;  %v916_v5 = vmul.f32 0.0625, %v874_v21 }
 0x275   : > { %v931_v8 = vadd.f32 1e-06, %v915_v44  ;;  %v932_v34 = vadd.f32 1e-06, %v916_v5 }
 0x276   : > { %v877_v20 = vpop.xlane.xlu1 %876  ;;  %v880_v53 = vpop.xlane.xlu0 %879 }
 0x277   : > { %1972 = vrsqrt.f32 %v931_v8  ;;  %v917_v9 = vmul.f32 0.0625, %v877_v20  ;;  %v918_v10 = vmul.f32 0.0625, %v880_v53 }
 0x278   : > { %1974 = vrsqrt.f32 %v932_v34 }
 0x279   : > { %v933_v11 = vadd.f32 1e-06, %v917_v9  ;;  %v934_v12 = vadd.f32 1e-06, %v918_v10 }
 0x27a   : > { %v883_v13 = vpop.xlane.xlu1 %882  ;;  %v886_v27 = vpop.xlane.xlu0 %885 }
 0x27b   : > { %1976 = vrsqrt.f32 %v933_v11  ;;  %v919_v31 = vmul.f32 0.0625, %v883_v13  ;;  %v920_v54 = vmul.f32 0.0625, %v886_v27 }
 0x27c   : > { %1978 = vrsqrt.f32 %v934_v12 }
 0x27d   : > { %v935_v29 = vadd.f32 1e-06, %v919_v31  ;;  %v936_v35 = vadd.f32 1e-06, %v920_v54 }
 0x27e   : > { %v889_v6 = vpop.xlane.xlu1 %888  ;;  %v892_v48 = vpop.xlane.xlu0 %891 }
 0x27f   : > { %1980 = vrsqrt.f32 %v935_v29  ;;  %v921_v18 = vmul.f32 0.0625, %v889_v6  ;;  %v922_v2 = vmul.f32 0.0625, %v892_v48  ;;  %v1971_v33 = vpop.eup %1970 }
 0x280   : > { %1982 = vrsqrt.f32 %v936_v35  ;;  %v962_v40 = vmul.f32 %v1971_v33, %v2560_v4 }
 0x281   : > { %v937_v49 = vadd.f32 1e-06, %v921_v18  ;;  %v938_v52 = vadd.f32 1e-06, %v922_v2 }
 0x282   : > { %v895_v7 = vpop.xlane.xlu1 %894  ;;  %v898_v58 = vpop.xlane.xlu0 %897 }
 0x283   : > { %1984 = vrsqrt.f32 %v937_v49  ;;  %v923_v14 = vmul.f32 0.0625, %v895_v7  ;;  %v924_v59 = vmul.f32 0.0625, %v898_v58 }
 0x284   : > { %v1973_v37 = vpop.eup %1972  ;;  %1986 = vrsqrt.f32 %v938_v52 }
 0x285   : > { %v1975_v0 = vpop.eup %1974  ;;  %v939_v15 = vadd.f32 1e-06, %v923_v14  ;;  %v940_v21 = vadd.f32 1e-06, %v924_v59  ;;  %v963_v44 = vmul.f32 %v1973_v37, %v2566_v45 }
 0x286   : > { %v901_v5 = vpop.xlane.xlu1 %900  ;;  %v904_v8 = vpop.xlane.xlu0 %903  ;;  %v964_v10 = vmul.f32 %v1975_v0, %v2569_v38 }
 0x287   : > { %1988 = vrsqrt.f32 %v939_v15  ;;  %v925_v34 = vmul.f32 0.0625, %v901_v5  ;;  %v926_v20 = vmul.f32 0.0625, %v904_v8  ;;  %v978_v53 = vpack.c.bf16 %v963_v44, %v962_v40 }
 0x288   : > { %v1977_v9 = vpop.eup %1976  ;;  %1990 = vrsqrt.f32 %v940_v21 }
 0x289   : > { %v1979_v11 = vpop.eup %1978  ;;  %v941_v12 = vadd.f32 1e-06, %v925_v34  ;;  %v942_v13 = vadd.f32 1e-06, %v926_v20  ;;  %1869 = vmatprep.mubr.msk.bf16.mxu0 %vm500_vm1, %v978_v53  ;;  %v965_v4 = vmul.f32 %v1977_v9, %v2576_v39 }
 0x28a   : > { %v907_v27 = vpop.xlane.xlu1 %906  ;;  %v910_v31 = vpop.xlane.xlu0 %909  ;;  %v966_v6 = vmul.f32 %v1979_v11, %v2579_v26  ;;  %v1937_v11 = vld [vmem:[%s2186_s14] sm:$0xff]  }
 0x28b   : > { %1992 = vrsqrt.f32 %v941_v12  ;;  %v927_v45 = vmul.f32 0.0625, %v907_v27  ;;  %v928_v54 = vmul.f32 0.0625, %v910_v31  ;;  %v979_v29 = vpack.c.bf16 %v965_v4, %v964_v10  ;;  %v1934_v10 = vld [vmem:[%s2186_s14 + $0x18] sm:$0xff]  }
 0x28c   : > { %v1981_v35 = vpop.eup %1980  ;;  %1994 = vrsqrt.f32 %v942_v13  ;;  %1885 = vmatprep.subr.bf16.mxu1 %v1934_v10 }
 0x28d   : > { %v943_v48 = vadd.f32 1e-06, %v927_v45  ;;  %v944_v38 = vadd.f32 1e-06, %v928_v54  ;;  %1870 = vmatmul.mubr.msk.bf16.vlgmr.msra.gmra.mxu0 %vm500_vm1, %v979_v29  ;;  %v967_v18 = vmul.f32 %v1981_v35, %v2588_v55  ;;  %v1983_v2 = vpop.eup %1982  ;;  %1886 = vmatpush3.bf16.msra.mxu1 %v1934_v10 }
 0x28e   : > { %v913_v33 = vpop.xlane.xlu1 %912  ;;  %v968_v58 = vmul.f32 %v1983_v2, %v2591_v47 }
 0x28f   : > { %1996 = vrsqrt.f32 %v943_v48  ;;  %v929_v39 = vmul.f32 0.0625, %v913_v33  ;;  %v980_v49 = vpack.c.bf16 %v967_v18, %v966_v6 }
 0x290   : > { %v1985_v52 = vpop.eup %1984  ;;  %1998 = vrsqrt.f32 %v944_v38 }
 0x291   : > { %v945_v7 = vadd.f32 1e-06, %v929_v39  ;;  %1873 = vmatprep.mubr.msk.bf16.mxu0 %vm500_vm1, %v980_v49  ;;  %v969_v26 = vmul.f32 %v1985_v52, %v2600_v3  ;;  %v1987_v14 = vpop.eup %1986 }
 0x292   : > { %v970_v55 = vmul.f32 %v1987_v14, %v2603_v57 }
 0x293   : > { %2000 = vrsqrt.f32 %v945_v7  ;;  %v981_v59 = vpack.c.bf16 %v969_v26, %v968_v58 }
 0x294   : > { %v1989_v37 = vpop.eup %1988 }
 0x295   : > { %1874 = vmatmul.mubr.msk.bf16.gmra.mxu0 %vm500_vm1, %v981_v59  ;;  %v971_v40 = vmul.f32 %v1989_v37, %v2612_v41  ;;  %v1991_v0 = vpop.eup %1990 }
 0x296   : > { %v972_v44 = vmul.f32 %v1991_v0, %v2615_v23 }
 0x297   : > { %v982_v15 = vpack.c.bf16 %v971_v40, %v970_v55 }
 0x298   : > { %v1993_v21 = vpop.eup %1992 }
 0x299   : > { %1877 = vmatprep.mubr.msk.bf16.mxu0 %vm500_vm1, %v982_v15  ;;  %v973_v47 = vmul.f32 %v1993_v21, %v2624_v25  ;;  %v1995_v3 = vpop.eup %1994 }
 0x29a   : > { %v974_v57 = vmul.f32 %v1995_v3, %v2627_v16  ;;  %v1935_v16 = vld [vmem:[%s2186_s14 + $0x10] sm:$0xff]  }
 0x29b   : > { %v983_v5 = vpack.c.bf16 %v973_v47, %v972_v44  ;;  %1887 = vmatprep.subr.bf16.mxu1 %v1935_v16 }
 0x29c   : > { %v1997_v8 = vpop.eup %1996  ;;  %1888 = vmatpush3.bf16.msra.mxu1 %v1935_v16 }
 0x29d   : > { %1878 = vmatmul.mubr.msk.bf16.gmra.mxu0 %vm500_vm1, %v983_v5  ;;  %v975_v41 = vmul.f32 %v1997_v8, %v2636_v42  ;;  %v1999_v34 = vpop.eup %1998  ;;  %v1936_v42 = vld [vmem:[%s2186_s14 + $0x8] sm:$0xff]  }
 0x29e   : > { %v976_v23 = vmul.f32 %v1999_v34, %v2639_v43  ;;  %1889 = vmatprep.subr.bf16.mxu1 %v1936_v42  ;;  %v2689_v43 = vld [vmem:[%s429_s23] ss:$0 sm:$0xff] }
 0x29f   : > { %v984_v20 = vpack.c.bf16 %v975_v41, %v974_v57 }
 0x2a0   : > { %v2001_v53 = vpop.eup %2000  ;;  %1890 = vmatpush3.bf16.msra.mxu1 %v1936_v42 }
 0x2a1   : > { %1881 = vmatprep.mubr.msk.bf16.mxu0 %vm500_vm1, %v984_v20  ;;  %v977_v25 = vmul.f32 %v2001_v53, %v2648_v17  ;;  %1891 = vmatprep.subr.bf16.mxu1 %v1937_v11 }
 0x2a3   : > { %v985_v9 = vpack.c.bf16 %v977_v25, %v976_v23 }
 0x2a4   : > { %1892 = vmatpush3.bf16.msra.mxu1 %v1937_v11 }
 0x2a5   : > { %1882 = vmatmul.mubr.msk.bf16.gmra.mxu0 %vm500_vm1, %v985_v9 }
 0x34d   : > { %v1871_v17 = vpop.f32.mrf.mxu0 }
 0x34e   : > { %v1068_v12 = vadd.f32 %v1871_v17, %v2689_v43 }
 0x34f   : > { %v1059_v13 = vpop.f32.mrf.mxu0 }
 0x350   : > { %v1140_v4 = vmul.f32 0.70710677, %v1068_v12  ;;  %v1060_v27 = vadd.f32 %v2689_v43, %v1059_v13  ;;  %v1124_v16 = vmul.f32 0.5, %v1068_v12 }
 0x351   : > { %v1872_v31 = vpop.f32.mrf.mxu0 }
 0x352   : > { %v1138_v45 = vmul.f32 0.70710677, %v1060_v27  ;;  %v1071_v54 = vadd.f32 %v1872_v31, %v2689_v43  ;;  %2002 = verf.f32 %v1140_v4  ;;  %v1122_v42 = vmul.f32 0.5, %v1060_v27 }
 0x353   : > { %v1062_v29 = vpop.f32.mrf.mxu0 }
 0x354   : > { %v1141_v35 = vmul.f32 0.70710677, %v1071_v54  ;;  %v1063_v6 = vadd.f32 %v2689_v43, %v1062_v29  ;;  %2004 = verf.f32 %v1138_v45  ;;  %v1125_v25 = vmul.f32 0.5, %v1071_v54 }
 0x355   : > { %v1875_v48 = vpop.f32.mrf.mxu0 }
 0x356   : > { %2006 = verf.f32 %v1141_v35  ;;  %v1139_v38 = vmul.f32 0.70710677, %v1063_v6  ;;  %v2696_v18 = vadd.f32 %v1875_v48, %v2689_v43  ;;  %v1123_v13 = vmul.f32 0.5, %v1063_v6 }
 0x357   : > { %v1075_v2 = vpop.f32.mrf.mxu0 }
 0x358   : > { %2008 = verf.f32 %v1139_v38  ;;  %v2699_v33 = vadd.f32 %v2689_v43, %v1075_v2  ;;  %v1144_v39 = vmul.f32 0.70710677, %v2696_v18 }
 0x359   : > { %v1876_v49 = vpop.f32.mrf.mxu0 }
 0x35a   : > { %v1142_v52 = vmul.f32 0.70710677, %v2699_v33  ;;  %v1087_v7 = vadd.f32 %v1876_v49, %v2689_v43 }
 0x35b   : > { %v1078_v58 = vpop.f32.mrf.mxu0 }
 0x35c   : > { %2010 = verf.f32 %v1142_v52  ;;  %v1145_v26 = vmul.f32 0.70710677, %v1087_v7  ;;  %v1079_v14 = vadd.f32 %v2689_v43, %v1078_v58 }
 0x35d   : > { %2012 = verf.f32 %v1144_v39  ;;  %v1879_v59 = vpop.f32.mrf.mxu0 }
 0x35e   : > { %2014 = verf.f32 %v1145_v26  ;;  %v1143_v37 = vmul.f32 0.70710677, %v1079_v14  ;;  %v2706_v55 = vadd.f32 %v1879_v59, %v2689_v43 }
 0x35f   : > { %v1091_v40 = vpop.f32.mrf.mxu0  ;;  %v2003_v15 = vpop.eup %2002 }
 0x360   : > { %2016 = verf.f32 %v1143_v37  ;;  %v1148_v0 = vmul.f32 0.70710677, %v2706_v55  ;;  %v2710_v21 = vadd.f32 %v2689_v43, %v1091_v40  ;;  %v1172_v23 = vadd.f32 1.0, %v2003_v15 }
 0x361   : > { %v1880_v44 = vpop.f32.mrf.mxu0  ;;  %v2005_v47 = vpop.eup %2004  ;;  %v1126_v15 = vmul.f32 0.5, %v2699_v33 }
 0x362   : > { %v2713_v3 = vadd.f32 %v1880_v44, %v2689_v43  ;;  %v1146_v8 = vmul.f32 0.70710677, %v2710_v21  ;;  %2018 = verf.f32 %v1148_v0  ;;  %v1170_v10 = vadd.f32 1.0, %v2005_v47 }
 0x363   : > { %v2007_v5 = vpop.eup %2006  ;;  %v1094_v57 = vpop.f32.mrf.mxu0  ;;  %v1188_v35 = vmul.f32 %v1172_v23, %v1124_v16  ;;  %v1129_v44 = vmul.f32 0.5, %v1087_v7  ;;  %v1127_v47 = vmul.f32 0.5, %v1079_v14 }
 0x364   : > { %v1173_v41 = vadd.f32 1.0, %v2007_v5  ;;  %v1149_v34 = vmul.f32 0.70710677, %v2713_v3  ;;  %v2718_v20 = vadd.f32 %v2689_v43, %v1094_v57  ;;  %2020 = verf.f32 %v1146_v8 }
 0x365   : > { %v2009_v53 = vpop.eup %2008  ;;  %v1883_v9 = vpop.f32.mrf.mxu0  ;;  %v1186_v38 = vmul.f32 %v1170_v10, %v1122_v42 }
 0x366   : > { %2022 = verf.f32 %v1149_v34  ;;  %v1147_v11 = vmul.f32 0.70710677, %v2718_v20  ;;  %v1189_v17 = vmul.f32 %v1173_v41, %v1125_v25  ;;  %v2722_v4 = vadd.f32 %v1883_v9, %v2689_v43 }
 0x367   : > { %v1107_v31 = vpop.f32.mrf.mxu0  ;;  %v1171_v45 = vadd.f32 1.0, %v2009_v53  ;;  %v1128_v34 = vmul.f32 0.5, %v2696_v18  ;;  %v1133_v18 = vmul.f32 0.5, %v2713_v3 }
 0x368   : > { %2024 = verf.f32 %v1147_v11  ;;  %v2725_v29 = vadd.f32 %v2689_v43, %v1107_v31  ;;  %v1152_v2 = vmul.f32 0.70710677, %v2722_v4  ;;  %v1203_v49 = vpack.c.bf16 %v1189_v17, %v1188_v35 }
 0x369   : > { %v2011_v54 = vpop.eup %2010  ;;  %v1884_v48 = vpop.f32.mrf.mxu0  ;;  %v1187_v12 = vmul.f32 %v1171_v45, %v1123_v13  ;;  %v1130_v17 = vmul.f32 0.5, %v2710_v21  ;;  %v1131_v31 = vmul.f32 0.5, %v2718_v20 }
 0x36a   : > { %v2013_v27 = vpop.eup %2012  ;;  %v1150_v39 = vmul.f32 0.70710677, %v2725_v29  ;;  %v1119_v52 = vadd.f32 %v1884_v48, %v2689_v43  ;;  %v1174_v59 = vadd.f32 1.0, %v2011_v54  ;;  %v1132_v54 = vmul.f32 0.5, %v2706_v55 }
 0x36b   : > { %v2015_v6 = vpop.eup %2014  ;;  %v1110_v58 = vpop.f32.mrf.mxu0  ;;  %v1202_v26 = vpack.c.bf16 %v1187_v12, %v1186_v38  ;;  %v1176_v8 = vadd.f32 1.0, %v2013_v27  ;;  %v1134_v20 = vmul.f32 0.5, %v2725_v29  ;;  %v1824_v29 = vld [vmem:[%s437_s17] ss:$0 sm:$0xff] }
 0x36c   : > { %v1177_v37 = vadd.f32 1.0, %v2015_v6  ;;  %2026 = verf.f32 %v1150_v39  ;;  %v1111_v40 = vadd.f32 %v2689_v43, %v1110_v58  ;;  %v1153_v5 = vmul.f32 0.70710677, %v1119_v52 }
 0x36d   : > { %v2017_v0 = vpop.eup %2016  ;;  %1893 = vmatprep.mubr.msk.bf16.mxu1 %vm1249_vm2, %v1202_v26  ;;  %2028 = verf.f32 %v1152_v2  ;;  %v1190_v53 = vmul.f32 %v1174_v59, %v1126_v15  ;;  %v1192_v7 = vmul.f32 %v1176_v8, %v1128_v34  ;;  %v1137_v59 = vmul.f32 0.5, %v1119_v52 }
 0x36e   : > { %v1175_v57 = vadd.f32 1.0, %v2017_v0  ;;  %v1151_v41 = vmul.f32 0.70710677, %v1111_v40  ;;  %1894 = vmatmul.mubr.msk.bf16.vlgmr.msra.gmra.mxu1 %vm1249_vm2, %v1203_v49  ;;  %2030 = verf.f32 %v1153_v5  ;;  %v1193_v23 = vmul.f32 %v1177_v37, %v1129_v44 }
 0x36f   : > { %v2019_v25 = vpop.eup %2018  ;;  %v1135_v55 = vmul.f32 0.5, %v1111_v40  ;;  %v1136_v0 = vmul.f32 0.5, %v2722_v4 }
 0x370   : > { %v1191_v43 = vmul.f32 %v1175_v57, %v1127_v47  ;;  %2032 = verf.f32 %v1151_v41  ;;  %v1205_v10 = vpack.c.bf16 %v1193_v23, %v1192_v7  ;;  %v1180_v13 = vadd.f32 1.0, %v2019_v25 }
 0x371   : > { %v2021_v33 = vpop.eup %2020 }
 0x372   : > { %v1204_v14 = vpack.c.bf16 %v1191_v43, %v1190_v53  ;;  %v1178_v16 = vadd.f32 1.0, %v2021_v33  ;;  %v1196_v27 = vmul.f32 %v1180_v13, %v1132_v54 }
 0x373   : > { %v2023_v9 = vpop.eup %2022 }
 0x374   : > { %v1181_v42 = vadd.f32 1.0, %v2023_v9  ;;  %1897 = vmatprep.mubr.msk.bf16.mxu1 %vm1249_vm2, %v1204_v14  ;;  %v1194_v35 = vmul.f32 %v1178_v16, %v1130_v17 }
 0x375   : > { %v2025_v11 = vpop.eup %2024 }
 0x376   : > { %v1179_v45 = vadd.f32 1.0, %v2025_v11  ;;  %1898 = vmatmul.mubr.msk.bf16.gmra.mxu1 %vm1249_vm2, %v1205_v10  ;;  %v1197_v48 = vmul.f32 %v1181_v42, %v1133_v18 }
 0x378   : > { %v1195_v38 = vmul.f32 %v1179_v45, %v1131_v31  ;;  %v1207_v49 = vpack.c.bf16 %v1197_v48, %v1196_v27 }
 0x379   : > { %v2027_v12 = vpop.eup %2026 }
 0x37a   : > { %v1206_v2 = vpack.c.bf16 %v1195_v38, %v1194_v35  ;;  %v2029_v39 = vpop.eup %2028  ;;  %v1182_v21 = vadd.f32 1.0, %v2027_v12 }
 0x37b   : > { %v2031_v6 = vpop.eup %2030  ;;  %v1184_v26 = vadd.f32 1.0, %v2029_v39 }
 0x37c   : > { %1901 = vmatprep.mubr.msk.bf16.mxu1 %vm1249_vm2, %v1206_v2  ;;  %v1185_v58 = vadd.f32 1.0, %v2031_v6  ;;  %v1198_v15 = vmul.f32 %v1182_v21, %v1134_v20 }
 0x37d   : > { %v2033_v3 = vpop.eup %2032  ;;  %v1200_v5 = vmul.f32 %v1184_v26, %v1136_v0 }
 0x37e   : > { %v1183_v37 = vadd.f32 1.0, %v2033_v3  ;;  %1902 = vmatmul.mubr.msk.bf16.gmra.mxu1 %vm1249_vm2, %v1207_v49  ;;  %v1201_v44 = vmul.f32 %v1185_v58, %v1137_v59 }
 0x380   : > { %v1199_v47 = vmul.f32 %v1183_v37, %v1135_v55  ;;  %v1209_v57 = vpack.c.bf16 %v1201_v44, %v1200_v5 }
 0x382   : > { %v1208_v8 = vpack.c.bf16 %v1199_v47, %v1198_v15 }
 0x384   : > { %1905 = vmatprep.mubr.msk.bf16.mxu1 %vm1249_vm2, %v1208_v8 }
 0x386   : > { %1906 = vmatmul.mubr.msk.bf16.gmra.mxu1 %vm1249_vm2, %v1209_v57 }
 0x42e   : > { %v1895_v52 = vpop.f32.mrf.mxu1 }
 0x42f   : > { %v1317_v40 = vadd.f32 %v1895_v52, %v1824_v29 }
 0x430   : > { %v1308_v41 = vpop.f32.mrf.mxu1 }
 0x431   : > { %v2753_v4 = vadd.f32 %v1317_v40, %v2452_v61  ;;  %v1309_v34 = vadd.f32 %v1824_v29, %v1308_v41 }
 0x432   : > { %v1896_v53 = vpop.f32.mrf.mxu1 }
 0x433   : > { %1389 = vst.msk [vmem:[#allocation2 + $0x10] sm:$0xff] %vm500_vm1, %v2753_v4  ;;  %v2758_v23 = vadd.f32 %v1309_v34, %v2437_v62  ;;  %v1320_v43 = vadd.f32 %v1896_v53, %v1824_v29 }
 0x434   : > { %v1311_v25 = vpop.f32.mrf.mxu1 }
 0x435   : > { %1387 = vst.msk [vmem:[#allocation2] sm:$0xff] %vm500_vm1, %v2758_v23  ;;  %v2763_v33 = vadd.f32 %v1320_v43, %v2464_v50  ;;  %v1312_v7 = vadd.f32 %v1824_v29, %v1311_v25 }
 0x436   : > { %v1899_v14 = vpop.f32.mrf.mxu1 }
 0x437   : > { %1390 = vst.msk [vmem:[#allocation2 + $0x18] sm:$0xff] %vm500_vm1, %v2763_v33  ;;  %v2768_v61 = vadd.f32 %v1312_v7, %v2449_v30  ;;  %v1333_v9 = vadd.f32 %v1899_v14, %v1824_v29 }
 0x438   : > { %v1324_v10 = vpop.f32.mrf.mxu1 }
 0x439   : > { %1388 = vst.msk [vmem:[#allocation2 + $0x8] sm:$0xff] %vm500_vm1, %v2768_v61  ;;  %v2773_v62 = vadd.f32 %v1333_v9, %v2484_v60  ;;  %v1325_v16 = vadd.f32 %v1824_v29, %v1324_v10 }
 0x43a   : > { %v1900_v42 = vpop.f32.mrf.mxu1 }
 0x43b   : > { %1393 = vst.msk [vmem:[#allocation2 + $0x30] sm:$0xff] %vm500_vm1, %v2773_v62  ;;  %v2778_v50 = vadd.f32 %v1325_v16, %v2468_v56  ;;  %v1336_v11 = vadd.f32 %v1900_v42, %v1824_v29 }
 0x43c   : > { %v1327_v17 = vpop.f32.mrf.mxu1 }
 0x43d   : > { %1391 = vst.msk [vmem:[#allocation2 + $0x20] sm:$0xff] %vm500_vm1, %v2778_v50  ;;  %v2783_v30 = vadd.f32 %v1336_v11, %v2496_v28  ;;  %v1328_v13 = vadd.f32 %v1824_v29, %v1327_v17 }
 0x43e   : > { %v1903_v18 = vpop.f32.mrf.mxu1 }
 0x43f   : > { %1394 = vst.msk [vmem:[#allocation2 + $0x38] sm:$0xff] %vm500_vm1, %v2783_v30  ;;  %v2788_v60 = vadd.f32 %v1328_v13, %v2480_v22  ;;  %v1349_v31 = vadd.f32 %v1903_v18, %v1824_v29 }
 0x440   : > { %v1340_v45 = vpop.f32.mrf.mxu1 }
 0x441   : > { %1392 = vst.msk [vmem:[#allocation2 + $0x28] sm:$0xff] %vm500_vm1, %v2788_v60  ;;  %v2793_v56 = vadd.f32 %v1349_v31, %v2516_v46  ;;  %v1341_v54 = vadd.f32 %v1824_v29, %v1340_v45 }
 0x442   : > { %v1904_v35 = vpop.f32.mrf.mxu1 }
 0x443   : > { %1397 = vst.msk [vmem:[#allocation2 + $0x50] sm:$0xff] %vm500_vm1, %v2793_v56  ;;  %v2798_v28 = vadd.f32 %v1341_v54, %v2500_v24  ;;  %v1352_v48 = vadd.f32 %v1904_v35, %v1824_v29 }
 0x444   : > { %v1343_v38 = vpop.f32.mrf.mxu1 }
 0x445   : > { %1395 = vst.msk [vmem:[#allocation2 + $0x40] sm:$0xff] %vm500_vm1, %v2798_v28  ;;  %v2803_v22 = vadd.f32 %v1352_v48, %v2528_v36  ;;  %v1344_v12 = vadd.f32 %v1824_v29, %v1343_v38 }
 0x446   : > { %v1907_v27 = vpop.f32.mrf.mxu1 }
 0x447   : > { %1398 = vst.msk [vmem:[#allocation2 + $0x58] sm:$0xff] %vm500_vm1, %v2803_v22  ;;  %v2808_v46 = vadd.f32 %v1344_v12, %v2512_v32  ;;  %v1365_v2 = vadd.f32 %v1907_v27, %v1824_v29 }
 0x448   : > { %v1356_v39 = vpop.f32.mrf.mxu1 }
 0x449   : > { %1396 = vst.msk [vmem:[#allocation2 + $0x48] sm:$0xff] %vm500_vm1, %v2808_v46  ;;  %v2813_v24 = vadd.f32 %v1365_v2, %v2547_v63  ;;  %v1357_v6 = vadd.f32 %v1824_v29, %v1356_v39 }
 0x44a   : > { %v1908_v49 = vpop.f32.mrf.mxu1 }
 0x44b   : > { %1401 = vst.msk [vmem:[#allocation2 + $0x70] sm:$0xff] %vm500_vm1, %v2813_v24  ;;  %v2818_v36 = vadd.f32 %v1357_v6, %v2532_v51  ;;  %v1368_v21 = vadd.f32 %v1908_v49, %v1824_v29 }
 0x44c   : > { %v1359_v3 = vpop.f32.mrf.mxu1 }
 0x44d   : > { %1399 = vst.msk [vmem:[#allocation2 + $0x60] sm:$0xff] %vm500_vm1, %v2818_v36  ;;  %v2823_v32 = vadd.f32 %v1368_v21, %v2555_v1  ;;  %v1360_v20 = vadd.f32 %v1824_v29, %v1359_v3  ;;  %1406 = sbr.rel (%p1837_p6) target bundleno = 1447 (0x5a7), region = 64 }
 0x44f   : > { %1402 = vst.msk [vmem:[#allocation2 + $0x78] sm:$0xff] %vm500_vm1, %v2823_v32  ;;  %v2828_v63 = vadd.f32 %v1360_v20, %v2543_v19 }
 0x451   : > { %1400 = vst.msk [vmem:[#allocation2 + $0x68] sm:$0xff] %vm500_vm1, %v2828_v63 }
 0x452   : > { %v1409_v51 = vsel %vm500_vm1, %v2758_v23, 0.0  ;;  %v1415_v1 = vsel %vm500_vm1, %v2753_v4, 0.0  ;;  %v1412_v58 = vsel %vm500_vm1, %v2768_v61, 0.0  ;;  %v1418_v19 = vsel %vm500_vm1, %v2763_v33, 0.0 }
 0x453   : > { %1410 = vadd.xlane.f32.xlu0 %v1409_v51  ;;  %1416 = vadd.xlane.f32.xlu1 %v1415_v1  ;;  %v1421_v26 = vsel %vm500_vm1, %v2778_v50, 0.0  ;;  %v1424_v59 = vsel %vm500_vm1, %v2788_v60, 0.0  ;;  %v1427_v55 = vsel %vm500_vm1, %v2773_v62, 0.0  ;;  %v1430_v37 = vsel %vm500_vm1, %v2783_v30, 0.0 }
 0x454   : > { %v1433_v0 = vsel %vm500_vm1, %v2798_v28, 0.0  ;;  %v1436_v15 = vsel %vm500_vm1, %v2808_v46, 0.0  ;;  %v1439_v44 = vsel %vm500_vm1, %v2793_v56, 0.0  ;;  %v1442_v47 = vsel %vm500_vm1, %v2803_v22, 0.0 }
 0x455   : > { %v1445_v5 = vsel %vm500_vm1, %v2818_v36, 0.0  ;;  %v1448_v8 = vsel %vm500_vm1, %v2828_v63, 0.0  ;;  %v1451_v57 = vsel %vm500_vm1, %v2813_v24, 0.0  ;;  %v1454_v29 = vsel %vm500_vm1, %v2823_v32, 0.0 }
 0x457   : > { %1413 = vadd.xlane.f32.xlu0 %v1412_v58  ;;  %1419 = vadd.xlane.f32.xlu1 %v1418_v19 }
 0x45b   : > { %1422 = vadd.xlane.f32.xlu0 %v1421_v26  ;;  %1425 = vadd.xlane.f32.xlu1 %v1424_v59 }
 0x45f   : > { %1428 = vadd.xlane.f32.xlu0 %v1427_v55  ;;  %1431 = vadd.xlane.f32.xlu1 %v1430_v37 }
 0x463   : > { %1434 = vadd.xlane.f32.xlu0 %v1433_v0  ;;  %1437 = vadd.xlane.f32.xlu1 %v1436_v15 }
 0x467   : > { %1440 = vadd.xlane.f32.xlu0 %v1439_v44  ;;  %1443 = vadd.xlane.f32.xlu1 %v1442_v47 }
 0x46b   : > { %1446 = vadd.xlane.f32.xlu0 %v1445_v5  ;;  %1449 = vadd.xlane.f32.xlu1 %v1448_v8 }
 0x46f   : > { %1452 = vadd.xlane.f32.xlu0 %v1451_v57  ;;  %1455 = vadd.xlane.f32.xlu1 %v1454_v29 }
 0x4dc   : > { %v1411_v52 = vpop.xlane.xlu0 %1410  ;;  %v1417_v40 = vpop.xlane.xlu1 %1416 }
 0x4dd   : > { %v1457_v41 = vmul.f32 0.0625, %v1411_v52  ;;  %v1459_v34 = vmul.f32 0.0625, %v1417_v40 }
 0x4df   : > { %v2866_v53 = vsub.f32 %v2758_v23, %v1457_v41  ;;  %v2869_v43 = vsub.f32 %v2753_v4, %v1459_v34 }
 0x4e0   : > { %v1414_v25 = vpop.xlane.xlu0 %1413  ;;  %v1420_v7 = vpop.xlane.xlu1 %1419 }
 0x4e1   : > { %v1458_v14 = vmul.f32 0.0625, %v1414_v25  ;;  %v1460_v9 = vmul.f32 0.0625, %v1420_v7  ;;  %v1489_v10 = vmul.f32 %v2866_v53, %v2866_v53  ;;  %v1491_v16 = vmul.f32 %v2869_v43, %v2869_v43 }
 0x4e3   : > { %v2876_v42 = vsub.f32 %v2768_v61, %v1458_v14  ;;  %v2879_v11 = vsub.f32 %v2763_v33, %v1460_v9  ;;  %v1505_v23 = vsel %vm500_vm1, %v1489_v10, 0.0  ;;  %v1511_v13 = vsel %vm500_vm1, %v1491_v16, 0.0 }
 0x4e4   : > { %1506 = vadd.xlane.f32.xlu0 %v1505_v23  ;;  %v1423_v4 = vpop.xlane.xlu0 %1422  ;;  %v1426_v17 = vpop.xlane.xlu1 %1425 }
 0x4e5   : > { %v1461_v18 = vmul.f32 0.0625, %v1423_v4  ;;  %v1462_v31 = vmul.f32 0.0625, %v1426_v17  ;;  %v1490_v45 = vmul.f32 %v2876_v42, %v2876_v42  ;;  %v1492_v54 = vmul.f32 %v2879_v11, %v2879_v11 }
 0x4e7   : > { %v2888_v61 = vsub.f32 %v2778_v50, %v1461_v18  ;;  %v2891_v33 = vsub.f32 %v2788_v60, %v1462_v31  ;;  %v1508_v35 = vsel %vm500_vm1, %v1490_v45, 0.0  ;;  %v1514_v12 = vsel %vm500_vm1, %v1492_v54, 0.0 }
 0x4e8   : > { %1512 = vadd.xlane.f32.xlu0 %v1511_v13  ;;  %1509 = vadd.xlane.f32.xlu1 %v1508_v35  ;;  %v1429_v48 = vpop.xlane.xlu0 %1428  ;;  %v1432_v38 = vpop.xlane.xlu1 %1431 }
 0x4e9   : > { %v1463_v27 = vmul.f32 0.0625, %v1429_v48  ;;  %v1464_v2 = vmul.f32 0.0625, %v1432_v38  ;;  %v1493_v39 = vmul.f32 %v2888_v61, %v2888_v61  ;;  %v1494_v50 = vmul.f32 %v2891_v33, %v2891_v33 }
 0x4eb   : > { %v2900_v6 = vsub.f32 %v2773_v62, %v1463_v27  ;;  %v2903_v60 = vsub.f32 %v2783_v30, %v1464_v2  ;;  %v1517_v49 = vsel %vm500_vm1, %v1493_v39, 0.0  ;;  %v1520_v20 = vsel %vm500_vm1, %v1494_v50, 0.0 }
 0x4ec   : > { %1515 = vadd.xlane.f32.xlu1 %v1514_v12  ;;  %1518 = vadd.xlane.f32.xlu0 %v1517_v49  ;;  %v1435_v21 = vpop.xlane.xlu0 %1434  ;;  %v1438_v3 = vpop.xlane.xlu1 %1437 }
 0x4ed   : > { %v1465_v51 = vmul.f32 0.0625, %v1435_v21  ;;  %v1466_v1 = vmul.f32 0.0625, %v1438_v3  ;;  %v1495_v58 = vmul.f32 %v2900_v6, %v2900_v6  ;;  %v1496_v62 = vmul.f32 %v2903_v60, %v2903_v60 }
 0x4ef   : > { %v2912_v19 = vsub.f32 %v2798_v28, %v1465_v51  ;;  %v2915_v30 = vsub.f32 %v2808_v46, %v1466_v1  ;;  %v1523_v26 = vsel %vm500_vm1, %v1495_v58, 0.0  ;;  %v1526_v37 = vsel %vm500_vm1, %v1496_v62, 0.0 }
 0x4f0   : > { %1521 = vadd.xlane.f32.xlu1 %v1520_v20  ;;  %1524 = vadd.xlane.f32.xlu0 %v1523_v26  ;;  %v1441_v59 = vpop.xlane.xlu0 %1440  ;;  %v1444_v55 = vpop.xlane.xlu1 %1443 }
 0x4f1   : > { %v1467_v0 = vmul.f32 0.0625, %v1441_v59  ;;  %v1468_v15 = vmul.f32 0.0625, %v1444_v55  ;;  %v1497_v44 = vmul.f32 %v2912_v19, %v2912_v19  ;;  %v1498_v28 = vmul.f32 %v2915_v30, %v2915_v30 }
 0x4f3   : > { %v2924_v47 = vsub.f32 %v2793_v56, %v1467_v0  ;;  %v2927_v46 = vsub.f32 %v2803_v22, %v1468_v15  ;;  %v1529_v5 = vsel %vm500_vm1, %v1497_v44, 0.0  ;;  %v1532_v29 = vsel %vm500_vm1, %v1498_v28, 0.0 }
 0x4f4   : > { %1527 = vadd.xlane.f32.xlu1 %v1526_v37  ;;  %1530 = vadd.xlane.f32.xlu0 %v1529_v5  ;;  %v1447_v8 = vpop.xlane.xlu0 %1446  ;;  %v1450_v57 = vpop.xlane.xlu1 %1449  ;;  %v2964_v5 = vld [vmem:[%s3099_s7] ss:$0 sm:$0xff] }
 0x4f5   : > { %v1469_v52 = vmul.f32 0.0625, %v1447_v8  ;;  %v1470_v40 = vmul.f32 0.0625, %v1450_v57  ;;  %v1499_v41 = vmul.f32 %v2924_v47, %v2924_v47  ;;  %v1500_v56 = vmul.f32 %v2927_v46, %v2927_v46 }
 0x4f7   : > { %v2936_v34 = vsub.f32 %v2818_v36, %v1469_v52  ;;  %v2939_v22 = vsub.f32 %v2828_v63, %v1470_v40  ;;  %v1535_v25 = vsel %vm500_vm1, %v1499_v41, 0.0  ;;  %v1538_v9 = vsel %vm500_vm1, %v1500_v56, 0.0  ;;  %v2970_v52 = vld [vmem:[%s3100_s8] ss:$0 sm:$0xff] }
 0x4f8   : > { %1533 = vadd.xlane.f32.xlu1 %v1532_v29  ;;  %1536 = vadd.xlane.f32.xlu0 %v1535_v25  ;;  %v1453_v7 = vpop.xlane.xlu0 %1452  ;;  %v1456_v14 = vpop.xlane.xlu1 %1455 }
 0x4f9   : > { %v1471_v10 = vmul.f32 0.0625, %v1453_v7  ;;  %v1472_v16 = vmul.f32 0.0625, %v1456_v14  ;;  %v1501_v23 = vmul.f32 %v2936_v34, %v2936_v34  ;;  %v1502_v36 = vmul.f32 %v2939_v22, %v2939_v22 }
 0x4fb   : > { %v2948_v4 = vsub.f32 %v2813_v24, %v1471_v10  ;;  %v2951_v63 = vsub.f32 %v2823_v32, %v1472_v16  ;;  %v1541_v17 = vsel %vm500_vm1, %v1501_v23, 0.0  ;;  %v1544_v13 = vsel %vm500_vm1, %v1502_v36, 0.0 }
 0x4fc   : > { %1539 = vadd.xlane.f32.xlu1 %v1538_v9  ;;  %1542 = vadd.xlane.f32.xlu0 %v1541_v17 }
 0x4fd   : > { %v1503_v18 = vmul.f32 %v2948_v4, %v2948_v4  ;;  %v1504_v31 = vmul.f32 %v2951_v63, %v2951_v63 }
 0x4ff   : > { %v1547_v45 = vsel %vm500_vm1, %v1503_v18, 0.0  ;;  %v1550_v24 = vsel %vm500_vm1, %v1504_v31, 0.0 }
 0x500   : > { %1545 = vadd.xlane.f32.xlu1 %v1544_v13  ;;  %1548 = vadd.xlane.f32.xlu0 %v1547_v45 }
 0x504   : > { %1551 = vadd.xlane.f32.xlu1 %v1550_v24 }
 0x56d   : > { %v1507_v32 = vpop.xlane.xlu0 %1506 }
 0x56e   : > { %v1553_v54 = vmul.f32 0.0625, %v1507_v32 }
 0x570   : > { %v1569_v35 = vadd.f32 1e-06, %v1553_v54 }
 0x571   : > { %v1510_v48 = vpop.xlane.xlu1 %1509  ;;  %v1513_v38 = vpop.xlane.xlu0 %1512 }
 0x572   : > { %2034 = vrsqrt.f32 %v1569_v35  ;;  %v1554_v12 = vmul.f32 0.0625, %v1510_v48  ;;  %v1555_v27 = vmul.f32 0.0625, %v1513_v38 }
 0x574   : > { %v1570_v2 = vadd.f32 1e-06, %v1554_v12  ;;  %v1571_v39 = vadd.f32 1e-06, %v1555_v27 }
 0x575   : > { %v1516_v50 = vpop.xlane.xlu1 %1515  ;;  %v1519_v49 = vpop.xlane.xlu0 %1518 }
 0x576   : > { %2036 = vrsqrt.f32 %v1570_v2  ;;  %v1556_v21 = vmul.f32 0.0625, %v1516_v50  ;;  %v1557_v3 = vmul.f32 0.0625, %v1519_v49 }
 0x577   : > { %2038 = vrsqrt.f32 %v1571_v39 }
 0x578   : > { %v1572_v20 = vadd.f32 1e-06, %v1556_v21  ;;  %v1573_v51 = vadd.f32 1e-06, %v1557_v3 }
 0x579   : > { %v1522_v1 = vpop.xlane.xlu1 %1521  ;;  %v1525_v58 = vpop.xlane.xlu0 %1524 }
 0x57a   : > { %2040 = vrsqrt.f32 %v1572_v20  ;;  %v1558_v62 = vmul.f32 0.0625, %v1522_v1  ;;  %v1559_v26 = vmul.f32 0.0625, %v1525_v58 }
 0x57b   : > { %2042 = vrsqrt.f32 %v1573_v51 }
 0x57c   : > { %v1574_v59 = vadd.f32 1e-06, %v1558_v62  ;;  %v1575_v55 = vadd.f32 1e-06, %v1559_v26 }
 0x57d   : > { %v1528_v37 = vpop.xlane.xlu1 %1527  ;;  %v1531_v0 = vpop.xlane.xlu0 %1530 }
 0x57e   : > { %2044 = vrsqrt.f32 %v1574_v59  ;;  %v1560_v15 = vmul.f32 0.0625, %v1528_v37  ;;  %v1561_v44 = vmul.f32 0.0625, %v1531_v0 }
 0x57f   : > { %v2035_v28 = vpop.eup %2034  ;;  %2046 = vrsqrt.f32 %v1575_v55 }
 0x580   : > { %v1601_v8 = vmul.f32 %v2035_v28, %v2866_v53  ;;  %v1576_v57 = vadd.f32 1e-06, %v1560_v15  ;;  %v1577_v29 = vadd.f32 1e-06, %v1561_v44 }
 0x581   : > { %v1534_v40 = vpop.xlane.xlu1 %1533  ;;  %v1537_v41 = vpop.xlane.xlu0 %1536 }
 0x582   : > { %v1623_v56 = vmul.f32 %v2964_v5, %v1601_v8  ;;  %2048 = vrsqrt.f32 %v1576_v57  ;;  %v1562_v25 = vmul.f32 0.0625, %v1534_v40  ;;  %v1563_v7 = vmul.f32 0.0625, %v1537_v41 }
 0x583   : > { %v2037_v14 = vpop.eup %2036  ;;  %2050 = vrsqrt.f32 %v1577_v29 }
 0x584   : > { %v2039_v9 = vpop.eup %2038  ;;  %v1645_v10 = vadd.f32 %v2970_v52, %v1623_v56  ;;  %v1602_v53 = vmul.f32 %v2037_v14, %v2876_v42  ;;  %v1578_v16 = vadd.f32 1e-06, %v1562_v25  ;;  %v1579_v23 = vadd.f32 1e-06, %v1563_v7 }
 0x585   : > { %v1603_v36 = vmul.f32 %v2039_v9, %v2869_v43  ;;  %v1540_v17 = vpop.xlane.xlu1 %1539  ;;  %v1543_v13 = vpop.xlane.xlu0 %1542 }
 0x586   : > { %1661 = vst.msk [vmem:[%s3101_s9] sm:$0xff] %vm500_vm1, %v1645_v10  ;;  %v1624_v18 = vmul.f32 %v2964_v5, %v1602_v53  ;;  %2052 = vrsqrt.f32 %v1578_v16  ;;  %v1564_v31 = vmul.f32 0.0625, %v1540_v17  ;;  %v1565_v45 = vmul.f32 0.0625, %v1543_v13 }
 0x587   : > { %v2041_v24 = vpop.eup %2040  ;;  %v1625_v32 = vmul.f32 %v2964_v5, %v1603_v36  ;;  %2054 = vrsqrt.f32 %v1579_v23 }
 0x588   : > { %v2043_v42 = vpop.eup %2042  ;;  %v1646_v54 = vadd.f32 %v2970_v52, %v1624_v18  ;;  %v1604_v43 = vmul.f32 %v2041_v24, %v2879_v11  ;;  %v1580_v35 = vadd.f32 1e-06, %v1564_v31  ;;  %v1581_v48 = vadd.f32 1e-06, %v1565_v45 }
 0x589   : > { %v1647_v38 = vadd.f32 %v2970_v52, %v1625_v32  ;;  %v1605_v12 = vmul.f32 %v2043_v42, %v2888_v61  ;;  %v1546_v27 = vpop.xlane.xlu1 %1545  ;;  %v1549_v2 = vpop.xlane.xlu0 %1548 }
 0x58a   : > { %1662 = vst.msk [vmem:[%s3101_s9 + $0x8] sm:$0xff] %vm500_vm1, %v1646_v54  ;;  %v1626_v39 = vmul.f32 %v2964_v5, %v1604_v43  ;;  %2056 = vrsqrt.f32 %v1580_v35  ;;  %v1566_v50 = vmul.f32 0.0625, %v1546_v27  ;;  %v1567_v49 = vmul.f32 0.0625, %v1549_v2 }
 0x58b   : > { %v2045_v21 = vpop.eup %2044  ;;  %1663 = vst.msk [vmem:[%s3101_s9 + $0x10] sm:$0xff] %vm500_vm1, %v1647_v38  ;;  %v1627_v11 = vmul.f32 %v2964_v5, %v1605_v12  ;;  %2058 = vrsqrt.f32 %v1581_v48 }
 0x58c   : > { %v2047_v61 = vpop.eup %2046  ;;  %v1648_v3 = vadd.f32 %v2970_v52, %v1626_v39  ;;  %v1606_v20 = vmul.f32 %v2045_v21, %v2891_v33  ;;  %v1582_v51 = vadd.f32 1e-06, %v1566_v50  ;;  %v1583_v1 = vadd.f32 1e-06, %v1567_v49 }
 0x58d   : > { %v1649_v58 = vadd.f32 %v2970_v52, %v1627_v11  ;;  %v1607_v62 = vmul.f32 %v2047_v61, %v2900_v6  ;;  %v1552_v26 = vpop.xlane.xlu1 %1551 }
 0x58e   : > { %1664 = vst.msk [vmem:[%s3101_s9 + $0x18] sm:$0xff] %vm500_vm1, %v1648_v3  ;;  %v1628_v59 = vmul.f32 %v2964_v5, %v1606_v20  ;;  %2060 = vrsqrt.f32 %v1582_v51  ;;  %v1568_v55 = vmul.f32 0.0625, %v1552_v26 }
 0x58f   : > { %v2049_v37 = vpop.eup %2048  ;;  %1665 = vst.msk [vmem:[%s3101_s9 + $0x20] sm:$0xff] %vm500_vm1, %v1649_v58  ;;  %v1629_v33 = vmul.f32 %v2964_v5, %v1607_v62  ;;  %2062 = vrsqrt.f32 %v1583_v1 }
 0x590   : > { %v2051_v6 = vpop.eup %2050  ;;  %v1650_v0 = vadd.f32 %v2970_v52, %v1628_v59  ;;  %v1608_v15 = vmul.f32 %v2049_v37, %v2903_v60  ;;  %v1584_v44 = vadd.f32 1e-06, %v1568_v55 }
 0x591   : > { %v1651_v28 = vadd.f32 %v2970_v52, %v1629_v33  ;;  %v1609_v8 = vmul.f32 %v2051_v6, %v2912_v19 }
 0x592   : > { %1666 = vst.msk [vmem:[%s3101_s9 + $0x28] sm:$0xff] %vm500_vm1, %v1650_v0  ;;  %v1630_v57 = vmul.f32 %v2964_v5, %v1608_v15  ;;  %2064 = vrsqrt.f32 %v1584_v44 }
 0x593   : > { %v2053_v29 = vpop.eup %2052  ;;  %1667 = vst.msk [vmem:[%s3101_s9 + $0x30] sm:$0xff] %vm500_vm1, %v1651_v28  ;;  %v1631_v60 = vmul.f32 %v2964_v5, %v1609_v8 }
 0x594   : > { %v2055_v40 = vpop.eup %2054  ;;  %v1652_v41 = vadd.f32 %v2970_v52, %v1630_v57  ;;  %v1610_v19 = vmul.f32 %v2053_v29, %v2915_v30 }
 0x595   : > { %v1653_v56 = vadd.f32 %v2970_v52, %v1631_v60  ;;  %v1611_v25 = vmul.f32 %v2055_v40, %v2924_v47 }
 0x596   : > { %1668 = vst.msk [vmem:[%s3101_s9 + $0x38] sm:$0xff] %vm500_vm1, %v1652_v41  ;;  %v1632_v7 = vmul.f32 %v2964_v5, %v1610_v19 }
 0x597   : > { %v2057_v14 = vpop.eup %2056  ;;  %1669 = vst.msk [vmem:[%s3101_s9 + $0x40] sm:$0xff] %vm500_vm1, %v1653_v56  ;;  %v1633_v9 = vmul.f32 %v2964_v5, %v1611_v25 }
 0x598   : > { %v2059_v30 = vpop.eup %2058  ;;  %v1654_v10 = vadd.f32 %v2970_v52, %v1632_v7  ;;  %v1612_v47 = vmul.f32 %v2057_v14, %v2927_v46 }
 0x599   : > { %v1655_v53 = vadd.f32 %v2970_v52, %v1633_v9  ;;  %v1613_v16 = vmul.f32 %v2059_v30, %v2936_v34 }
 0x59a   : > { %1670 = vst.msk [vmem:[%s3101_s9 + $0x48] sm:$0xff] %vm500_vm1, %v1654_v10  ;;  %v1634_v23 = vmul.f32 %v2964_v5, %v1612_v47 }
 0x59b   : > { %v2061_v36 = vpop.eup %2060  ;;  %1671 = vst.msk [vmem:[%s3101_s9 + $0x50] sm:$0xff] %vm500_vm1, %v1655_v53  ;;  %v1635_v17 = vmul.f32 %v2964_v5, %v1613_v16 }
 0x59c   : > { %v2063_v46 = vpop.eup %2062  ;;  %v1656_v13 = vadd.f32 %v2970_v52, %v1634_v23  ;;  %v1614_v34 = vmul.f32 %v2061_v36, %v2939_v22 }
 0x59d   : > { %v1657_v18 = vadd.f32 %v2970_v52, %v1635_v17  ;;  %v1615_v31 = vmul.f32 %v2063_v46, %v2948_v4 }
 0x59e   : > { %1672 = vst.msk [vmem:[%s3101_s9 + $0x58] sm:$0xff] %vm500_vm1, %v1656_v13  ;;  %v1636_v45 = vmul.f32 %v2964_v5, %v1614_v34 }
 0x59f   : > { %v2065_v24 = vpop.eup %2064  ;;  %1673 = vst.msk [vmem:[%s3101_s9 + $0x60] sm:$0xff] %vm500_vm1, %v1657_v18  ;;  %v1637_v32 = vmul.f32 %v2964_v5, %v1615_v31 }
 0x5a0   : > { %v1658_v22 = vadd.f32 %v2970_v52, %v1636_v45  ;;  %v1616_v42 = vmul.f32 %v2065_v24, %v2951_v63 }
 0x5a1   : > { %v1659_v4 = vadd.f32 %v2970_v52, %v1637_v32 }
 0x5a2   : > { %1674 = vst.msk [vmem:[%s3101_s9 + $0x68] sm:$0xff] %vm500_vm1, %v1658_v22  ;;  %v1638_v54 = vmul.f32 %v2964_v5, %v1616_v42 }
 0x5a3   : > { %1675 = vst.msk [vmem:[%s3101_s9 + $0x70] sm:$0xff] %vm500_vm1, %v1659_v4 }
 0x5a4   : > { %v1660_v43 = vadd.f32 %v2970_v52, %v1638_v54 }
 0x5a6   : > { %1676 = vst.msk [vmem:[%s3101_s9 + $0x78] sm:$0xff] %vm500_vm1, %v1660_v43 }
 0x5a7 PF: > { %s19_s11 = sadd.s32 1, %s2088_s11   ;;  %s3103_s30 = smov %s2084_s10 }
 0x5a8   : > { %p16_p7 = scmp.ge.s32.totalorder %s19_s11, 4   ;;  %s3104_s10 = smov %s3106_s12 }
 0x5aa   :  { %18 = sbr.rel (!%p16_p7) target bundleno = 2 (0x2), region = 112 }

// kernel: reverse
= control target key start
LH: loop header
LB: loop body
LE: loop exit
PB: predicated region body
PF: predicated region fallthrough
CT: control target
= control target key end

     0   :  { %v503_v3 = vmov 0.0   ;;  %s1018_s0 = inlined_call_operand.vmem [shape: f32[128,64,3,3], index: 0, kind: input, shape index: {}]   ;;  %s1019_s1 = inlined_call_operand.vmem [shape: bf16[128,64,3,3], index: 1, kind: output, shape index: {}]  }
   0x1   :  { %v360_v0 = vld [vmem:[%s1018_s0 + $0x200] sm:$0xff]  ;;  %v376_v19 = vld [vmem:[%s1018_s0 + $0x208] sm:$0xff]  ;;  %v394_v37 = vld [vmem:[%s1018_s0 + $0x210] sm:$0xff] }
   0x2   :  { %v361_v1 = vld [vmem:[%s1018_s0 + $0x140] sm:$0xff]  ;;  %v4_v4 = vpack.c.bf16 %v503_v3, %v360_v0  ;;  %v378_v20 = vld [vmem:[%s1018_s0 + $0x148] sm:$0xff]  ;;  %v48_v22 = vpack.c.bf16 %v503_v3, %v376_v19  ;;  %v396_v38 = vld [vmem:[%s1018_s0 + $0x150] sm:$0xff]  ;;  %v93_v40 = vpack.c.bf16 %v503_v3, %v394_v37 }
   0x3   :  { %v363_v2 = vld [vmem:[%s1018_s0 + $0x80] sm:$0xff]  ;;  %v9_v5 = vpack.c.bf16 %v503_v3, %v361_v1  ;;  %v380_v21 = vld [vmem:[%s1018_s0 + $0x88] sm:$0xff]  ;;  %v53_v23 = vpack.c.bf16 %v503_v3, %v378_v20  ;;  %v398_v39 = vld [vmem:[%s1018_s0 + $0x90] sm:$0xff]  ;;  %v98_v41 = vpack.c.bf16 %v503_v3, %v396_v38 }
   0x4   :  { %v14_v6 = vpack.c.bf16 %v503_v3, %v363_v2  ;;  %v365_v7 = vld [vmem:[%s1018_s0 + $0x1c0] sm:$0xff]  ;;  %5 = vst [vmem:[%s1019_s1] sm:$0xf] %v4_v4  ;;  %v58_v24 = vpack.c.bf16 %v503_v3, %v380_v21  ;;  %v382_v25 = vld [vmem:[%s1018_s0 + $0x1c8] sm:$0xff]  ;;  %377 = vst [vmem:[%s1019_s1 + $0x4] sm:$0xf] %v48_v22  ;;  %v103_v42 = vpack.c.bf16 %v503_v3, %v398_v39 }
   0x5   :  { %v367_v8 = vld [vmem:[%s1018_s0 + $0x100] sm:$0xff]  ;;  %v19_v10 = vpack.c.bf16 %v503_v3, %v365_v7  ;;  %362 = vst [vmem:[%s1019_s1 + $0x60] sm:$0xf] %v9_v5  ;;  %v384_v26 = vld [vmem:[%s1018_s0 + $0x108] sm:$0xff]  ;;  %v63_v28 = vpack.c.bf16 %v503_v3, %v382_v25  ;;  %379 = vst [vmem:[%s1019_s1 + $0x64] sm:$0xf] %v53_v23 }
   0x6   :  { %v369_v9 = vld [vmem:[%s1018_s0 + $0x40] sm:$0xff]  ;;  %v24_v11 = vpack.c.bf16 %v503_v3, %v367_v8  ;;  %364 = vst [vmem:[%s1019_s1 + $0xc0] sm:$0xf] %v14_v6  ;;  %v386_v27 = vld [vmem:[%s1018_s0 + $0x48] sm:$0xff]  ;;  %v68_v29 = vpack.c.bf16 %v503_v3, %v384_v26  ;;  %381 = vst [vmem:[%s1019_s1 + $0xc4] sm:$0xf] %v58_v24 }
   0x7   :  { %v29_v12 = vpack.c.bf16 %v503_v3, %v369_v9  ;;  %v371_v13 = vld [vmem:[%s1018_s0 + $0x180] sm:$0xff]  ;;  %366 = vst [vmem:[%s1019_s1 + $0x20] sm:$0xf] %v19_v10  ;;  %v73_v30 = vpack.c.bf16 %v503_v3, %v386_v27  ;;  %v388_v31 = vld [vmem:[%s1018_s0 + $0x188] sm:$0xff]  ;;  %383 = vst [vmem:[%s1019_s1 + $0x24] sm:$0xf] %v63_v28 }
   0x8   :  { %v373_v14 = vld [vmem:[%s1018_s0 + $0xc0] sm:$0xff]  ;;  %v34_v16 = vpack.c.bf16 %v503_v3, %v371_v13  ;;  %368 = vst [vmem:[%s1019_s1 + $0x80] sm:$0xf] %v24_v11  ;;  %v390_v32 = vld [vmem:[%s1018_s0 + $0xc8] sm:$0xff]  ;;  %v78_v34 = vpack.c.bf16 %v503_v3, %v388_v31  ;;  %385 = vst [vmem:[%s1019_s1 + $0x84] sm:$0xf] %v68_v29 }
   0x9   :  { %v41_v15 = vld [vmem:[%s1018_s0] sm:$0xff]  ;;  %v39_v17 = vpack.c.bf16 %v503_v3, %v373_v14  ;;  %370 = vst [vmem:[%s1019_s1 + $0xe0] sm:$0xf] %v29_v12  ;;  %v392_v33 = vld [vmem:[%s1018_s0 + $0x8] sm:$0xff]  ;;  %v83_v35 = vpack.c.bf16 %v503_v3, %v390_v32  ;;  %387 = vst [vmem:[%s1019_s1 + $0xe4] sm:$0xf] %v73_v30 }
   0xa   :  { %v43_v18 = vpack.c.bf16 %v503_v3, %v41_v15  ;;  %372 = vst [vmem:[%s1019_s1 + $0x40] sm:$0xf] %v34_v16  ;;  %v88_v36 = vpack.c.bf16 %v503_v3, %v392_v33  ;;  %v400_v43 = vld [vmem:[%s1018_s0 + $0x1d0] sm:$0xff]  ;;  %389 = vst [vmem:[%s1019_s1 + $0x44] sm:$0xf] %v78_v34  ;;  %v412_v55 = vld [vmem:[%s1018_s0 + $0x218] sm:$0xff] }
   0xb   :  { %374 = vst [vmem:[%s1019_s1 + $0xa0] sm:$0xf] %v39_v17  ;;  %v402_v44 = vld [vmem:[%s1018_s0 + $0x110] sm:$0xff]  ;;  %391 = vst [vmem:[%s1019_s1 + $0xa4] sm:$0xf] %v83_v35  ;;  %v108_v46 = vpack.c.bf16 %v503_v3, %v400_v43  ;;  %v414_v56 = vld [vmem:[%s1018_s0 + $0x158] sm:$0xff]  ;;  %v138_v58 = vpack.c.bf16 %v503_v3, %v412_v55 }
   0xc   :  { %375 = vst [vmem:[%s1019_s1 + $0x100] sm:$0xf] %v43_v18  ;;  %v404_v45 = vld [vmem:[%s1018_s0 + $0x50] sm:$0xff]  ;;  %393 = vst [vmem:[%s1019_s1 + $0x104] sm:$0xf] %v88_v36  ;;  %v113_v47 = vpack.c.bf16 %v503_v3, %v402_v44  ;;  %v416_v57 = vld [vmem:[%s1018_s0 + $0x98] sm:$0xff]  ;;  %v143_v59 = vpack.c.bf16 %v503_v3, %v414_v56 }
   0xd   :  { %v118_v48 = vpack.c.bf16 %v503_v3, %v404_v45  ;;  %v406_v49 = vld [vmem:[%s1018_s0 + $0x190] sm:$0xff]  ;;  %395 = vst [vmem:[%s1019_s1 + $0x8] sm:$0xf] %v93_v40  ;;  %397 = vst [vmem:[%s1019_s1 + $0x68] sm:$0xf] %v98_v41  ;;  %v148_v60 = vpack.c.bf16 %v503_v3, %v416_v57  ;;  %v418_v61 = vld [vmem:[%s1018_s0 + $0x1d8] sm:$0xff] }
   0xe   :  { %v408_v50 = vld [vmem:[%s1018_s0 + $0xd0] sm:$0xff]  ;;  %399 = vst [vmem:[%s1019_s1 + $0xc8] sm:$0xf] %v103_v42  ;;  %v123_v52 = vpack.c.bf16 %v503_v3, %v406_v49  ;;  %401 = vst [vmem:[%s1019_s1 + $0x28] sm:$0xf] %v108_v46  ;;  %v420_v62 = vld [vmem:[%s1018_s0 + $0x118] sm:$0xff]  ;;  %v153_v0 = vpack.c.bf16 %v503_v3, %v418_v61 }
   0xf   :  { %v410_v51 = vld [vmem:[%s1018_s0 + $0x10] sm:$0xff]  ;;  %v128_v53 = vpack.c.bf16 %v503_v3, %v408_v50  ;;  %403 = vst [vmem:[%s1019_s1 + $0x88] sm:$0xf] %v113_v47  ;;  %405 = vst [vmem:[%s1019_s1 + $0xe8] sm:$0xf] %v118_v48  ;;  %v422_v63 = vld [vmem:[%s1018_s0 + $0x58] sm:$0xff]  ;;  %v158_v1 = vpack.c.bf16 %v503_v3, %v420_v62 }
  0x10   :  { %v133_v54 = vpack.c.bf16 %v503_v3, %v410_v51  ;;  %407 = vst [vmem:[%s1019_s1 + $0x48] sm:$0xf] %v123_v52  ;;  %v163_v2 = vpack.c.bf16 %v503_v3, %v422_v63  ;;  %v424_v4 = vld [vmem:[%s1018_s0 + $0x198] sm:$0xff]  ;;  %413 = vst [vmem:[%s1019_s1 + $0xc] sm:$0xf] %v138_v58  ;;  %v430_v10 = vld [vmem:[%s1018_s0 + $0x220] sm:$0xff] }
  0x11   :  { %409 = vst [vmem:[%s1019_s1 + $0xa8] sm:$0xf] %v128_v53  ;;  %v426_v5 = vld [vmem:[%s1018_s0 + $0xd8] sm:$0xff]  ;;  %415 = vst [vmem:[%s1019_s1 + $0x6c] sm:$0xf] %v143_v59  ;;  %v168_v7 = vpack.c.bf16 %v503_v3, %v424_v4  ;;  %v432_v11 = vld [vmem:[%s1018_s0 + $0x160] sm:$0xff]  ;;  %v183_v13 = vpack.c.bf16 %v503_v3, %v430_v10 }
  0x12   :  { %411 = vst [vmem:[%s1019_s1 + $0x108] sm:$0xf] %v133_v54  ;;  %v428_v6 = vld [vmem:[%s1018_s0 + $0x18] sm:$0xff]  ;;  %417 = vst [vmem:[%s1019_s1 + $0xcc] sm:$0xf] %v148_v60  ;;  %v173_v8 = vpack.c.bf16 %v503_v3, %v426_v5  ;;  %v434_v12 = vld [vmem:[%s1018_s0 + $0xa0] sm:$0xff]  ;;  %v188_v14 = vpack.c.bf16 %v503_v3, %v432_v11 }
  0x13   :  { %v178_v9 = vpack.c.bf16 %v503_v3, %v428_v6  ;;  %419 = vst [vmem:[%s1019_s1 + $0x2c] sm:$0xf] %v153_v0  ;;  %421 = vst [vmem:[%s1019_s1 + $0x8c] sm:$0xf] %v158_v1  ;;  %v193_v15 = vpack.c.bf16 %v503_v3, %v434_v12  ;;  %v436_v16 = vld [vmem:[%s1018_s0 + $0x1e0] sm:$0xff]  ;;  %v448_v28 = vld [vmem:[%s1018_s0 + $0x228] sm:$0xff] }
  0x14   :  { %423 = vst [vmem:[%s1019_s1 + $0xec] sm:$0xf] %v163_v2  ;;  %v438_v17 = vld [vmem:[%s1018_s0 + $0x120] sm:$0xff]  ;;  %425 = vst [vmem:[%s1019_s1 + $0x4c] sm:$0xf] %v168_v7  ;;  %v198_v19 = vpack.c.bf16 %v503_v3, %v436_v16  ;;  %v450_v29 = vld [vmem:[%s1018_s0 + $0x168] sm:$0xff]  ;;  %v228_v31 = vpack.c.bf16 %v503_v3, %v448_v28 }
  0x15   :  { %v440_v18 = vld [vmem:[%s1018_s0 + $0x60] sm:$0xff]  ;;  %427 = vst [vmem:[%s1019_s1 + $0xac] sm:$0xf] %v173_v8  ;;  %429 = vst [vmem:[%s1019_s1 + $0x10c] sm:$0xf] %v178_v9  ;;  %v203_v20 = vpack.c.bf16 %v503_v3, %v438_v17  ;;  %v452_v30 = vld [vmem:[%s1018_s0 + $0xa8] sm:$0xff]  ;;  %v233_v32 = vpack.c.bf16 %v503_v3, %v450_v29 }
  0x16   :  { %v208_v21 = vpack.c.bf16 %v503_v3, %v440_v18  ;;  %v442_v22 = vld [vmem:[%s1018_s0 + $0x1a0] sm:$0xff]  ;;  %431 = vst [vmem:[%s1019_s1 + $0x10] sm:$0xf] %v183_v13  ;;  %433 = vst [vmem:[%s1019_s1 + $0x70] sm:$0xf] %v188_v14  ;;  %v238_v33 = vpack.c.bf16 %v503_v3, %v452_v30  ;;  %v454_v34 = vld [vmem:[%s1018_s0 + $0x1e8] sm:$0xff] }
  0x17   :  { %v444_v23 = vld [vmem:[%s1018_s0 + $0xe0] sm:$0xff]  ;;  %435 = vst [vmem:[%s1019_s1 + $0xd0] sm:$0xf] %v193_v15  ;;  %v213_v25 = vpack.c.bf16 %v503_v3, %v442_v22  ;;  %437 = vst [vmem:[%s1019_s1 + $0x30] sm:$0xf] %v198_v19  ;;  %v456_v35 = vld [vmem:[%s1018_s0 + $0x128] sm:$0xff]  ;;  %v243_v37 = vpack.c.bf16 %v503_v3, %v454_v34 }
  0x18   :  { %v446_v24 = vld [vmem:[%s1018_s0 + $0x20] sm:$0xff]  ;;  %v218_v26 = vpack.c.bf16 %v503_v3, %v444_v23  ;;  %439 = vst [vmem:[%s1019_s1 + $0x90] sm:$0xf] %v203_v20  ;;  %441 = vst [vmem:[%s1019_s1 + $0xf0] sm:$0xf] %v208_v21  ;;  %v458_v36 = vld [vmem:[%s1018_s0 + $0x68] sm:$0xff]  ;;  %v248_v38 = vpack.c.bf16 %v503_v3, %v456_v35 }
  0x19   :  { %v223_v27 = vpack.c.bf16 %v503_v3, %v446_v24  ;;  %443 = vst [vmem:[%s1019_s1 + $0x50] sm:$0xf] %v213_v25  ;;  %v253_v39 = vpack.c.bf16 %v503_v3, %v458_v36  ;;  %v460_v40 = vld [vmem:[%s1018_s0 + $0x1a8] sm:$0xff]  ;;  %449 = vst [vmem:[%s1019_s1 + $0x14] sm:$0xf] %v228_v31  ;;  %v466_v46 = vld [vmem:[%s1018_s0 + $0x230] sm:$0xff] }
  0x1a   :  { %445 = vst [vmem:[%s1019_s1 + $0xb0] sm:$0xf] %v218_v26  ;;  %v462_v41 = vld [vmem:[%s1018_s0 + $0xe8] sm:$0xff]  ;;  %451 = vst [vmem:[%s1019_s1 + $0x74] sm:$0xf] %v233_v32  ;;  %v258_v43 = vpack.c.bf16 %v503_v3, %v460_v40  ;;  %v468_v47 = vld [vmem:[%s1018_s0 + $0x170] sm:$0xff]  ;;  %v273_v49 = vpack.c.bf16 %v503_v3, %v466_v46 }
  0x1b   :  { %447 = vst [vmem:[%s1019_s1 + $0x110] sm:$0xf] %v223_v27  ;;  %v464_v42 = vld [vmem:[%s1018_s0 + $0x28] sm:$0xff]  ;;  %453 = vst [vmem:[%s1019_s1 + $0xd4] sm:$0xf] %v238_v33  ;;  %v263_v44 = vpack.c.bf16 %v503_v3, %v462_v41  ;;  %v470_v48 = vld [vmem:[%s1018_s0 + $0xb0] sm:$0xff]  ;;  %v278_v50 = vpack.c.bf16 %v503_v3, %v468_v47 }
  0x1c   :  { %v268_v45 = vpack.c.bf16 %v503_v3, %v464_v42  ;;  %455 = vst [vmem:[%s1019_s1 + $0x34] sm:$0xf] %v243_v37  ;;  %457 = vst [vmem:[%s1019_s1 + $0x94] sm:$0xf] %v248_v38  ;;  %v283_v51 = vpack.c.bf16 %v503_v3, %v470_v48  ;;  %v472_v52 = vld [vmem:[%s1018_s0 + $0x1f0] sm:$0xff]  ;;  %v484_v0 = vld [vmem:[%s1018_s0 + $0x238] sm:$0xff] }
  0x1d   :  { %459 = vst [vmem:[%s1019_s1 + $0xf4] sm:$0xf] %v253_v39  ;;  %v474_v53 = vld [vmem:[%s1018_s0 + $0x130] sm:$0xff]  ;;  %461 = vst [vmem:[%s1019_s1 + $0x54] sm:$0xf] %v258_v43  ;;  %v288_v55 = vpack.c.bf16 %v503_v3, %v472_v52  ;;  %v486_v1 = vld [vmem:[%s1018_s0 + $0x178] sm:$0xff]  ;;  %v318_v4 = vpack.c.bf16 %v503_v3, %v484_v0 }
  0x1e   :  { %v476_v54 = vld [vmem:[%s1018_s0 + $0x70] sm:$0xff]  ;;  %463 = vst [vmem:[%s1019_s1 + $0xb4] sm:$0xf] %v263_v44  ;;  %465 = vst [vmem:[%s1019_s1 + $0x114] sm:$0xf] %v268_v45  ;;  %v293_v56 = vpack.c.bf16 %v503_v3, %v474_v53  ;;  %v488_v2 = vld [vmem:[%s1018_s0 + $0xb8] sm:$0xff]  ;;  %v323_v5 = vpack.c.bf16 %v503_v3, %v486_v1 }
  0x1f   :  { %v298_v57 = vpack.c.bf16 %v503_v3, %v476_v54  ;;  %v478_v58 = vld [vmem:[%s1018_s0 + $0x1b0] sm:$0xff]  ;;  %467 = vst [vmem:[%s1019_s1 + $0x18] sm:$0xf] %v273_v49  ;;  %469 = vst [vmem:[%s1019_s1 + $0x78] sm:$0xf] %v278_v50  ;;  %v328_v6 = vpack.c.bf16 %v503_v3, %v488_v2  ;;  %v490_v7 = vld [vmem:[%s1018_s0 + $0x1f8] sm:$0xff] }
  0x20   :  { %v480_v59 = vld [vmem:[%s1018_s0 + $0xf0] sm:$0xff]  ;;  %471 = vst [vmem:[%s1019_s1 + $0xd8] sm:$0xf] %v283_v51  ;;  %v303_v61 = vpack.c.bf16 %v503_v3, %v478_v58  ;;  %473 = vst [vmem:[%s1019_s1 + $0x38] sm:$0xf] %v288_v55  ;;  %v492_v8 = vld [vmem:[%s1018_s0 + $0x138] sm:$0xff]  ;;  %v333_v10 = vpack.c.bf16 %v503_v3, %v490_v7 }
  0x21   :  { %v482_v60 = vld [vmem:[%s1018_s0 + $0x30] sm:$0xff]  ;;  %v308_v62 = vpack.c.bf16 %v503_v3, %v480_v59  ;;  %475 = vst [vmem:[%s1019_s1 + $0x98] sm:$0xf] %v293_v56  ;;  %477 = vst [vmem:[%s1019_s1 + $0xf8] sm:$0xf] %v298_v57  ;;  %v494_v9 = vld [vmem:[%s1018_s0 + $0x78] sm:$0xff]  ;;  %v338_v11 = vpack.c.bf16 %v503_v3, %v492_v8 }
  0x22   :  { %v313_v63 = vpack.c.bf16 %v503_v3, %v482_v60  ;;  %479 = vst [vmem:[%s1019_s1 + $0x58] sm:$0xf] %v303_v61  ;;  %v343_v12 = vpack.c.bf16 %v503_v3, %v494_v9  ;;  %v496_v13 = vld [vmem:[%s1018_s0 + $0x1b8] sm:$0xff]  ;;  %485 = vst [vmem:[%s1019_s1 + $0x1c] sm:$0xf] %v318_v4 }
  0x23   :  { %481 = vst [vmem:[%s1019_s1 + $0xb8] sm:$0xf] %v308_v62  ;;  %v498_v14 = vld [vmem:[%s1018_s0 + $0xf8] sm:$0xff]  ;;  %487 = vst [vmem:[%s1019_s1 + $0x7c] sm:$0xf] %v323_v5  ;;  %v348_v16 = vpack.c.bf16 %v503_v3, %v496_v13 }
  0x24   :  { %483 = vst [vmem:[%s1019_s1 + $0x118] sm:$0xf] %v313_v63  ;;  %v500_v15 = vld [vmem:[%s1018_s0 + $0x38] sm:$0xff]  ;;  %489 = vst [vmem:[%s1019_s1 + $0xdc] sm:$0xf] %v328_v6  ;;  %v353_v17 = vpack.c.bf16 %v503_v3, %v498_v14 }
  0x25   :  { %v358_v3 = vpack.c.bf16 %v503_v3, %v500_v15  ;;  %491 = vst [vmem:[%s1019_s1 + $0x3c] sm:$0xf] %v333_v10  ;;  %493 = vst [vmem:[%s1019_s1 + $0x9c] sm:$0xf] %v338_v11 }
  0x26   :  { %495 = vst [vmem:[%s1019_s1 + $0xfc] sm:$0xf] %v343_v12  ;;  %497 = vst [vmem:[%s1019_s1 + $0x5c] sm:$0xf] %v348_v16 }
  0x27   :  { %499 = vst [vmem:[%s1019_s1 + $0xbc] sm:$0xf] %v353_v17  ;;  %501 = vst [vmem:[%s1019_s1 + $0x11c] sm:$0xf] %v358_v3 }

// kernel: mtgrootv_3d_forward.6
= control target key start
LH: loop header
LB: loop body
LE: loop exit
PB: predicated region body
PF: predicated region fallthrough
CT: control target
= control target key end

     0   :  { %vm49_vm0 = vcmask 523264   ;;  %s779_s0 = inlined_call_operand.vmem [shape: f32[8,64], index: 0, kind: input, shape index: {}]   ;;  %s780_s1 = inlined_call_operand.vmem [shape: f32[1,64], index: 1, kind: input, shape index: {}]   ;;  %s781_s2 = inlined_call_operand.vmem [shape: f32[1,64], index: 2, kind: input, shape index: {}]   ;;  %s782_s3 = inlined_call_operand.vmem [shape: f32[1,1,64], index: 3, kind: input, shape index: {}]   ;;  %s783_s4 = inlined_call_operand.vmem [shape: f32[1,1,64], index: 4, kind: input, shape index: {}]   ;;  %s784_s5 = inlined_call_operand.vmem [shape: bf16[1,64,256], index: 5, kind: input, shape index: {}]   ;;  %s785_s6 = inlined_call_operand.vmem [shape: f32[1,1,256], index: 6, kind: input, shape index: {}]   ;;  %s786_s7 = inlined_call_operand.vmem [shape: bf16[1,256,64], index: 7, kind: input, shape index: {}]   ;;  %s787_s8 = inlined_call_operand.vmem [shape: f32[1,1,64], index: 8, kind: input, shape index: {}]   ;;  %s788_s9 = inlined_call_operand.vmem [shape: f32[1,64], index: 9, kind: input, shape index: {}]   ;;  %s789_s10 = inlined_call_operand.vmem [shape: f32[1,64], index: 10, kind: input, shape index: {}]   ;;  %s790_s11 = inlined_call_operand.hbm [shape: f32[8,64], index: 11, kind: output, shape index: {0}]   ;;  %s791_s12 = inlined_call_operand.vmem [shape: f32[8,64], index: 12, kind: output, shape index: {1}]  }
   0x1   :  { %v46_v0 = vld [vmem:[%s779_s0] sm:$0xff] }
   0x2   :  { %v50_v1 = vsel %vm49_vm0, %v46_v0, 0.0 }
   0x3   :  { %51 = vadd.xlane.f32.xlu0 %v50_v1 }
   0x4   :  { %18 = vsyncpa [#allocation4], 0  ;;  %v471_v11 = vld [vmem:[%s780_s1] ss:$0 sm:$0xff]  ;;  %v527_v39 = vld [vmem:[%s784_s5 + $0x34] ss:$8 sps:$4 sm:$0xff]  }
   0x5   :  { %v472_v13 = vld [vmem:[%s781_s2] ss:$0 sm:$0xff]  ;;  %v529_v40 = vld [vmem:[%s784_s5 + $0x30] ss:$8 sps:$4 sm:$0xff]   ;;  %v530_v41 = vld [vmem:[%s784_s5 + $0x24] ss:$8 sps:$4 sm:$0xff]   ;;  %198 = vmatprep.subr.bf16.mxu0 %v527_v39 }
   0x6   :  { %v473_v27 = vld [vmem:[%s782_s3] ss:$0 sm:$0xff]  ;;  %199 = vmatpush1.bf16.msra.mxu0 %v529_v40  ;;  %v589_v43 = vmov 0   ;;  %v533_v44 = vld [vmem:[%s784_s5 + $0x14] ss:$8 sps:$4 sm:$0xff]   ;;  %v543_v58 = vld [vmem:[%s786_s7 + $0x68] sm:$0xff]  }
   0x7   :  { %v474_v29 = vld [vmem:[%s783_s4] ss:$0 sm:$0xff]  ;;  %222 = vmatprep.mubr.bf16.mxu0 %v589_v43  ;;  %200 = vmatprep.subr.bf16.mxu0 %v530_v41  ;;  %v535_v45 = vld [vmem:[%s784_s5 + $0x10] ss:$8 sps:$4 sm:$0xff]   ;;  %v536_v46 = vld [vmem:[%s784_s5 + $0x4] ss:$8 sps:$4 sm:$0xff]  }
   0x8   :  { %v532_v42 = vld [vmem:[%s784_s5 + $0x20] ss:$8 sps:$4 sm:$0xff]   ;;  %v539_v48 = vld [vmem:[%s786_s7 + $0x78] sm:$0xff]   ;;  %v541_v56 = vld [vmem:[%s786_s7 + $0x70] sm:$0xff]  }
   0x9   :  { %v538_v47 = vld [vmem:[%s784_s5] ss:$8 sps:$4 sm:$0xff]   ;;  %v540_v49 = vld [vmem:[%s786_s7 + $0x38] sm:$0xff]   ;;  %503 = vmatprep.subr.bf16.mxu1 %v539_v48  ;;  %v542_v57 = vld [vmem:[%s786_s7 + $0x30] sm:$0xff]  }
   0xa   :  { %201 = vmatpush1.bf16.msra.mxu0 %v532_v42  ;;  %504 = vmatpush3.bf16.msra.mxu1 %v540_v49  ;;  %v544_v59 = vld [vmem:[%s786_s7 + $0x28] sm:$0xff]   ;;  %v545_v60 = vld [vmem:[%s786_s7 + $0x60] sm:$0xff]   ;;  %v547_v62 = vld [vmem:[%s786_s7 + $0x58] sm:$0xff]  }
   0xb   :  { %202 = vmatprep.subr.bf16.mxu0 %v533_v44  ;;  %505 = vmatprep.subr.bf16.mxu1 %v541_v56  ;;  %v546_v61 = vld [vmem:[%s786_s7 + $0x20] sm:$0xff]   ;;  %v548_v63 = vld [vmem:[%s786_s7 + $0x18] sm:$0xff]   ;;  %v550_v1 = vld [vmem:[%s786_s7 + $0x10] sm:$0xff]  }
   0xe   :  { %203 = vmatpush1.bf16.msra.mxu0 %v535_v45  ;;  %506 = vmatpush3.bf16.msra.mxu1 %v542_v57 }
   0xf   :  { %204 = vmatprep.subr.bf16.mxu0 %v536_v46  ;;  %507 = vmatprep.subr.bf16.mxu1 %v543_v58 }
  0x12   :  { %205 = vmatpush1.bf16.msra.mxu0 %v538_v47  ;;  %508 = vmatpush3.bf16.msra.mxu1 %v544_v59 }
  0x13   :  { %509 = vmatprep.subr.bf16.mxu1 %v545_v60 }
  0x16   :  { %510 = vmatpush3.bf16.msra.mxu1 %v546_v61 }
  0x17   :  { %511 = vmatprep.subr.bf16.mxu1 %v547_v62 }
  0x1a   :  { %512 = vmatpush3.bf16.msra.mxu1 %v548_v63 }
  0x8c   :  { %v52_v2 = vpop.xlane.xlu0 %51 }
  0x8d   :  { %v54_v3 = vmul.f32 0.015625, %v52_v2  ;;  %v551_v2 = vld [vmem:[%s786_s7 + $0x48] sm:$0xff]  }
  0x8f   :  { %v55_v4 = vsub.f32 %v46_v0, %v54_v3  ;;  %v549_v0 = vld [vmem:[%s786_s7 + $0x50] sm:$0xff]   ;;  %v552_v3 = vld [vmem:[%s786_s7 + $0x8] sm:$0xff]  }
  0x90   :  { %513 = vmatprep.subr.bf16.mxu1 %v549_v0 }
  0x91   :  { %v56_v5 = vmul.f32 %v55_v4, %v55_v4  ;;  %514 = vmatpush3.bf16.msra.mxu1 %v550_v1 }
  0x92   :  { %515 = vmatprep.subr.bf16.mxu1 %v551_v2 }
  0x93   :  { %v57_v6 = vsel %vm49_vm0, %v56_v5, 0.0  ;;  %v554_v5 = vld [vmem:[%s786_s7] sm:$0xff]  }
  0x94   :  { %58 = vadd.xlane.f32.xlu0 %v57_v6  ;;  %v137_v6 = vlaneseq }
  0x95   :  { %516 = vmatpush3.bf16.msra.mxu1 %v552_v3 }
 0x11d   :  { %v59_v7 = vpop.xlane.xlu0 %58 }
 0x11e   :  { %v60_v8 = vmul.f32 0.015625, %v59_v7  ;;  %v138_v7 = vshrl.u32 %v137_v6, 7 }
 0x120   :  { %v61_v9 = vadd.f32 1e-06, %v60_v8  ;;  %v139_v8 = vsub.s32 0, %v138_v7 }
 0x122   :  { %555 = vrsqrt.f32 %v61_v9  ;;  %v135_v9 = vld [vmem:[%s785_s6] sm:$0x3] }
 0x12f   :  { %v556_v10 = vpop.eup %555 }
 0x130   :  { %v63_v12 = vmul.f32 %v556_v10, %v55_v4  ;;  %v553_v4 = vld [vmem:[%s786_s7 + $0x40] sm:$0xff]   ;;  %v143_v10 = vsub.s32 1, %v138_v7 }
 0x131   :  { %517 = vmatprep.subr.bf16.mxu1 %v553_v4 }
 0x132   :  { %v70_v14 = vmul.f32 %v471_v11, %v63_v12  ;;  %518 = vmatpush3.bf16.msra.mxu1 %v554_v5  ;;  %v140_v11 = vrot.slane %v135_v9, %v139_v8  ;;  %v144_v12 = vrot.slane %v135_v9, %v143_v10 }
 0x134   :  { %v77_v15 = vadd.f32 %v472_v13, %v70_v14 }
 0x136   :  { %79 = vst.msk [vmem:[#allocation2] sm:$0xff] %vm49_vm0, %v77_v15  ;;  %78 = vst.msk [vmem:[#allocation3] sm:$0xff] %vm49_vm0, %v77_v15 }
 0x13d   :  { %v80_v16 = vld [vmem:[#allocation2] sm:$0xff] }
 0x13e   :  { %v84_v17 = vsel %vm49_vm0, %v80_v16, 0.0 }
 0x13f   :  { %85 = vadd.xlane.f32.xlu1 %v84_v17 }
 0x1c8   :  { %v86_v18 = vpop.xlane.xlu1 %85 }
 0x1c9   :  { %v88_v19 = vmul.f32 0.015625, %v86_v18 }
 0x1cb   :  { %v89_v20 = vsub.f32 %v80_v16, %v88_v19 }
 0x1cd   :  { %v90_v21 = vmul.f32 %v89_v20, %v89_v20 }
 0x1cf   :  { %v91_v22 = vsel %vm49_vm0, %v90_v21, 0.0 }
 0x1d0   :  { %92 = vadd.xlane.f32.xlu1 %v91_v22 }
 0x259   :  { %v93_v23 = vpop.xlane.xlu1 %92 }
 0x25a   :  { %v94_v24 = vmul.f32 0.015625, %v93_v23 }
 0x25c   :  { %v95_v25 = vadd.f32 1e-06, %v94_v24 }
 0x25e   :  { %557 = vrsqrt.f32 %v95_v25 }
 0x26b   :  { %v558_v26 = vpop.eup %557 }
 0x26c   :  { %v97_v28 = vmul.f32 %v558_v26, %v89_v20 }
 0x26e   :  { %v104_v30 = vmul.f32 %v473_v27, %v97_v28 }
 0x270   :  { %v111_v31 = vadd.f32 %v474_v29, %v104_v30 }
 0x272   :  { %v677_v32 = vadd.f32 %v111_v31, %v80_v16 }
 0x274   :  { %v113_v33 = vsel %vm49_vm0, %v677_v32, 0.0 }
 0x275   :  { %114 = vadd.xlane.f32.xlu0 %v113_v33  ;;  %v484_v33 = vld [vmem:[%s787_s8] ss:$0 sm:$0xff]  ;;  %s590_s8 = smov [#allocation3]  }
 0x276   :  { %s459_s4 = sshll.u32 %s590_s8, 4  ;;  %s460_s4 = int_to_ptr.vmem [resolvable:$true] %s459_s4 }
 0x277   :  { %s567_s29 = scalar_lea.vmem %s460_s4, 128  ;;  %p572_p1 = scmp.lt.s32.totalorder %s460_s4, %s460_s4 }
 0x278   :  { %p568_p0 = scmp.ne.s32.totalorder %s460_s4, %s567_s29  ;;  %p573_p2 = scmp.lt.s32.totalorder %s567_s29, %s567_s29 }
 0x27a   :  { %p574_p3 = por %p573_p2, %p572_p1 }
 0x27c   :  { %p575_p4 = pnand %p574_p3, %p568_p0 }
 0x2fe   :  { %v115_v34 = vpop.xlane.xlu0 %114 }
 0x2ff   :  { %v116_v35 = vmul.f32 0.015625, %v115_v34 }
 0x301   :  { %v117_v36 = vsub.f32 %v677_v32, %v116_v35 }
 0x303   :  { %v118_v37 = vmul.f32 %v117_v36, %v117_v36 }
 0x305   :  { %v119_v38 = vsel %vm49_vm0, %v118_v37, 0.0 }
 0x306   :  { %120 = vadd.xlane.f32.xlu1 %v119_v38 }
 0x38f   :  { %v121_v50 = vpop.xlane.xlu1 %120 }
 0x390   :  { %v122_v51 = vmul.f32 0.015625, %v121_v50 }
 0x392   :  { %v123_v52 = vadd.f32 1e-06, %v122_v51 }
 0x394   :  { %559 = vrsqrt.f32 %v123_v52 }
 0x3a1   :  { %v560_v53 = vpop.eup %559 }
 0x3a2   :  { %v125_v54 = vmul.f32 %v560_v53, %v117_v36 }
 0x3a4   :  { %v126_v55 = vpack.c.bf16 %v125_v54, %v125_v54 }
 0x3a6   :  { %483 = vmatmul.mubr.msk.bf16.vlgmr.msra.gmra.mxu0 %vm49_vm0, %v126_v55 }
 0x466   :  { %v224_v13 = vpop.f32.mrf.mxu0 }
 0x467   :  { %v225_v14 = vadd.f32 %v224_v13, %v140_v11 }
 0x468   :  { %v226_v15 = vpop.f32.mrf.mxu0 }
 0x469   :  { %v233_v16 = vmul.f32 0.70710677, %v225_v14  ;;  %v227_v17 = vadd.f32 %v226_v15, %v144_v12  ;;  %v231_v24 = vmul.f32 0.5, %v225_v14 }
 0x46a   :  { %v228_v18 = vpop.f32.mrf.mxu0 }
 0x46b   :  { %561 = verf.f32 %v233_v16  ;;  %v234_v19 = vmul.f32 0.70710677, %v227_v17  ;;  %v232_v25 = vmul.f32 0.5, %v227_v17 }
 0x46c   :  { %v229_v20 = vpop.f32.mrf.mxu0 }
 0x46d   :  { %563 = verf.f32 %v234_v19 }
 0x478   :  { %v562_v21 = vpop.eup %561 }
 0x479   :  { %v237_v22 = vadd.f32 1.0, %v562_v21 }
 0x47a   :  { %v564_v23 = vpop.eup %563 }
 0x47b   :  { %v238_v26 = vadd.f32 1.0, %v564_v23  ;;  %v239_v27 = vmul.f32 %v237_v22, %v231_v24 }
 0x47d   :  { %v240_v28 = vmul.f32 %v238_v26, %v232_v25  ;;  %v241_v30 = vpack.c.bf16 %v239_v27, %v239_v27 }
 0x47f   :  { %v242_v29 = vpack.c.bf16 %v240_v28, %v240_v28 }
 0x481   :  { %410 = vmatprep.mubr.bf16.mxu1 %v242_v29 }
 0x482   :  { %411 = vmatmul.mubr.bf16.vlgmr.msra.gmra.mxu1 %v241_v30 }
 0x542   :  { %v519_v31 = vpop.f32.mrf.mxu1 }
 0x544   :  { %v520_v34 = vpop.f32.mrf.mxu1 }
 0x545   :  { %v521_v35 = vadd.f32 %v520_v34, %v519_v31 }
 0x546   :  { %v522_v36 = vpop.f32.mrf.mxu1 }
 0x547   :  { %v413_v37 = vadd.f32 %v521_v35, %v484_v33 }
 0x548   :  { %v523_v38 = vpop.f32.mrf.mxu1 }
 0x549   :  { %v418_v39 = vadd.f32 %v413_v37, %v677_v32 }
 0x54b   :  { %419 = vst.msk [vmem:[#allocation2] sm:$0xff] %vm49_vm0, %v418_v39  ;;  %v425_v40 = vsel %vm49_vm0, %v418_v39, 0.0 }
 0x54c   :  { %426 = vadd.xlane.f32.xlu0 %v425_v40 }
 0x5d5   :  { %v427_v41 = vpop.xlane.xlu0 %426 }
 0x5d6   :  { %v428_v42 = vmul.f32 0.015625, %v427_v41 }
 0x5d8   :  { %v429_v43 = vsub.f32 %v418_v39, %v428_v42 }
 0x5da   :  { %v430_v44 = vmul.f32 %v429_v43, %v429_v43 }
 0x5dc   :  { %v431_v45 = vsel %vm49_vm0, %v430_v44, 0.0 }
 0x5dd   :  { %432 = vadd.xlane.f32.xlu1 %v431_v45 }
 0x5de   :  { %578 = shalt.err (!%p575_p4)
}
 0x5df   :  { %462 = dma.vmem_to_hbm [thread:$0]  %s460_s4, 128, %s790_s11, [#allocation4]   ;;  %v501_v49 = vld [vmem:[%s788_s9] ss:$0 sm:$0xff] }
 0x5e0   :  { %v502_v51 = vld [vmem:[%s789_s10] ss:$0 sm:$0xff] }
 0x666   :  { %v433_v32 = vpop.xlane.xlu1 %432 }
 0x667   :  { %v434_v46 = vmul.f32 0.015625, %v433_v32 }
 0x669   :  { %v435_v47 = vadd.f32 1e-06, %v434_v46 }
 0x66b   :  { %565 = vrsqrt.f32 %v435_v47 }
 0x678   :  { %v566_v48 = vpop.eup %565 }
 0x679   :  { %v437_v50 = vmul.f32 %v566_v48, %v429_v43 }
 0x67b   :  { %v444_v52 = vmul.f32 %v501_v49, %v437_v50 }
 0x67d   :  { %v451_v53 = vadd.f32 %v502_v51, %v444_v52 }
 0x67f   :  { %452 = vst.msk [vmem:[%s791_s12] sm:$0xff] %vm49_vm0, %v451_v53 }
 0x680   :  { %587 = dma.done.wait [#allocation4], 128  }
 0x681   :  { %588 = vsyncadd [#allocation4], 4294967168 }
 0x682   :  { %470 = vsyncpa [#allocation4], 1 }

// kernel: mtgrootv_3d_forward.7
= control target key start
LH: loop header
LB: loop body
LE: loop exit
PB: predicated region body
PF: predicated region fallthrough
CT: control target
= control target key end

     0   :  { %v1034_v58 = vmov 0   ;;  %s1330_s0 = inlined_call_operand.vmem [shape: f32[8,128], index: 0, kind: input, shape index: {}]   ;;  %s1331_s1 = inlined_call_operand.vmem [shape: f32[1,128], index: 1, kind: input, shape index: {}]   ;;  %s1332_s2 = inlined_call_operand.vmem [shape: f32[1,128], index: 2, kind: input, shape index: {}]   ;;  %s1333_s11 = inlined_call_operand.vmem [shape: f32[8,128], index: 11, kind: output, shape index: {0}]   ;;  %s1334_s3 = inlined_call_operand.vmem [shape: f32[1,1,128], index: 3, kind: input, shape index: {}]   ;;  %s1335_s4 = inlined_call_operand.vmem [shape: f32[1,1,128], index: 4, kind: input, shape index: {}]   ;;  %s1336_s5 = inlined_call_operand.vmem [shape: bf16[1,128,512], index: 5, kind: input, shape index: {}]   ;;  %s1337_s7 = inlined_call_operand.vmem [shape: bf16[1,512,128], index: 7, kind: input, shape index: {}]   ;;  %s1338_s6 = inlined_call_operand.vmem [shape: f32[1,1,512], index: 6, kind: input, shape index: {}]   ;;  %s1339_s8 = inlined_call_operand.vmem [shape: f32[1,1,128], index: 8, kind: input, shape index: {}]   ;;  %s1340_s9 = inlined_call_operand.vmem [shape: f32[1,128], index: 9, kind: input, shape index: {}]   ;;  %s1341_s10 = inlined_call_operand.vmem [shape: f32[1,128], index: 10, kind: input, shape index: {}]   ;;  %s1342_s12 = inlined_call_operand.vmem [shape: f32[8,128], index: 12, kind: output, shape index: {1}]  }
   0x1   :  { %v45_v0 = vld [vmem:[%s1330_s0] sm:$0xff]  ;;  %v940_v29 = vld [vmem:[%s1336_s5 + $0xec] ss:$16 sps:$4 sm:$0xff]   ;;  %v943_v31 = vld [vmem:[%s1336_s5 + $0xe8] ss:$16 sps:$4 sm:$0xff]   ;;  %364 = vmatprep.mubr.bf16.mxu0 %v1034_v58  ;;  %405 = vmatprep.mubr.bf16.mxu1 %v1034_v58 }
   0x2   :  { %48 = vadd.xlane.f32.xlu0 %v45_v0  ;;  %v822_v9 = vld [vmem:[%s1331_s1] ss:$0 sm:$0xff]  ;;  %v938_v28 = vld [vmem:[%s1336_s5 + $0xe4] ss:$16 sps:$4 sm:$0xff]   ;;  %373 = vmatprep.subr.bf16.mxu1 %v940_v29  ;;  %v946_v33 = vld [vmem:[%s1336_s5 + $0xcc] ss:$16 sps:$4 sm:$0xff]  }
   0x3   :  { %v823_v11 = vld [vmem:[%s1332_s2] ss:$0 sm:$0xff]  ;;  %332 = vmatprep.subr.bf16.mxu0 %v938_v28  ;;  %v944_v32 = vld [vmem:[%s1336_s5 + $0xc4] ss:$16 sps:$4 sm:$0xff]   ;;  %374 = vmatpush1.bf16.msra.mxu1 %v943_v31  ;;  %v949_v35 = vld [vmem:[%s1336_s5 + $0xc8] ss:$16 sps:$4 sm:$0xff]  }
   0x4   :  { %v824_v22 = vld [vmem:[%s1334_s3] ss:$0 sm:$0xff]  ;;  %375 = vmatprep.subr.bf16.mxu1 %v946_v33  ;;  %v950_v36 = vld [vmem:[%s1336_s5 + $0xa4] ss:$16 sps:$4 sm:$0xff]   ;;  %v952_v37 = vld [vmem:[%s1336_s5 + $0xac] ss:$16 sps:$4 sm:$0xff]  }
   0x5   :  { %v825_v24 = vld [vmem:[%s1335_s4] ss:$0 sm:$0xff]  ;;  %v955_v39 = vld [vmem:[%s1336_s5 + $0xa8] ss:$16 sps:$4 sm:$0xff]   ;;  %v956_v44 = vld [vmem:[%s1336_s5 + $0x84] ss:$16 sps:$4 sm:$0xff]  }
   0x6   :  { %v942_v30 = vld [vmem:[%s1336_s5 + $0xe0] ss:$16 sps:$4 sm:$0xff]   ;;  %v958_v45 = vld [vmem:[%s1336_s5 + $0x8c] ss:$16 sps:$4 sm:$0xff]   ;;  %v961_v47 = vld [vmem:[%s1336_s5 + $0x88] ss:$16 sps:$4 sm:$0xff]  }
   0x7   :  { %333 = vmatpush1.bf16.msra.mxu0 %v942_v30  ;;  %v948_v34 = vld [vmem:[%s1336_s5 + $0xc0] ss:$16 sps:$4 sm:$0xff]   ;;  %376 = vmatpush1.bf16.msra.mxu1 %v949_v35  ;;  %v962_v48 = vld [vmem:[%s1336_s5 + $0x64] ss:$16 sps:$4 sm:$0xff]   ;;  %v964_v49 = vld [vmem:[%s1336_s5 + $0x6c] ss:$16 sps:$4 sm:$0xff]  }
   0x8   :  { %334 = vmatprep.subr.bf16.mxu0 %v944_v32  ;;  %v954_v38 = vld [vmem:[%s1336_s5 + $0xa0] ss:$16 sps:$4 sm:$0xff]   ;;  %377 = vmatprep.subr.bf16.mxu1 %v952_v37  ;;  %v967_v51 = vld [vmem:[%s1336_s5 + $0x68] ss:$16 sps:$4 sm:$0xff]   ;;  %v968_v52 = vld [vmem:[%s1336_s5 + $0x44] ss:$16 sps:$4 sm:$0xff]  }
   0x9   :  { %v960_v46 = vld [vmem:[%s1336_s5 + $0x80] ss:$16 sps:$4 sm:$0xff]   ;;  %v970_v53 = vld [vmem:[%s1336_s5 + $0x4c] ss:$16 sps:$4 sm:$0xff]   ;;  %v973_v55 = vld [vmem:[%s1336_s5 + $0x48] ss:$16 sps:$4 sm:$0xff]  }
   0xa   :  { %v966_v50 = vld [vmem:[%s1336_s5 + $0x60] ss:$16 sps:$4 sm:$0xff]   ;;  %v974_v56 = vld [vmem:[%s1336_s5 + $0x24] ss:$16 sps:$4 sm:$0xff]   ;;  %v976_v57 = vld [vmem:[%s1336_s5 + $0x2c] ss:$16 sps:$4 sm:$0xff]  }
   0xb   :  { %335 = vmatpush1.bf16.msra.mxu0 %v948_v34  ;;  %378 = vmatpush1.bf16.msra.mxu1 %v955_v39  ;;  %v972_v54 = vld [vmem:[%s1336_s5 + $0x40] ss:$16 sps:$4 sm:$0xff]   ;;  %v979_v60 = vld [vmem:[%s1336_s5 + $0x28] ss:$16 sps:$4 sm:$0xff]   ;;  %v980_v61 = vld [vmem:[%s1336_s5 + $0x4] ss:$16 sps:$4 sm:$0xff]  }
   0xc   :  { %336 = vmatprep.subr.bf16.mxu0 %v950_v36  ;;  %379 = vmatprep.subr.bf16.mxu1 %v958_v45  ;;  %v978_v59 = vld [vmem:[%s1336_s5 + $0x20] ss:$16 sps:$4 sm:$0xff]   ;;  %v982_v62 = vld [vmem:[%s1336_s5 + $0xc] ss:$16 sps:$4 sm:$0xff]  }
   0xd   :  { %v984_v63 = vld [vmem:[%s1336_s5] ss:$16 sps:$4 sm:$0xff]   ;;  %v1010_v32 = vld [vmem:[%s1337_s7 + $0x48] sm:$0xff]  }
   0xe   :  { %v1006_v28 = vld [vmem:[%s1337_s7 + $0x50] sm:$0xff]   ;;  %v1011_v33 = vld [vmem:[%s1337_s7 + $0xc8] sm:$0xff]   ;;  %v1014_v36 = vld [vmem:[%s1337_s7 + $0x40] sm:$0xff]  }
   0xf   :  { %337 = vmatpush1.bf16.msra.mxu0 %v954_v38  ;;  %380 = vmatpush1.bf16.msra.mxu1 %v961_v47  ;;  %v1007_v29 = vld [vmem:[%s1337_s7 + $0xd0] sm:$0xff]   ;;  %v1012_v34 = vld [vmem:[%s1337_s7 + $0x8] sm:$0xff]   ;;  %v1015_v37 = vld [vmem:[%s1337_s7 + $0xc0] sm:$0xff]  }
  0x10   :  { %338 = vmatprep.subr.bf16.mxu0 %v956_v44  ;;  %381 = vmatprep.subr.bf16.mxu1 %v964_v49  ;;  %v1008_v30 = vld [vmem:[%s1337_s7 + $0x10] sm:$0xff]   ;;  %v1013_v35 = vld [vmem:[%s1337_s7 + $0x88] sm:$0xff]   ;;  %v1016_v38 = vld [vmem:[%s1337_s7] sm:$0xff]  }
  0x11   :  { %v1009_v31 = vld [vmem:[%s1337_s7 + $0x90] sm:$0xff]   ;;  %v1017_v39 = vld [vmem:[%s1337_s7 + $0x80] sm:$0xff]  }
  0x12   :  { %v150_v44 = vld [vmem:[%s1338_s6] sm:$0xf] }
  0x13   :  { %339 = vmatpush1.bf16.msra.mxu0 %v960_v46  ;;  %382 = vmatpush1.bf16.msra.mxu1 %v967_v51 }
  0x14   :  { %340 = vmatprep.subr.bf16.mxu0 %v962_v48  ;;  %383 = vmatprep.subr.bf16.mxu1 %v970_v53 }
  0x17   :  { %341 = vmatpush1.bf16.msra.mxu0 %v966_v50  ;;  %384 = vmatpush1.bf16.msra.mxu1 %v973_v55 }
  0x18   :  { %342 = vmatprep.subr.bf16.mxu0 %v968_v52  ;;  %385 = vmatprep.subr.bf16.mxu1 %v976_v57 }
  0x1b   :  { %343 = vmatpush1.bf16.msra.mxu0 %v972_v54  ;;  %386 = vmatpush1.bf16.msra.mxu1 %v979_v60 }
  0x1c   :  { %344 = vmatprep.subr.bf16.mxu0 %v974_v56  ;;  %387 = vmatprep.subr.bf16.mxu1 %v982_v62 }
  0x1f   :  { %345 = vmatpush1.bf16.msra.mxu0 %v978_v59 }
  0x20   :  { %346 = vmatprep.subr.bf16.mxu0 %v980_v61 }
  0x23   :  { %347 = vmatpush1.bf16.msra.mxu0 %v984_v63 }
  0x8b   :  { %v49_v1 = vpop.xlane.xlu0 %48 }
  0x8c   :  { %v51_v2 = vmul.f32 0.0078125, %v49_v1  ;;  %v986_v1 = vld [vmem:[%s1337_s7 + $0x78] sm:$0xff]  }
  0x8d   :  { %893 = vmatprep.subr.bf16.mxu0 %v986_v1 }
  0x8e   :  { %v52_v3 = vsub.f32 %v45_v0, %v51_v2  ;;  %v985_v0 = vld [vmem:[%s1336_s5 + $0x8] ss:$16 sps:$4 sm:$0xff]  }
  0x8f   :  { %388 = vmatpush1.bf16.msra.mxu1 %v985_v0  ;;  %v987_v2 = vld [vmem:[%s1337_s7 + $0xf8] sm:$0xff]  }
  0x90   :  { %v53_v4 = vmul.f32 %v52_v3, %v52_v3  ;;  %915 = vmatprep.subr.bf16.mxu1 %v987_v2 }
  0x92   :  { %54 = vadd.xlane.f32.xlu0 %v53_v4 }
 0x11b   :  { %v55_v5 = vpop.xlane.xlu0 %54 }
 0x11c   :  { %v56_v6 = vmul.f32 0.0078125, %v55_v5 }
 0x11e   :  { %v57_v7 = vadd.f32 1e-06, %v56_v6 }
 0x120   :  { %1018 = vrsqrt.f32 %v57_v7 }
 0x12d   :  { %v1019_v8 = vpop.eup %1018 }
 0x12e   :  { %v59_v10 = vmul.f32 %v1019_v8, %v52_v3  ;;  %v988_v8 = vld [vmem:[%s1337_s7 + $0x38] sm:$0xff]  }
 0x130   :  { %v66_v12 = vmul.f32 %v822_v9, %v59_v10  ;;  %v989_v9 = vld [vmem:[%s1337_s7 + $0xb8] sm:$0xff]  }
 0x132   :  { %v73_v13 = vadd.f32 %v823_v11, %v66_v12  ;;  %v990_v11 = vld [vmem:[%s1337_s7 + $0x70] sm:$0xff]  }
 0x133   :  { %v991_v12 = vld [vmem:[%s1337_s7 + $0xf0] sm:$0xff]  }
 0x134   :  { %79 = vadd.xlane.f32.xlu1 %v73_v13  ;;  %74 = vst [vmem:[%s1333_s11] sm:$0xff] %v73_v13 }
 0x1bd   :  { %v80_v14 = vpop.xlane.xlu1 %79 }
 0x1be   :  { %v82_v15 = vmul.f32 0.0078125, %v80_v14  ;;  %v993_v14 = vld [vmem:[%s1337_s7 + $0xb0] sm:$0xff]  }
 0x1c0   :  { %v83_v16 = vsub.f32 %v73_v13, %v82_v15  ;;  %v994_v15 = vld [vmem:[%s1337_s7 + $0x68] sm:$0xff]  }
 0x1c2   :  { %v84_v17 = vmul.f32 %v83_v16, %v83_v16 }
 0x1c4   :  { %85 = vadd.xlane.f32.xlu1 %v84_v17  ;;  %v996_v17 = vld [vmem:[%s1337_s7 + $0x28] sm:$0xff]  }
 0x24d   :  { %v86_v18 = vpop.xlane.xlu1 %85 }
 0x24e   :  { %v87_v19 = vmul.f32 0.0078125, %v86_v18  ;;  %v997_v18 = vld [vmem:[%s1337_s7 + $0xa8] sm:$0xff]  }
 0x250   :  { %v88_v20 = vadd.f32 1e-06, %v87_v19  ;;  %v998_v19 = vld [vmem:[%s1337_s7 + $0x60] sm:$0xff]  }
 0x252   :  { %1020 = vrsqrt.f32 %v88_v20  ;;  %v999_v20 = vld [vmem:[%s1337_s7 + $0xe0] sm:$0xff]  }
 0x25f   :  { %v1021_v21 = vpop.eup %1020 }
 0x260   :  { %v90_v23 = vmul.f32 %v1021_v21, %v83_v16  ;;  %v995_v16 = vld [vmem:[%s1337_s7 + $0xe8] sm:$0xff]   ;;  %v1000_v21 = vld [vmem:[%s1337_s7 + $0x20] sm:$0xff]  }
 0x262   :  { %v97_v25 = vmul.f32 %v824_v22, %v90_v23  ;;  %v1001_v22 = vld [vmem:[%s1337_s7 + $0xa0] sm:$0xff]   ;;  %v1002_v23 = vld [vmem:[%s1337_s7 + $0x58] sm:$0xff]  }
 0x264   :  { %v104_v26 = vadd.f32 %v825_v24, %v97_v25  ;;  %v1003_v24 = vld [vmem:[%s1337_s7 + $0xd8] sm:$0xff]  }
 0x265   :  { %v1004_v25 = vld [vmem:[%s1337_s7 + $0x18] sm:$0xff]  }
 0x266   :  { %v1118_v27 = vadd.f32 %v104_v26, %v73_v13  ;;  %v992_v13 = vld [vmem:[%s1337_s7 + $0x30] sm:$0xff]   ;;  %v1005_v26 = vld [vmem:[%s1337_s7 + $0x98] sm:$0xff]  }
 0x268   :  { %106 = vadd.xlane.f32.xlu0 %v1118_v27 }
 0x2f1   :  { %v107_v40 = vpop.xlane.xlu0 %106 }
 0x2f2   :  { %v108_v41 = vmul.f32 0.0078125, %v107_v40  ;;  %v152_v40 = vlaneseq }
 0x2f4   :  { %v109_v42 = vsub.f32 %v1118_v27, %v108_v41  ;;  %v153_v41 = vshrl.u32 %v152_v40, 7 }
 0x2f6   :  { %v110_v43 = vmul.f32 %v109_v42, %v109_v42  ;;  %v158_v45 = vsub.s32 1, %v153_v41  ;;  %v166_v46 = vsub.s32 3, %v153_v41 }
 0x2f8   :  { %111 = vadd.xlane.f32.xlu1 %v110_v43  ;;  %v162_v43 = vsub.s32 2, %v153_v41  ;;  %v159_v51 = vrot.slane %v150_v44, %v158_v45  ;;  %v167_v52 = vrot.slane %v150_v44, %v166_v46  ;;  %v891_v46 = vld [vmem:[%s1340_s9] ss:$0 sm:$0xff] }
 0x2fa   :  { %v163_v48 = vrot.slane %v150_v44, %v162_v43 }
 0x381   :  { %v112_v3 = vpop.xlane.xlu1 %111 }
 0x382   :  { %v113_v4 = vmul.f32 0.0078125, %v112_v3 }
 0x384   :  { %v114_v5 = vadd.f32 1e-06, %v113_v4 }
 0x386   :  { %1022 = vrsqrt.f32 %v114_v5 }
 0x393   :  { %v1023_v6 = vpop.eup %1022 }
 0x394   :  { %v116_v7 = vmul.f32 %v1023_v6, %v109_v42  ;;  %v154_v42 = vsub.s32 0, %v153_v41 }
 0x396   :  { %v117_v10 = vpack.c.bf16 %v116_v7, %v116_v7  ;;  %v155_v47 = vrot.slane %v150_v44, %v154_v42 }
 0x398   :  { %365 = vmatmul.mubr.bf16.vlgmr.msra.gmra.mxu0 %v117_v10  ;;  %406 = vmatmul.mubr.bf16.vlgmr.msra.gmra.mxu1 %v117_v10 }
 0x399   :  { %894 = vmatpush3.bf16.msra.mxu0 %v988_v8  ;;  %916 = vmatpush3.bf16.msra.mxu1 %v989_v9 }
 0x39a   :  { %895 = vmatprep.subr.bf16.mxu0 %v990_v11  ;;  %917 = vmatprep.subr.bf16.mxu1 %v991_v12 }
 0x39d   :  { %896 = vmatpush3.bf16.msra.mxu0 %v992_v13  ;;  %918 = vmatpush3.bf16.msra.mxu1 %v993_v14 }
 0x39e   :  { %897 = vmatprep.subr.bf16.mxu0 %v994_v15  ;;  %919 = vmatprep.subr.bf16.mxu1 %v995_v16 }
 0x3a1   :  { %898 = vmatpush3.bf16.msra.mxu0 %v996_v17  ;;  %920 = vmatpush3.bf16.msra.mxu1 %v997_v18 }
 0x3a2   :  { %899 = vmatprep.subr.bf16.mxu0 %v998_v19  ;;  %921 = vmatprep.subr.bf16.mxu1 %v999_v20 }
 0x3a5   :  { %900 = vmatpush3.bf16.msra.mxu0 %v1000_v21  ;;  %922 = vmatpush3.bf16.msra.mxu1 %v1001_v22 }
 0x3a6   :  { %901 = vmatprep.subr.bf16.mxu0 %v1002_v23  ;;  %923 = vmatprep.subr.bf16.mxu1 %v1003_v24 }
 0x3a9   :  { %902 = vmatpush3.bf16.msra.mxu0 %v1004_v25  ;;  %924 = vmatpush3.bf16.msra.mxu1 %v1005_v26  ;;  %v858_v25 = vld [vmem:[%s1339_s8] ss:$0 sm:$0xff] }
 0x3aa   :  { %903 = vmatprep.subr.bf16.mxu0 %v1006_v28  ;;  %925 = vmatprep.subr.bf16.mxu1 %v1007_v29 }
 0x3ad   :  { %904 = vmatpush3.bf16.msra.mxu0 %v1008_v30  ;;  %926 = vmatpush3.bf16.msra.mxu1 %v1009_v31 }
 0x3ae   :  { %905 = vmatprep.subr.bf16.mxu0 %v1010_v32  ;;  %927 = vmatprep.subr.bf16.mxu1 %v1011_v33 }
 0x3b1   :  { %906 = vmatpush3.bf16.msra.mxu0 %v1012_v34  ;;  %928 = vmatpush3.bf16.msra.mxu1 %v1013_v35 }
 0x3b2   :  { %907 = vmatprep.subr.bf16.mxu0 %v1014_v36  ;;  %929 = vmatprep.subr.bf16.mxu1 %v1015_v37 }
 0x3b5   :  { %908 = vmatpush3.bf16.msra.mxu0 %v1016_v38  ;;  %930 = vmatpush3.bf16.msra.mxu1 %v1017_v39 }
 0x458   :  { %v366_v49 = vpop.f32.mrf.mxu0  ;;  %v407_v50 = vpop.f32.mrf.mxu1 }
 0x459   :  { %v367_v53 = vadd.f32 %v366_v49, %v155_v47  ;;  %v408_v54 = vadd.f32 %v407_v50, %v163_v48 }
 0x45a   :  { %v368_v55 = vpop.f32.mrf.mxu0  ;;  %v409_v56 = vpop.f32.mrf.mxu1 }
 0x45b   :  { %v418_v57 = vmul.f32 0.70710677, %v367_v53  ;;  %v420_v58 = vmul.f32 0.70710677, %v408_v54  ;;  %v369_v59 = vadd.f32 %v368_v55, %v159_v51  ;;  %v410_v60 = vadd.f32 %v409_v56, %v167_v52 }
 0x45c   :  { %v370_v61 = vpop.f32.mrf.mxu0  ;;  %v411_v62 = vpop.f32.mrf.mxu1  ;;  %v414_v8 = vmul.f32 0.5, %v367_v53  ;;  %v416_v10 = vmul.f32 0.5, %v408_v54 }
 0x45d   :  { %1024 = verf.f32 %v418_v57  ;;  %v419_v63 = vmul.f32 0.70710677, %v369_v59  ;;  %v421_v2 = vmul.f32 0.70710677, %v410_v60  ;;  %v415_v11 = vmul.f32 0.5, %v369_v59 }
 0x45e   :  { %1026 = verf.f32 %v420_v58  ;;  %v371_v0 = vpop.f32.mrf.mxu0  ;;  %v412_v1 = vpop.f32.mrf.mxu1  ;;  %v417_v14 = vmul.f32 0.5, %v410_v60 }
 0x45f   :  { %1028 = verf.f32 %v419_v63 }
 0x460   :  { %1030 = verf.f32 %v421_v2 }
 0x46a   :  { %v1025_v3 = vpop.eup %1024 }
 0x46b   :  { %v1027_v4 = vpop.eup %1026  ;;  %v426_v5 = vadd.f32 1.0, %v1025_v3 }
 0x46c   :  { %v428_v6 = vadd.f32 1.0, %v1027_v4  ;;  %v1029_v7 = vpop.eup %1028 }
 0x46d   :  { %v1031_v9 = vpop.eup %1030  ;;  %v427_v12 = vadd.f32 1.0, %v1029_v7  ;;  %v430_v13 = vmul.f32 %v426_v5, %v414_v8 }
 0x46e   :  { %v429_v15 = vadd.f32 1.0, %v1031_v9  ;;  %v432_v16 = vmul.f32 %v428_v6, %v416_v10 }
 0x46f   :  { %v431_v17 = vmul.f32 %v427_v12, %v415_v11  ;;  %v434_v20 = vpack.c.bf16 %v430_v13, %v430_v13 }
 0x470   :  { %v433_v18 = vmul.f32 %v429_v15, %v417_v14  ;;  %v436_v22 = vpack.c.bf16 %v432_v16, %v432_v16 }
 0x471   :  { %v435_v19 = vpack.c.bf16 %v431_v17, %v431_v17 }
 0x472   :  { %v437_v21 = vpack.c.bf16 %v433_v18, %v433_v18 }
 0x473   :  { %733 = vmatprep.mubr.bf16.mxu0 %v435_v19 }
 0x474   :  { %773 = vmatprep.mubr.bf16.mxu1 %v437_v21  ;;  %734 = vmatmul.mubr.bf16.vlgmr.msra.gmra.mxu0 %v434_v20 }
 0x475   :  { %774 = vmatmul.mubr.bf16.vlgmr.msra.gmra.mxu1 %v436_v22 }
 0x534   :  { %v909_v23 = vpop.f32.mrf.mxu0 }
 0x535   :  { %v931_v24 = vpop.f32.mrf.mxu1 }
 0x536   :  { %v910_v26 = vpop.f32.mrf.mxu0 }
 0x537   :  { %v911_v28 = vadd.f32 %v910_v26, %v909_v23  ;;  %v932_v29 = vpop.f32.mrf.mxu1 }
 0x538   :  { %v912_v30 = vpop.f32.mrf.mxu0  ;;  %v933_v32 = vadd.f32 %v932_v29, %v931_v24 }
 0x539   :  { %v736_v31 = vadd.f32 %v911_v28, %v858_v25  ;;  %v934_v33 = vpop.f32.mrf.mxu1 }
 0x53a   :  { %v913_v34 = vpop.f32.mrf.mxu0 }
 0x53b   :  { %v776_v35 = vadd.f32 %v933_v32, %v736_v31  ;;  %v935_v36 = vpop.f32.mrf.mxu1 }
 0x53d   :  { %v781_v37 = vadd.f32 %v776_v35, %v1118_v27  ;;  %v892_v27 = vld [vmem:[%s1341_s10] ss:$0 sm:$0xff] }
 0x53f   :  { %788 = vadd.xlane.f32.xlu0 %v781_v37 }
 0x5c8   :  { %v789_v38 = vpop.xlane.xlu0 %788 }
 0x5c9   :  { %v790_v39 = vmul.f32 0.0078125, %v789_v38 }
 0x5cb   :  { %v791_v40 = vsub.f32 %v781_v37, %v790_v39 }
 0x5cd   :  { %v792_v41 = vmul.f32 %v791_v40, %v791_v40 }
 0x5cf   :  { %793 = vadd.xlane.f32.xlu1 %v792_v41 }
 0x658   :  { %v794_v42 = vpop.xlane.xlu1 %793 }
 0x659   :  { %v795_v43 = vmul.f32 0.0078125, %v794_v42 }
 0x65b   :  { %v796_v44 = vadd.f32 1e-06, %v795_v43 }
 0x65d   :  { %1032 = vrsqrt.f32 %v796_v44 }
 0x66a   :  { %v1033_v45 = vpop.eup %1032 }
 0x66b   :  { %v798_v47 = vmul.f32 %v1033_v45, %v791_v40 }
 0x66d   :  { %v805_v48 = vmul.f32 %v891_v46, %v798_v47 }
 0x66f   :  { %v812_v49 = vadd.f32 %v892_v27, %v805_v48 }
 0x671   :  { %813 = vst [vmem:[%s1342_s12] sm:$0xff] %v812_v49 }

</bundles_post_ra>
